<compile_context>
chip_gen: v6e
topology: v6e:2x2x1
jax: 0.10.0
libtpu: 0.0.40
codegen_flags: <defaults>
</compile_context>

<pallas_src>
import math
import functools

import jax
import jax.numpy as jnp
from jax import lax
from jax.experimental import pallas as pl
from jax.experimental.pallas import tpu as pltpu

NUM_GROUPS = 32
EPS = 1e-5
VMEM_LIMIT = 48 * 1024 * 1024   # explicit scoped-VMEM budget (fits v5e/v6e/v7x)


# --------------------------------------------------------------------------------------
# Kernel 1: GroupNorm(32, C) + per-head qkv projection.   grid = (B, heads)
# --------------------------------------------------------------------------------------
def _norm_qkv_kernel(x_ref, mt_ref, mg_ref, w_ref, b_ref, q_ref, k_ref, v_ref):
    x = x_ref[0]                                   # (T, C) f32
    t_len, c_len = x.shape
    g = mt_ref.shape[1]
    inv_n = 1.0 / ((c_len // g) * t_len)

    # Two-pass (centered) GroupNorm statistics, lane-dense (1, G) orientation via
    # one-hot group-membership matmuls (no in-kernel reshapes across the lane dim).
    csum = jnp.sum(x, axis=0, keepdims=True)                                            # (1, C)
    gmean = jnp.dot(csum, mt_ref[...], preferred_element_type=jnp.float32) * inv_n      # (1, G)
    cmean = jnp.dot(gmean, mg_ref[...], preferred_element_type=jnp.float32)             # (1, C)
    xc = x - cmean                                                                      # (T, C)
    csq = jnp.sum(xc * xc, axis=0, keepdims=True)                                       # (1, C)
    gvar = jnp.dot(csq, mt_ref[...], preferred_element_type=jnp.float32) * inv_n        # (1, G)
    grstd = lax.rsqrt(gvar + EPS)                                                       # (1, G)
    crstd = jnp.dot(grstd, mg_ref[...], preferred_element_type=jnp.float32)             # (1, C)
    # gamma/beta are folded into w_ref/b_ref host-side -> only 2 VPU ops over (T, C).
    xn = (xc * crstd).astype(jnp.bfloat16)                                              # (T, C)

    # q/k/v for this head (1x1 conv == channel matmul); scale already folded into q/k.
    for j, out in enumerate((q_ref, k_ref, v_ref)):
        y = jnp.dot(xn, w_ref[0, j], preferred_element_type=jnp.float32) + b_ref[0, j]  # (T, ch)
        out[0, 0] = y.astype(out.dtype)


# --------------------------------------------------------------------------------------
# Kernel 2: flash attention (online softmax).   grid = (B, heads, nq, nk)
# --------------------------------------------------------------------------------------
def _flash_attn_kernel(q_ref, k_ref, v_ref, o_ref, m_sc, l_sc, acc_sc):
    ki = pl.program_id(3)

    @pl.when(ki == 0)
    def _init():
        m_sc[...] = jnp.full(m_sc.shape, -jnp.inf, dtype=m_sc.dtype)
        l_sc[...] = jnp.zeros(l_sc.shape, dtype=l_sc.dtype)
        acc_sc[...] = jnp.zeros(acc_sc.shape, dtype=acc_sc.dtype)

    q = q_ref[0, 0]                                # (tq, ch) bf16 (scale pre-folded)
    k = k_ref[0, 0]                                # (tk, ch) bf16 (scale pre-folded)
    v = v_ref[0, 0]                                # (tk, ch) bf16

    # scores[t, s] = sum_c q[t, c] * k[s, c]   (bf16 operands, f32 accumulation)
    s = lax.dot_general(q, k, (((1,), (1,)), ((), ())),
                        preferred_element_type=jnp.float32)                             # (tq, tk)

    m_prev = m_sc[...]
    m_new = jnp.maximum(m_prev, jnp.max(s, axis=-1, keepdims=True))                     # (tq, 1)
    alpha = jnp.exp(m_prev - m_new)
    p = jnp.exp(s - m_new)                                                              # (tq, tk)
    l_sc[...] = alpha * l_sc[...] + jnp.sum(p, axis=-1, keepdims=True)
    acc_sc[...] = alpha * acc_sc[...] + jnp.dot(p.astype(v.dtype), v,
                                                preferred_element_type=jnp.float32)     # (tq, ch)
    m_sc[...] = m_new

    @pl.when(ki == pl.num_programs(3) - 1)
    def _finalize():
        o_ref[0, 0] = (acc_sc[...] * pl.reciprocal(l_sc[...], approx=True)
                       ).astype(o_ref.dtype)


# --------------------------------------------------------------------------------------
# Kernel 3: merge heads + proj_out (1x1 conv) + residual.   grid = (B, nt)
# --------------------------------------------------------------------------------------
def _proj_residual_kernel(num_heads, x_ref, a_ref, wp_ref, bp_ref, o_ref):
    acc = x_ref[0] + bp_ref[...]                   # (tt, C) f32
    for h in range(num_heads):
        acc = acc + jnp.dot(a_ref[0, h], wp_ref[h],
                            preferred_element_type=jnp.float32)
    o_ref[0] = acc


# --------------------------------------------------------------------------------------
# Wrapper
# --------------------------------------------------------------------------------------
@functools.partial(jax.jit, static_argnums=(2,))
def attention_block_pallas(x, params, num_heads):
    """x: (B, C, H, W) float32, like the PyTorch module."""
    B, C, H, W = x.shape
    T = H * W
    G = NUM_GROUPS
    assert C % G == 0, "GroupNorm(32, C) requires C % 32 == 0"
    assert C % num_heads == 0
    ch = C // num_heads
    gs = C // G
    f32, bf16 = jnp.float32, jnp.bfloat16

    # ---- layout plumbing: NCHW -> (B, T, C) (lane-dense, T-major matmuls) -------------
    xt = jnp.transpose(x.reshape(B, C, T), (0, 2, 1)).astype(f32)

    # ---- group-membership matrices for lane-dense GroupNorm stats ---------------------
    cid = jnp.arange(C)
    gid = jnp.arange(G)
    mt = (cid[:, None] // gs == gid[None, :]).astype(f32)     # (C, G)
    mg = mt.T                                                 # (G, C)

    # ---- host-side weight folds (free at runtime) -------------------------------------
    gamma = params["gamma"].astype(f32)
    beta = params["beta"].astype(f32)
    wqkv = params["w_qkv"].astype(f32)                        # (3C, C)
    bqkv = params["b_qkv"].astype(f32)                        # (3C,)
    wproj = params["w_proj"].astype(f32)                      # (C, C)
    bproj = params["b_proj"].astype(f32)                      # (C,)

    # GroupNorm affine folded into the qkv conv:  W' = W * gamma[c],  b' = W @ beta + b
    wf = wqkv * gamma[None, :]
    bfold = wqkv @ beta + bqkv
    # Legacy row layout: row = h*3*ch + j*ch + i  (j: 0=q, 1=k, 2=v).  Fold 1/ch^0.25 into q,k.
    scale = 1.0 / math.sqrt(math.sqrt(ch))
    wf = wf.reshape(num_heads, 3, ch, C)
    bfold = bfold.reshape(num_heads, 3, ch)
    svec = jnp.array([scale, scale, 1.0], f32)
    wf = wf * svec[None, :, None, None]
    bfold = bfold * svec[None, :, None]
    w_qkv_t = jnp.transpose(wf, (0, 1, 3, 2)).astype(bf16)    # (heads, 3, C, ch)
    b_qkv_t = bfold.reshape(num_heads, 3, 1, ch).astype(f32)  # (heads, 3, 1, ch)

    # proj_out in per-head T-major layout:  WpT[h, j, o] = Wproj[o, h*ch + j]
    w_proj_t = jnp.transpose(wproj.reshape(C, num_heads, ch), (1, 2, 0)).astype(bf16)  # (heads, ch, C)
    b_proj_t = bproj.reshape(1, C).astype(f32)

    def cparams(sems):
        return pltpu.CompilerParams(dimension_semantics=sems,
                                    vmem_limit_bytes=VMEM_LIMIT)

    # ---- kernel 1: GroupNorm + per-head qkv -------------------------------------------
    qkv_shape = jax.ShapeDtypeStruct((B, num_heads, T, ch), bf16)
    q, k, v = pl.pallas_call(
        _norm_qkv_kernel,
        out_shape=(qkv_shape, qkv_shape, qkv_shape),
        grid_spec=pltpu.PrefetchScalarGridSpec(
            num_scalar_prefetch=0,
            grid=(B, num_heads),
            in_specs=[
                pl.BlockSpec((1, T, C), lambda b, h: (b, 0, 0)),        # x (T-major)
                pl.BlockSpec((C, G), lambda b, h: (0, 0)),              # channel->group one-hot
                pl.BlockSpec((G, C), lambda b, h: (0, 0)),              # group->channel one-hot
                pl.BlockSpec((1, 3, C, ch), lambda b, h: (h, 0, 0, 0)),  # folded qkv weights
                pl.BlockSpec((1, 3, 1, ch), lambda b, h: (h, 0, 0, 0)),  # folded qkv bias
            ],
            out_specs=[pl.BlockSpec((1, 1, T, ch), lambda b, h: (b, h, 0, 0))
                       for _ in range(3)],
        ),
        compiler_params=cparams(("parallel", "parallel")),
    )(xt, mt, mg, w_qkv_t, b_qkv_t)

    # ---- kernel 2: flash attention ------------------------------------------------------
    if T % 256 == 0 and T > 256:
        tq = tk = 256        # MXU-friendly tiles for realistic diffusion T on v6e/v7x
    elif T % 128 == 0:
        tq = tk = 128
    else:
        tq = tk = T          # full-extent fallback keeps BlockSpecs legal for odd T
    nq, nk = T // tq, T // tk

    attn = pl.pallas_call(
        _flash_attn_kernel,
        out_shape=jax.ShapeDtypeStruct((B, num_heads, T, ch), bf16),
        grid_spec=pltpu.PrefetchScalarGridSpec(
            num_scalar_prefetch=0,
            grid=(B, num_heads, nq, nk),
            in_specs=[
                pl.BlockSpec((1, 1, tq, ch), lambda b, h, qi, ki: (b, h, qi, 0)),  # Q
                pl.BlockSpec((1, 1, tk, ch), lambda b, h, qi, ki: (b, h, ki, 0)),  # K
                pl.BlockSpec((1, 1, tk, ch), lambda b, h, qi, ki: (b, h, ki, 0)),  # V
            ],
            out_specs=pl.BlockSpec((1, 1, tq, ch), lambda b, h, qi, ki: (b, h, qi, 0)),
            scratch_shapes=[
                pltpu.VMEM((tq, 1), f32),    # running max
                pltpu.VMEM((tq, 1), f32),    # running denom
                pltpu.VMEM((tq, ch), f32),   # running accumulator
            ],
        ),
        compiler_params=cparams(("parallel", "parallel", "parallel", "arbitrary")),
    )(q, k, v)

    # ---- kernel 3: merge heads + proj_out + residual -----------------------------------
    tt = tq
    nt = T // tt
    out_t = pl.pallas_call(
        functools.partial(_proj_residual_kernel, num_heads),
        out_shape=jax.ShapeDtypeStruct((B, T, C), f32),
        grid_spec=pltpu.PrefetchScalarGridSpec(
            num_scalar_prefetch=0,
            grid=(B, nt),
            in_specs=[
                pl.BlockSpec((1, tt, C), lambda b, t: (b, t, 0)),                 # residual x
                pl.BlockSpec((1, num_heads, tt, ch), lambda b, t: (b, 0, t, 0)),  # attention out
                pl.BlockSpec((num_heads, ch, C), lambda b, t: (0, 0, 0)),         # proj weight
                pl.BlockSpec((1, C), lambda b, t: (0, 0)),                        # proj bias
            ],
            out_specs=pl.BlockSpec((1, tt, C), lambda b, t: (b, t, 0)),
        ),
        compiler_params=cparams(("parallel", "parallel")),
    )(xt, attn, w_proj_t, b_proj_t)

    # ---- layout plumbing back: (B, T, C) -> (B, C, H, W) --------------------------------
    return jnp.transpose(out_t, (0, 2, 1)).reshape(B, C, H, W)


# --------------------------------------------------------------------------------------
# Pure-JAX reference matching the PyTorch forward semantics (f32 throughout).
# --------------------------------------------------------------------------------------
def attention_block_reference(x, params, num_heads):
    B, C, H, W = x.shape
    T = H * W
    G = NUM_GROUPS
    xf = x.reshape(B, C, T).astype(jnp.float32)
    # GroupNorm32
    xg = xf.reshape(B, G, (C // G) * T)
    mean = xg.mean(-1, keepdims=True)
    var = xg.var(-1, keepdims=True)
    xn = ((xg - mean) / jnp.sqrt(var + EPS)).reshape(B, C, T)
    xn = xn * params["gamma"][None, :, None] + params["beta"][None, :, None]
    # qkv 1x1 conv
    qkv = jnp.einsum("oc,bct->bot", params["w_qkv"], xn) + params["b_qkv"][None, :, None]
    # QKVAttentionLegacy
    ch = C // num_heads
    qkv_h = qkv.reshape(B * num_heads, 3 * ch, T)
    q, k, v = qkv_h[:, :ch], qkv_h[:, ch:2 * ch], qkv_h[:, 2 * ch:]
    scale = 1.0 / math.sqrt(math.sqrt(ch))
    w = jnp.einsum("bct,bcs->bts", q * scale, k * scale)
    w = jax.nn.softmax(w.astype(jnp.float32), axis=-1)
    a = jnp.einsum("bts,bcs->bct", w, v)
    h = a.reshape(B, C, T)
    # proj_out 1x1 conv + residual
    h = jnp.einsum("oc,bct->bot", params["w_proj"], h) + params["b_proj"][None, :, None]
    return (xf + h).reshape(B, C, H, W)


if __name__ == "__main__":
    B, C, H, W = 2, 64, 16, 16   # C must be a multiple of 32 (GroupNorm(32, C)); T = 256
    NUM_HEADS = 2

    key = jax.random.PRNGKey(0)
    k1, k2, k3, k4, k5, k6, k7 = jax.random.split(key, 7)
    x = jax.random.normal(k1, (B, C, H, W), jnp.float32)

    base_params = {
        "gamma": 1.0 + 0.1 * jax.random.normal(k2, (C,), jnp.float32),
        "beta": 0.1 * jax.random.normal(k3, (C,), jnp.float32),
        "w_qkv": 0.1 * jax.random.normal(k4, (3 * C, C), jnp.float32),
        "b_qkv": 0.1 * jax.random.normal(k5, (3 * C,), jnp.float32),
    }
    # Faithful to the module: zero_module(conv_nd(1, C, C, 1)) zeroes proj_out.
    params_faithful = dict(base_params,
                           w_proj=jnp.zeros((C, C), jnp.float32),
                           b_proj=jnp.zeros((C,), jnp.float32))
    # Non-zero proj weights purely to numerically exercise the full attention path.
    params_check = dict(base_params,
                        w_proj=0.1 * jax.random.normal(k6, (C, C), jnp.float32),
                        b_proj=0.1 * jax.random.normal(k7, (C,), jnp.float32))

    ok = True
    for params in (params_faithful, params_check):
        out = jax.block_until_ready(attention_block_pallas(x, params, NUM_HEADS))
        ref = jax.block_until_ready(attention_block_reference(x, params, NUM_HEADS))
        # bf16 MXU operands with f32 accumulation vs. pure-f32 reference.
        ok = ok and bool(jnp.allclose(out, ref, rtol=5e-3, atol=5e-3))

    print("KERNEL_OK" if ok else "KERNEL_MISMATCH")
</pallas_src>

<mosaic_0001>
module attributes {stable_mosaic.version = 11 : i64} {
  func.func @_flash_attn_kernel(%arg0: i32, %arg1: i32, %arg2: i32, %arg3: i32, %arg4: memref<1x1x128x32xbf16, #tpu.memory_space<vmem>>, %arg5: memref<1x1x128x32xbf16, #tpu.memory_space<vmem>>, %arg6: memref<1x1x128x32xbf16, #tpu.memory_space<vmem>>, %arg7: memref<1x1x128x32xbf16, #tpu.memory_space<vmem>>, %arg8: memref<128x1xf32, #tpu.memory_space<vmem>>, %arg9: memref<128x1xf32, #tpu.memory_space<vmem>>, %arg10: memref<128x32xf32, #tpu.memory_space<vmem>>) attributes {dimension_semantics = [#tpu.dimension_semantics<parallel>, #tpu.dimension_semantics<parallel>, #tpu.dimension_semantics<parallel>, #tpu.dimension_semantics<arbitrary>], iteration_bounds = array<i64: 2, 2, 2, 2>, scalar_prefetch = 0 : i64, scratch_operands = 3 : i64, tpu.core_type = #tpu.core_type<tc>, window_params = [{transform_indices = @transform_0, window_bounds = array<i64: 1, 1, 128, 32>}, {transform_indices = @transform_1, window_bounds = array<i64: 1, 1, 128, 32>}, {transform_indices = @transform_2, window_bounds = array<i64: 1, 1, 128, 32>}, {transform_indices = @transform_3, window_bounds = array<i64: 1, 1, 128, 32>}]} {
    %c0_i32 = arith.constant 0 : i32
    %0 = arith.cmpi eq, %arg3, %c0_i32 : i32
    %1 = arith.extui %0 : i1 to i32
    %c0_i32_0 = arith.constant 0 : i32
    %2 = arith.cmpi ne, %1, %c0_i32_0 : i32
    scf.if %2 {
      %cst_28 = arith.constant 0xFF800000 : f32
      %36 = vector.broadcast %cst_28 : f32 to vector<128x1xf32>
      %c0_29 = arith.constant 0 : index
      %c0_30 = arith.constant 0 : index
      %37 = vector.load %arg8[%c0_29, %c0_30] : memref<128x1xf32, #tpu.memory_space<vmem>>, vector<128x1xf32>
      tpu.vector_store %arg8[%c0_29, %c0_30], %36 {strides = array<i32>} : memref<128x1xf32, #tpu.memory_space<vmem>>, vector<128x1xf32>,
      %cst_31 = arith.constant 0.000000e+00 : f32
      %38 = vector.broadcast %cst_31 : f32 to vector<128x1xf32>
      %c0_32 = arith.constant 0 : index
      %c0_33 = arith.constant 0 : index
      %39 = vector.load %arg9[%c0_32, %c0_33] : memref<128x1xf32, #tpu.memory_space<vmem>>, vector<128x1xf32>
      tpu.vector_store %arg9[%c0_32, %c0_33], %38 {strides = array<i32>} : memref<128x1xf32, #tpu.memory_space<vmem>>, vector<128x1xf32>,
      %cst_34 = arith.constant 0.000000e+00 : f32
      %40 = vector.broadcast %cst_34 : f32 to vector<128x32xf32>
      %c0_35 = arith.constant 0 : index
      %c0_36 = arith.constant 0 : index
      %41 = vector.load %arg10[%c0_35, %c0_36] : memref<128x32xf32, #tpu.memory_space<vmem>>, vector<128x32xf32>
      tpu.vector_store %arg10[%c0_35, %c0_36], %40 {strides = array<i32>} : memref<128x32xf32, #tpu.memory_space<vmem>>, vector<128x32xf32>,
    } else {
    }
    %c0 = arith.constant 0 : index
    %c0_1 = arith.constant 0 : index
    %c0_2 = arith.constant 0 : index
    %c0_3 = arith.constant 0 : index
    %3 = vector.load %arg4[%c0, %c0_1, %c0_2, %c0_3] : memref<1x1x128x32xbf16, #tpu.memory_space<vmem>>, vector<1x1x128x32xbf16>
    %4 = vector.shape_cast %3 : vector<1x1x128x32xbf16> to vector<128x32xbf16>
    %c0_4 = arith.constant 0 : index
    %c0_5 = arith.constant 0 : index
    %c0_6 = arith.constant 0 : index
    %c0_7 = arith.constant 0 : index
    %5 = vector.load %arg5[%c0_4, %c0_5, %c0_6, %c0_7] : memref<1x1x128x32xbf16, #tpu.memory_space<vmem>>, vector<1x1x128x32xbf16>
    %6 = vector.shape_cast %5 : vector<1x1x128x32xbf16> to vector<128x32xbf16>
    %c0_8 = arith.constant 0 : index
    %c0_9 = arith.constant 0 : index
    %c0_10 = arith.constant 0 : index
    %c0_11 = arith.constant 0 : index
    %7 = vector.load %arg6[%c0_8, %c0_9, %c0_10, %c0_11] : memref<1x1x128x32xbf16, #tpu.memory_space<vmem>>, vector<1x1x128x32xbf16>
    %8 = vector.shape_cast %7 : vector<1x1x128x32xbf16> to vector<128x32xbf16>
    %cst = arith.constant dense<0.000000e+00> : vector<128x128xf32>
    %9 = tpu.matmul %4, %6, %cst {dimension_numbers = #tpu.dot_dimension_numbers<[1], [1], [0], [0], [0, 0, 1, 0], [], []>} : vector<128x32xbf16>, vector<128x32xbf16>, vector<128x128xf32> -> vector<128x128xf32>
    %c0_12 = arith.constant 0 : index
    %c0_13 = arith.constant 0 : index
    %10 = vector.load %arg8[%c0_12, %c0_13] : memref<128x1xf32, #tpu.memory_space<vmem>>, vector<128x1xf32>
    %cst_14 = arith.constant dense<0xFF800000> : vector<128xf32>
    %11 = vector.multi_reduction <maximumf>, %9, %cst_14 [1] : vector<128x128xf32> to vector<128xf32>
    %12 = vector.shape_cast %11 : vector<128xf32> to vector<128x1xf32>
    %13 = arith.maximumf %10, %12 : vector<128x1xf32>
    %14 = arith.subf %10, %13 : vector<128x1xf32>
    %15 = math.exp %14 : vector<128x1xf32>
    %16 = vector.broadcast %13 : vector<128x1xf32> to vector<128x128xf32>
    %17 = arith.subf %9, %16 : vector<128x128xf32>
    %18 = math.exp %17 : vector<128x128xf32>
    %c0_15 = arith.constant 0 : index
    %c0_16 = arith.constant 0 : index
    %19 = vector.load %arg9[%c0_15, %c0_16] : memref<128x1xf32, #tpu.memory_space<vmem>>, vector<128x1xf32>
    %20 = arith.mulf %15, %19 : vector<128x1xf32>
    %cst_17 = arith.constant dense<0.000000e+00> : vector<128xf32>
    %21 = vector.multi_reduction <add>, %18, %cst_17 [1] : vector<128x128xf32> to vector<128xf32>
    %22 = vector.shape_cast %21 : vector<128xf32> to vector<128x1xf32>
    %23 = arith.addf %20, %22 : vector<128x1xf32>
    %c0_18 = arith.constant 0 : index
    %c0_19 = arith.constant 0 : index
    %24 = vector.load %arg9[%c0_18, %c0_19] : memref<128x1xf32, #tpu.memory_space<vmem>>, vector<128x1xf32>
    tpu.vector_store %arg9[%c0_18, %c0_19], %23 {strides = array<i32>} : memref<128x1xf32, #tpu.memory_space<vmem>>, vector<128x1xf32>,
    %c0_20 = arith.constant 0 : index
    %c0_21 = arith.constant 0 : index
    %25 = vector.load %arg10[%c0_20, %c0_21] : memref<128x32xf32, #tpu.memory_space<vmem>>, vector<128x32xf32>
    %26 = vector.broadcast %15 : vector<128x1xf32> to vector<128x32xf32>
    %27 = arith.mulf %26, %25 : vector<128x32xf32>
    %28 = arith.truncf %18 : vector<128x128xf32> to vector<128x128xbf16>
    %cst_22 = arith.constant dense<0.000000e+00> : vector<128x32xf32>
    %29 = tpu.matmul %28, %8, %cst_22 {dimension_numbers = #tpu.dot_dimension_numbers<[1], [0], [0], [1], [0, 0, 1, 1], [], []>} : vector<128x128xbf16>, vector<128x32xbf16>, vector<128x32xf32> -> vector<128x32xf32>
    %30 = arith.addf %27, %29 : vector<128x32xf32>
    %c0_23 = arith.constant 0 : index
    %c0_24 = arith.constant 0 : index
    %31 = vector.load %arg10[%c0_23, %c0_24] : memref<128x32xf32, #tpu.memory_space<vmem>>, vector<128x32xf32>
    tpu.vector_store %arg10[%c0_23, %c0_24], %30 {strides = array<i32>} : memref<128x32xf32, #tpu.memory_space<vmem>>, vector<128x32xf32>,
    %c0_25 = arith.constant 0 : index
    %c0_26 = arith.constant 0 : index
    %32 = vector.load %arg8[%c0_25, %c0_26] : memref<128x1xf32, #tpu.memory_space<vmem>>, vector<128x1xf32>
    tpu.vector_store %arg8[%c0_25, %c0_26], %13 {strides = array<i32>} : memref<128x1xf32, #tpu.memory_space<vmem>>, vector<128x1xf32>,
    %c1_i32 = arith.constant 1 : i32
    %33 = arith.cmpi eq, %arg3, %c1_i32 : i32
    %34 = arith.extui %33 : i1 to i32
    %c0_i32_27 = arith.constant 0 : i32
    %35 = arith.cmpi ne, %34, %c0_i32_27 : i32
    scf.if %35 {
      %c0_28 = arith.constant 0 : index
      %c0_29 = arith.constant 0 : index
      %36 = vector.load %arg10[%c0_28, %c0_29] : memref<128x32xf32, #tpu.memory_space<vmem>>, vector<128x32xf32>
      %c0_30 = arith.constant 0 : index
      %c0_31 = arith.constant 0 : index
      %37 = vector.load %arg9[%c0_30, %c0_31] : memref<128x1xf32, #tpu.memory_space<vmem>>, vector<128x1xf32>
      %38 = tpu.reciprocal %37 {approx = true} : vector<128x1xf32> -> vector<128x1xf32>
      %39 = vector.broadcast %38 : vector<128x1xf32> to vector<128x32xf32>
      %40 = arith.mulf %36, %39 : vector<128x32xf32>
      %41 = arith.truncf %40 : vector<128x32xf32> to vector<128x32xbf16>
      %c0_32 = arith.constant 0 : index
      %c0_33 = arith.constant 0 : index
      %c0_34 = arith.constant 0 : index
      %c0_35 = arith.constant 0 : index
      %42 = vector.load %arg7[%c0_32, %c0_33, %c0_34, %c0_35] : memref<1x1x128x32xbf16, #tpu.memory_space<vmem>>, vector<1x1x128x32xbf16>
      %43 = vector.shape_cast %42 : vector<1x1x128x32xbf16> to vector<128x32xbf16>
      %44 = vector.shape_cast %41 : vector<128x32xbf16> to vector<1x1x128x32xbf16>
      tpu.vector_store %arg7[%c0_32, %c0_33, %c0_34, %c0_35], %44 {strides = array<i32>} : memref<1x1x128x32xbf16, #tpu.memory_space<vmem>>, vector<1x1x128x32xbf16>,
    } else {
    }
    return
  }
  func.func @transform_0(%arg0: i32, %arg1: i32, %arg2: i32, %arg3: i32) -> (i32, i32, i32, i32) {
    %c0_i32 = arith.constant 0 : i32
    %c0_i32_0 = arith.constant 0 : i32
    return %arg0, %arg1, %arg2, %c0_i32 : i32, i32, i32, i32
  }
  func.func @transform_1(%arg0: i32, %arg1: i32, %arg2: i32, %arg3: i32) -> (i32, i32, i32, i32) {
    %c0_i32 = arith.constant 0 : i32
    %c0_i32_0 = arith.constant 0 : i32
    return %arg0, %arg1, %arg3, %c0_i32 : i32, i32, i32, i32
  }
  func.func @transform_2(%arg0: i32, %arg1: i32, %arg2: i32, %arg3: i32) -> (i32, i32, i32, i32) {
    %c0_i32 = arith.constant 0 : i32
    %c0_i32_0 = arith.constant 0 : i32
    return %arg0, %arg1, %arg3, %c0_i32 : i32, i32, i32, i32
  }
  func.func @transform_3(%arg0: i32, %arg1: i32, %arg2: i32, %arg3: i32) -> (i32, i32, i32, i32) {
    %c0_i32 = arith.constant 0 : i32
    %c0_i32_0 = arith.constant 0 : i32
    return %arg0, %arg1, %arg2, %c0_i32 : i32, i32, i32, i32
  }
}

module attributes {stable_mosaic.version = 11 : i64} {
  func.func @_norm_qkv_kernel(%arg0: i32, %arg1: i32, %arg2: memref<1x256x64xf32, #tpu.memory_space<vmem>>, %arg3: memref<64x32xf32, #tpu.memory_space<vmem>>, %arg4: memref<32x64xf32, #tpu.memory_space<vmem>>, %arg5: memref<1x3x64x32xbf16, #tpu.memory_space<vmem>>, %arg6: memref<1x3x1x32xf32, #tpu.memory_space<vmem>>, %arg7: memref<1x1x256x32xbf16, #tpu.memory_space<vmem>>, %arg8: memref<1x1x256x32xbf16, #tpu.memory_space<vmem>>, %arg9: memref<1x1x256x32xbf16, #tpu.memory_space<vmem>>) attributes {dimension_semantics = [#tpu.dimension_semantics<parallel>, #tpu.dimension_semantics<parallel>], iteration_bounds = array<i64: 2, 2>, scalar_prefetch = 0 : i64, scratch_operands = 0 : i64, tpu.core_type = #tpu.core_type<tc>, window_params = [{transform_indices = @transform_0, window_bounds = array<i64: 1, 256, 64>}, {pipeline_mode = #tpu.pipeline_mode<synchronous>, transform_indices = @transform_1, window_bounds = array<i64: 64, 32>}, {pipeline_mode = #tpu.pipeline_mode<synchronous>, transform_indices = @transform_2, window_bounds = array<i64: 32, 64>}, {transform_indices = @transform_3, window_bounds = array<i64: 1, 3, 64, 32>}, {transform_indices = @transform_4, window_bounds = array<i64: 1, 3, 1, 32>}, {transform_indices = @transform_5, window_bounds = array<i64: 1, 1, 256, 32>}, {transform_indices = @transform_6, window_bounds = array<i64: 1, 1, 256, 32>}, {transform_indices = @transform_7, window_bounds = array<i64: 1, 1, 256, 32>}]} {
    %c0 = arith.constant 0 : index
    %c0_0 = arith.constant 0 : index
    %c0_1 = arith.constant 0 : index
    %0 = vector.load %arg2[%c0, %c0_0, %c0_1] : memref<1x256x64xf32, #tpu.memory_space<vmem>>, vector<1x256x64xf32>
    %1 = vector.shape_cast %0 : vector<1x256x64xf32> to vector<256x64xf32>
    %cst = arith.constant dense<0.000000e+00> : vector<64xf32>
    %2 = vector.multi_reduction <add>, %1, %cst [0] : vector<256x64xf32> to vector<64xf32>
    %3 = vector.shape_cast %2 : vector<64xf32> to vector<1x64xf32>
    %c0_2 = arith.constant 0 : index
    %c0_3 = arith.constant 0 : index
    %4 = vector.load %arg3[%c0_2, %c0_3] : memref<64x32xf32, #tpu.memory_space<vmem>>, vector<64x32xf32>
    %cst_4 = arith.constant dense<0.000000e+00> : vector<1x32xf32>
    %5 = tpu.matmul %3, %4, %cst_4 {dimension_numbers = #tpu.dot_dimension_numbers<[1], [0], [0], [1], [0, 0, 1, 1], [], []>} : vector<1x64xf32>, vector<64x32xf32>, vector<1x32xf32> -> vector<1x32xf32>
    %cst_5 = arith.constant 0.001953125 : f32
    %6 = vector.broadcast %cst_5 : f32 to vector<1x32xf32>
    %7 = arith.mulf %5, %6 : vector<1x32xf32>
    %c0_6 = arith.constant 0 : index
    %c0_7 = arith.constant 0 : index
    %8 = vector.load %arg4[%c0_6, %c0_7] : memref<32x64xf32, #tpu.memory_space<vmem>>, vector<32x64xf32>
    %cst_8 = arith.constant dense<0.000000e+00> : vector<1x64xf32>
    %9 = tpu.matmul %7, %8, %cst_8 {dimension_numbers = #tpu.dot_dimension_numbers<[1], [0], [0], [1], [0, 0, 1, 1], [], []>} : vector<1x32xf32>, vector<32x64xf32>, vector<1x64xf32> -> vector<1x64xf32>
    %10 = vector.broadcast %9 : vector<1x64xf32> to vector<256x64xf32>
    %11 = arith.subf %1, %10 : vector<256x64xf32>
    %12 = arith.mulf %11, %11 : vector<256x64xf32>
    %cst_9 = arith.constant dense<0.000000e+00> : vector<64xf32>
    %13 = vector.multi_reduction <add>, %12, %cst_9 [0] : vector<256x64xf32> to vector<64xf32>
    %14 = vector.shape_cast %13 : vector<64xf32> to vector<1x64xf32>
    %c0_10 = arith.constant 0 : index
    %c0_11 = arith.constant 0 : index
    %15 = vector.load %arg3[%c0_10, %c0_11] : memref<64x32xf32, #tpu.memory_space<vmem>>, vector<64x32xf32>
    %cst_12 = arith.constant dense<0.000000e+00> : vector<1x32xf32>
    %16 = tpu.matmul %14, %15, %cst_12 {dimension_numbers = #tpu.dot_dimension_numbers<[1], [0], [0], [1], [0, 0, 1, 1], [], []>} : vector<1x64xf32>, vector<64x32xf32>, vector<1x32xf32> -> vector<1x32xf32>
    %cst_13 = arith.constant 0.001953125 : f32
    %17 = vector.broadcast %cst_13 : f32 to vector<1x32xf32>
    %18 = arith.mulf %16, %17 : vector<1x32xf32>
    %cst_14 = arith.constant 9.99999974E-6 : f32
    %19 = vector.broadcast %cst_14 : f32 to vector<1x32xf32>
    %20 = arith.addf %18, %19 : vector<1x32xf32>
    %21 = math.rsqrt %20 : vector<1x32xf32>
    %c0_15 = arith.constant 0 : index
    %c0_16 = arith.constant 0 : index
    %22 = vector.load %arg4[%c0_15, %c0_16] : memref<32x64xf32, #tpu.memory_space<vmem>>, vector<32x64xf32>
    %cst_17 = arith.constant dense<0.000000e+00> : vector<1x64xf32>
    %23 = tpu.matmul %21, %22, %cst_17 {dimension_numbers = #tpu.dot_dimension_numbers<[1], [0], [0], [1], [0, 0, 1, 1], [], []>} : vector<1x32xf32>, vector<32x64xf32>, vector<1x64xf32> -> vector<1x64xf32>
    %24 = vector.broadcast %23 : vector<1x64xf32> to vector<256x64xf32>
    %25 = arith.mulf %11, %24 : vector<256x64xf32>
    %26 = arith.truncf %25 : vector<256x64xf32> to vector<256x64xbf16>
    %c0_18 = arith.constant 0 : index
    %c0_19 = arith.constant 0 : index
    %c0_20 = arith.constant 0 : index
    %c0_21 = arith.constant 0 : index
    %27 = vector.load %arg5[%c0_18, %c0_19, %c0_20, %c0_21] : memref<1x3x64x32xbf16, #tpu.memory_space<vmem>>, vector<1x1x64x32xbf16>
    %28 = vector.shape_cast %27 : vector<1x1x64x32xbf16> to vector<64x32xbf16>
    %cst_22 = arith.constant dense<0.000000e+00> : vector<256x32xf32>
    %29 = tpu.matmul %26, %28, %cst_22 {dimension_numbers = #tpu.dot_dimension_numbers<[1], [0], [0], [1], [0, 0, 1, 1], [], []>} : vector<256x64xbf16>, vector<64x32xbf16>, vector<256x32xf32> -> vector<256x32xf32>
    %c0_23 = arith.constant 0 : index
    %c0_24 = arith.constant 0 : index
    %c0_25 = arith.constant 0 : index
    %c0_26 = arith.constant 0 : index
    %30 = vector.load %arg6[%c0_23, %c0_24, %c0_25, %c0_26] : memref<1x3x1x32xf32, #tpu.memory_space<vmem>>, vector<1x1x1x32xf32>
    %31 = vector.shape_cast %30 : vector<1x1x1x32xf32> to vector<1x32xf32>
    %32 = vector.broadcast %31 : vector<1x32xf32> to vector<256x32xf32>
    %33 = arith.addf %29, %32 : vector<256x32xf32>
    %34 = arith.truncf %33 : vector<256x32xf32> to vector<256x32xbf16>
    %c0_27 = arith.constant 0 : index
    %c0_28 = arith.constant 0 : index
    %c0_29 = arith.constant 0 : index
    %c0_30 = arith.constant 0 : index
    %35 = vector.load %arg7[%c0_27, %c0_28, %c0_29, %c0_30] : memref<1x1x256x32xbf16, #tpu.memory_space<vmem>>, vector<1x1x256x32xbf16>
    %36 = vector.shape_cast %35 : vector<1x1x256x32xbf16> to vector<256x32xbf16>
    %37 = vector.shape_cast %34 : vector<256x32xbf16> to vector<1x1x256x32xbf16>
    tpu.vector_store %arg7[%c0_27, %c0_28, %c0_29, %c0_30], %37 {strides = array<i32>} : memref<1x1x256x32xbf16, #tpu.memory_space<vmem>>, vector<1x1x256x32xbf16>,
    %c0_31 = arith.constant 0 : index
    %c1 = arith.constant 1 : index
    %c0_32 = arith.constant 0 : index
    %c0_33 = arith.constant 0 : index
    %38 = vector.load %arg5[%c0_31, %c1, %c0_32, %c0_33] : memref<1x3x64x32xbf16, #tpu.memory_space<vmem>>, vector<1x1x64x32xbf16>
    %39 = vector.shape_cast %38 : vector<1x1x64x32xbf16> to vector<64x32xbf16>
    %cst_34 = arith.constant dense<0.000000e+00> : vector<256x32xf32>
    %40 = tpu.matmul %26, %39, %cst_34 {dimension_numbers = #tpu.dot_dimension_numbers<[1], [0], [0], [1], [0, 0, 1, 1], [], []>} : vector<256x64xbf16>, vector<64x32xbf16>, vector<256x32xf32> -> vector<256x32xf32>
    %c0_35 = arith.constant 0 : index
    %c1_36 = arith.constant 1 : index
    %c0_37 = arith.constant 0 : index
    %c0_38 = arith.constant 0 : index
    %41 = vector.load %arg6[%c0_35, %c1_36, %c0_37, %c0_38] : memref<1x3x1x32xf32, #tpu.memory_space<vmem>>, vector<1x1x1x32xf32>
    %42 = vector.shape_cast %41 : vector<1x1x1x32xf32> to vector<1x32xf32>
    %43 = vector.broadcast %42 : vector<1x32xf32> to vector<256x32xf32>
    %44 = arith.addf %40, %43 : vector<256x32xf32>
    %45 = arith.truncf %44 : vector<256x32xf32> to vector<256x32xbf16>
    %c0_39 = arith.constant 0 : index
    %c0_40 = arith.constant 0 : index
    %c0_41 = arith.constant 0 : index
    %c0_42 = arith.constant 0 : index
    %46 = vector.load %arg8[%c0_39, %c0_40, %c0_41, %c0_42] : memref<1x1x256x32xbf16, #tpu.memory_space<vmem>>, vector<1x1x256x32xbf16>
    %47 = vector.shape_cast %46 : vector<1x1x256x32xbf16> to vector<256x32xbf16>
    %48 = vector.shape_cast %45 : vector<256x32xbf16> to vector<1x1x256x32xbf16>
    tpu.vector_store %arg8[%c0_39, %c0_40, %c0_41, %c0_42], %48 {strides = array<i32>} : memref<1x1x256x32xbf16, #tpu.memory_space<vmem>>, vector<1x1x256x32xbf16>,
    %c0_43 = arith.constant 0 : index
    %c2 = arith.constant 2 : index
    %c0_44 = arith.constant 0 : index
    %c0_45 = arith.constant 0 : index
    %49 = vector.load %arg5[%c0_43, %c2, %c0_44, %c0_45] : memref<1x3x64x32xbf16, #tpu.memory_space<vmem>>, vector<1x1x64x32xbf16>
    %50 = vector.shape_cast %49 : vector<1x1x64x32xbf16> to vector<64x32xbf16>
    %cst_46 = arith.constant dense<0.000000e+00> : vector<256x32xf32>
    %51 = tpu.matmul %26, %50, %cst_46 {dimension_numbers = #tpu.dot_dimension_numbers<[1], [0], [0], [1], [0, 0, 1, 1], [], []>} : vector<256x64xbf16>, vector<64x32xbf16>, vector<256x32xf32> -> vector<256x32xf32>
    %c0_47 = arith.constant 0 : index
    %c2_48 = arith.constant 2 : index
    %c0_49 = arith.constant 0 : index
    %c0_50 = arith.constant 0 : index
    %52 = vector.load %arg6[%c0_47, %c2_48, %c0_49, %c0_50] : memref<1x3x1x32xf32, #tpu.memory_space<vmem>>, vector<1x1x1x32xf32>
    %53 = vector.shape_cast %52 : vector<1x1x1x32xf32> to vector<1x32xf32>
    %54 = vector.broadcast %53 : vector<1x32xf32> to vector<256x32xf32>
    %55 = arith.addf %51, %54 : vector<256x32xf32>
    %56 = arith.truncf %55 : vector<256x32xf32> to vector<256x32xbf16>
    %c0_51 = arith.constant 0 : index
    %c0_52 = arith.constant 0 : index
    %c0_53 = arith.constant 0 : index
    %c0_54 = arith.constant 0 : index
    %57 = vector.load %arg9[%c0_51, %c0_52, %c0_53, %c0_54] : memref<1x1x256x32xbf16, #tpu.memory_space<vmem>>, vector<1x1x256x32xbf16>
    %58 = vector.shape_cast %57 : vector<1x1x256x32xbf16> to vector<256x32xbf16>
    %59 = vector.shape_cast %56 : vector<256x32xbf16> to vector<1x1x256x32xbf16>
    tpu.vector_store %arg9[%c0_51, %c0_52, %c0_53, %c0_54], %59 {strides = array<i32>} : memref<1x1x256x32xbf16, #tpu.memory_space<vmem>>, vector<1x1x256x32xbf16>,
    return
  }
  func.func @transform_0(%arg0: i32, %arg1: i32) -> (i32, i32, i32) {
    %c0_i32 = arith.constant 0 : i32
    %c0_i32_0 = arith.constant 0 : i32
    %c0_i32_1 = arith.constant 0 : i32
    return %arg0, %c0_i32, %c0_i32_0 : i32, i32, i32
  }
  func.func @transform_1(%arg0: i32, %arg1: i32) -> (i32, i32) {
    %c0_i32 = arith.constant 0 : i32
    %c0_i32_0 = arith.constant 0 : i32
    %c0_i32_1 = arith.constant 0 : i32
    return %c0_i32, %c0_i32_0 : i32, i32
  }
  func.func @transform_2(%arg0: i32, %arg1: i32) -> (i32, i32) {
    %c0_i32 = arith.constant 0 : i32
    %c0_i32_0 = arith.constant 0 : i32
    %c0_i32_1 = arith.constant 0 : i32
    return %c0_i32, %c0_i32_0 : i32, i32
  }
  func.func @transform_3(%arg0: i32, %arg1: i32) -> (i32, i32, i32, i32) {
    %c0_i32 = arith.constant 0 : i32
    %c0_i32_0 = arith.constant 0 : i32
    %c0_i32_1 = arith.constant 0 : i32
    %c0_i32_2 = arith.constant 0 : i32
    return %arg1, %c0_i32, %c0_i32_0, %c0_i32_1 : i32, i32, i32, i32
  }
  func.func @transform_4(%arg0: i32, %arg1: i32) -> (i32, i32, i32, i32) {
    %c0_i32 = arith.constant 0 : i32
    %c0_i32_0 = arith.constant 0 : i32
    %c0_i32_1 = arith.constant 0 : i32
    %c0_i32_2 = arith.constant 0 : i32
    return %arg1, %c0_i32, %c0_i32_0, %c0_i32_1 : i32, i32, i32, i32
  }
  func.func @transform_5(%arg0: i32, %arg1: i32) -> (i32, i32, i32, i32) {
    %c0_i32 = arith.constant 0 : i32
    %c0_i32_0 = arith.constant 0 : i32
    %c0_i32_1 = arith.constant 0 : i32
    return %arg0, %arg1, %c0_i32, %c0_i32_0 : i32, i32, i32, i32
  }
  func.func @transform_6(%arg0: i32, %arg1: i32) -> (i32, i32, i32, i32) {
    %c0_i32 = arith.constant 0 : i32
    %c0_i32_0 = arith.constant 0 : i32
    %c0_i32_1 = arith.constant 0 : i32
    return %arg0, %arg1, %c0_i32, %c0_i32_0 : i32, i32, i32, i32
  }
  func.func @transform_7(%arg0: i32, %arg1: i32) -> (i32, i32, i32, i32) {
    %c0_i32 = arith.constant 0 : i32
    %c0_i32_0 = arith.constant 0 : i32
    %c0_i32_1 = arith.constant 0 : i32
    return %arg0, %arg1, %c0_i32, %c0_i32_0 : i32, i32, i32, i32
  }
}

module attributes {stable_mosaic.version = 11 : i64} {
  func.func @_proj_residual_kernel(%arg0: i32, %arg1: i32, %arg2: memref<1x128x64xf32, #tpu.memory_space<vmem>>, %arg3: memref<1x2x128x32xbf16, #tpu.memory_space<vmem>>, %arg4: memref<2x32x64xbf16, #tpu.memory_space<vmem>>, %arg5: memref<1x64xf32, #tpu.memory_space<vmem>>, %arg6: memref<1x128x64xf32, #tpu.memory_space<vmem>>) attributes {dimension_semantics = [#tpu.dimension_semantics<parallel>, #tpu.dimension_semantics<parallel>], iteration_bounds = array<i64: 2, 2>, scalar_prefetch = 0 : i64, scratch_operands = 0 : i64, tpu.core_type = #tpu.core_type<tc>, window_params = [{transform_indices = @transform_0, window_bounds = array<i64: 1, 128, 64>}, {transform_indices = @transform_1, window_bounds = array<i64: 1, 2, 128, 32>}, {pipeline_mode = #tpu.pipeline_mode<synchronous>, transform_indices = @transform_2, window_bounds = array<i64: 2, 32, 64>}, {pipeline_mode = #tpu.pipeline_mode<synchronous>, transform_indices = @transform_3, window_bounds = array<i64: 1, 64>}, {transform_indices = @transform_4, window_bounds = array<i64: 1, 128, 64>}]} {
    %c0 = arith.constant 0 : index
    %c0_0 = arith.constant 0 : index
    %c0_1 = arith.constant 0 : index
    %0 = vector.load %arg2[%c0, %c0_0, %c0_1] : memref<1x128x64xf32, #tpu.memory_space<vmem>>, vector<1x128x64xf32>
    %1 = vector.shape_cast %0 : vector<1x128x64xf32> to vector<128x64xf32>
    %c0_2 = arith.constant 0 : index
    %c0_3 = arith.constant 0 : index
    %2 = vector.load %arg5[%c0_2, %c0_3] : memref<1x64xf32, #tpu.memory_space<vmem>>, vector<1x64xf32>
    %3 = vector.broadcast %2 : vector<1x64xf32> to vector<128x64xf32>
    %4 = arith.addf %1, %3 : vector<128x64xf32>
    %c0_4 = arith.constant 0 : index
    %c0_5 = arith.constant 0 : index
    %c0_6 = arith.constant 0 : index
    %c0_7 = arith.constant 0 : index
    %5 = vector.load %arg3[%c0_4, %c0_5, %c0_6, %c0_7] : memref<1x2x128x32xbf16, #tpu.memory_space<vmem>>, vector<1x1x128x32xbf16>
    %6 = vector.shape_cast %5 : vector<1x1x128x32xbf16> to vector<128x32xbf16>
    %c0_8 = arith.constant 0 : index
    %c0_9 = arith.constant 0 : index
    %c0_10 = arith.constant 0 : index
    %7 = vector.load %arg4[%c0_8, %c0_9, %c0_10] : memref<2x32x64xbf16, #tpu.memory_space<vmem>>, vector<1x32x64xbf16>
    %8 = vector.shape_cast %7 : vector<1x32x64xbf16> to vector<32x64xbf16>
    %cst = arith.constant dense<0.000000e+00> : vector<128x64xf32>
    %9 = tpu.matmul %6, %8, %cst {dimension_numbers = #tpu.dot_dimension_numbers<[1], [0], [0], [1], [0, 0, 1, 1], [], []>} : vector<128x32xbf16>, vector<32x64xbf16>, vector<128x64xf32> -> vector<128x64xf32>
    %10 = arith.addf %4, %9 : vector<128x64xf32>
    %c0_11 = arith.constant 0 : index
    %c1 = arith.constant 1 : index
    %c0_12 = arith.constant 0 : index
    %c0_13 = arith.constant 0 : index
    %11 = vector.load %arg3[%c0_11, %c1, %c0_12, %c0_13] : memref<1x2x128x32xbf16, #tpu.memory_space<vmem>>, vector<1x1x128x32xbf16>
    %12 = vector.shape_cast %11 : vector<1x1x128x32xbf16> to vector<128x32xbf16>
    %c1_14 = arith.constant 1 : index
    %c0_15 = arith.constant 0 : index
    %c0_16 = arith.constant 0 : index
    %13 = vector.load %arg4[%c1_14, %c0_15, %c0_16] : memref<2x32x64xbf16, #tpu.memory_space<vmem>>, vector<1x32x64xbf16>
    %14 = vector.shape_cast %13 : vector<1x32x64xbf16> to vector<32x64xbf16>
    %cst_17 = arith.constant dense<0.000000e+00> : vector<128x64xf32>
    %15 = tpu.matmul %12, %14, %cst_17 {dimension_numbers = #tpu.dot_dimension_numbers<[1], [0], [0], [1], [0, 0, 1, 1], [], []>} : vector<128x32xbf16>, vector<32x64xbf16>, vector<128x64xf32> -> vector<128x64xf32>
    %16 = arith.addf %10, %15 : vector<128x64xf32>
    %c0_18 = arith.constant 0 : index
    %c0_19 = arith.constant 0 : index
    %c0_20 = arith.constant 0 : index
    %17 = vector.load %arg6[%c0_18, %c0_19, %c0_20] : memref<1x128x64xf32, #tpu.memory_space<vmem>>, vector<1x128x64xf32>
    %18 = vector.shape_cast %17 : vector<1x128x64xf32> to vector<128x64xf32>
    %19 = vector.shape_cast %16 : vector<128x64xf32> to vector<1x128x64xf32>
    tpu.vector_store %arg6[%c0_18, %c0_19, %c0_20], %19 {strides = array<i32>} : memref<1x128x64xf32, #tpu.memory_space<vmem>>, vector<1x128x64xf32>,
    return
  }
  func.func @transform_0(%arg0: i32, %arg1: i32) -> (i32, i32, i32) {
    %c0_i32 = arith.constant 0 : i32
    %c0_i32_0 = arith.constant 0 : i32
    return %arg0, %arg1, %c0_i32 : i32, i32, i32
  }
  func.func @transform_1(%arg0: i32, %arg1: i32) -> (i32, i32, i32, i32) {
    %c0_i32 = arith.constant 0 : i32
    %c0_i32_0 = arith.constant 0 : i32
    %c0_i32_1 = arith.constant 0 : i32
    return %arg0, %c0_i32, %arg1, %c0_i32_0 : i32, i32, i32, i32
  }
  func.func @transform_2(%arg0: i32, %arg1: i32) -> (i32, i32, i32) {
    %c0_i32 = arith.constant 0 : i32
    %c0_i32_0 = arith.constant 0 : i32
    %c0_i32_1 = arith.constant 0 : i32
    %c0_i32_2 = arith.constant 0 : i32
    return %c0_i32, %c0_i32_0, %c0_i32_1 : i32, i32, i32
  }
  func.func @transform_3(%arg0: i32, %arg1: i32) -> (i32, i32) {
    %c0_i32 = arith.constant 0 : i32
    %c0_i32_0 = arith.constant 0 : i32
    %c0_i32_1 = arith.constant 0 : i32
    return %c0_i32, %c0_i32_0 : i32, i32
  }
  func.func @transform_4(%arg0: i32, %arg1: i32) -> (i32, i32, i32) {
    %c0_i32 = arith.constant 0 : i32
    %c0_i32_0 = arith.constant 0 : i32
    return %arg0, %arg1, %c0_i32 : i32, i32, i32
  }
}

</mosaic_0001>

<bundles_post_ra>
// kernel: attention_block_pallas.5
= control target key start
LH: loop header
LB: loop body
LE: loop exit
PB: predicated region body
PF: predicated region fallthrough
CT: control target
= control target key end

     0   :  { %9 = vsyncpa [#allocation4], 0  ;;  %s1671_s0 = inlined_call_operand.vmem [shape: f32[2,256,64], index: 0, kind: input, shape index: {}]   ;;  %s1672_s1 = inlined_call_operand.vmem [shape: bf16[2,2,256,32], index: 1, kind: input, shape index: {}]   ;;  %s1673_s2 = inlined_call_operand.vmem [shape: bf16[2,32,64], index: 2, kind: input, shape index: {}]   ;;  %s1674_s3 = inlined_call_operand.vmem [shape: f32[1,64], index: 3, kind: input, shape index: {}]   ;;  %s1675_s4 = inlined_call_operand.hbm [shape: f32[2,256,64], index: 4, kind: output, shape index: {}]  }
   0x1   :  { %11 = vsyncpa [#allocation4 + $0x1], 0  ;;  %s1369_s15 = smov 0   ;;  %s1371_s16 = smov 0  }
   0x2   :  { %s1373_s17 = smov 0   ;;  %s1375_s18 = smov 0  }
   0x3   :  { %s1377_s19 = smov 0   ;;  %s1379_s20 = smov 0  }
   0x4   :  { %s1381_s21 = smov 0   ;;  %s1383_s22 = smov 0  }
   0x5 LB: > { %s1017_s23 = sadd.s32 4294967295, %s1339_s22   ;;  %s1018_s24 = sadd.s32 4294967294, %s1339_s22   ;;  %s1339_s22 = sphi %s1383_s22, %s17_s22   ;;  %s1335_s21 = sphi %s1381_s21, %s1685_s21   ;;  %s1331_s20 = sphi %s1379_s20, %s1684_s20   ;;  %s1327_s19 = sphi %s1377_s19, %s1683_s19   ;;  %s1323_s18 = sphi %s1375_s18, %s1682_s18   ;;  %s1319_s17 = sphi %s1373_s17, %s1681_s17   ;;  %s1315_s16 = sphi %s1371_s16, %s1680_s16   ;;  %s1311_s15 = sphi %s1369_s15, %s1679_s15  }
   0x6   : > { %s26_s25 = sadd.s32 1, %s1331_s20  ;;  %s29_s26 = sadd.s32 1, %s1335_s21 }
   0x7   : > { %p27_p0 = scmp.ge.s32.totalorder %s26_s25, 2  ;;  %p73_p1 = scmp.ne.s32.totalorder %s1319_s17, %s1315_s16 }
   0x8   : > { %p74_p2 = scmp.eq.s32.totalorder %s1339_s22, 0  ;;  %p147_p5 = scmp.eq.s32.totalorder %s1017_s23, 3 }
   0x9   : > { %s1687_s25 = smov (%p27_p0, %s26_s25), 0  ;;  %s1689_s26 = smov (!%p27_p0, %s29_s26), %s1335_s21 }
   0xa   : > { %s62_s27 = ssub.s32 %s1331_s20, %s1687_s25  ;;  %p1421_p3 = por %p74_p2, %p73_p1 }
   0xb   : > { %p31_p4 = scmp.ge.s32.totalorder %s1689_s26, 2  ;;  %p152_p6 = scmp.ne.s32.totalorder %s1315_s16, %s1311_s15 }
   0xc   : > { %p153_p7 = scmp.eq.s32.totalorder %s1018_s24, 3  ;;  %p1429_p8 = por %p147_p5, %p73_p1 }
   0xd   : > { %s1691_s26 = smov (%p31_p4, %s1689_s26), 0  ;;  %s66_s7 = sadd.s32 1, %s1319_s17 }
   0xe   : > { %p1433_p9 = por %p153_p7, %p152_p6  ;;  %s61_s5 = ssub.s32 %s1335_s21, %s1691_s26 }
   0xf   : > { %s63_s6 = sor.u32 %s62_s27, %s61_s5  ;;  %p1020_p11 = scmp.ge.s32.totalorder %s1339_s22, 4 }
  0x10   : > { %p64_p10 = scmp.eq.s32.totalorder %s63_s6, 0 }
  0x11   : > { %175 = sbr.rel (%p1020_p11) target bundleno = 37 (0x25), region = 24 }
  0x12   : > { %s1441_s8 = scalar_select %p64_p10, %s1319_s17, %s66_s7  }
  0x16   : > { %191 = sbr.rel (!%p1421_p3) target bundleno = 37 (0x25), region = 32  ;;  %s193_s9 = sand.u32 (%p1421_p3), 1, %s1319_s17  }
  0x17   : > { %s1022_s10 = sshll.u32 (%p1421_p3), %s1331_s20, 4  ;;  %s1021_s11 = sshll.u32 (%p1421_p3), %s193_s9, 7 }
  0x18   : > { %s1023_s12 = sshll.u32 (%p1421_p3), %s1335_s21, 6  ;;  %s195_s28 = scalar_lea.vmem (%p1421_p3), [#allocation2], %s1021_s11 }
  0x19   : > { %s198_s13 = sadd.s32 (%p1421_p3), %s1023_s12, %s1022_s10 }
  0x1a   : > { %s1024_s14 = sshll.u32 (%p1421_p3), %s198_s13, 2 }
  0x1b   : > { %s1452_s27 = scalar_lea.vmem %s1672_s1, %s1024_s14 }
  0x1c   : > { %v217_v0 = vld [vmem:[%s1452_s27] sm:$0xff]   ;;  %v221_v1 = vld [vmem:[%s1452_s27 + $0x8] sm:$0xff]   ;;  %v225_v2 = vld [vmem:[%s1452_s27 + $0x10] sm:$0xff]  }
  0x1d   : > { %218 = vst [vmem:[%s195_s28] sm:$0xff] %v217_v0   ;;  %222 = vst [vmem:[%s195_s28 + $0x8] sm:$0xff] %v221_v1   ;;  %v229_v3 = vld [vmem:[%s1452_s27 + $0x18] sm:$0xff]   ;;  %v233_v4 = vld [vmem:[%s1452_s27 + $0x20] sm:$0xff]  }
  0x1e   : > { %226 = vst [vmem:[%s195_s28 + $0x10] sm:$0xff] %v225_v2   ;;  %v237_v5 = vld [vmem:[%s1452_s27 + $0x28] sm:$0xff]   ;;  %230 = vst [vmem:[%s195_s28 + $0x18] sm:$0xff] %v229_v3   ;;  %v241_v6 = vld [vmem:[%s1452_s27 + $0x30] sm:$0xff]  }
  0x1f   : > { %234 = vst [vmem:[%s195_s28 + $0x20] sm:$0xff] %v233_v4   ;;  %238 = vst [vmem:[%s195_s28 + $0x28] sm:$0xff] %v237_v5   ;;  %v245_v7 = vld [vmem:[%s1452_s27 + $0x38] sm:$0xff]   ;;  %v249_v8 = vld [vmem:[%s1452_s27 + $0x80] sm:$0xff]  }
  0x20   : > { %242 = vst [vmem:[%s195_s28 + $0x30] sm:$0xff] %v241_v6   ;;  %246 = vst [vmem:[%s195_s28 + $0x38] sm:$0xff] %v245_v7   ;;  %v253_v9 = vld [vmem:[%s1452_s27 + $0x88] sm:$0xff]   ;;  %v257_v10 = vld [vmem:[%s1452_s27 + $0x90] sm:$0xff]  }
  0x21   : > { %250 = vst [vmem:[%s195_s28 + $0x40] sm:$0xff] %v249_v8   ;;  %v261_v11 = vld [vmem:[%s1452_s27 + $0x98] sm:$0xff]   ;;  %254 = vst [vmem:[%s195_s28 + $0x48] sm:$0xff] %v253_v9   ;;  %v265_v12 = vld [vmem:[%s1452_s27 + $0xa0] sm:$0xff]  }
  0x22   : > { %258 = vst [vmem:[%s195_s28 + $0x50] sm:$0xff] %v257_v10   ;;  %262 = vst [vmem:[%s195_s28 + $0x58] sm:$0xff] %v261_v11   ;;  %v269_v13 = vld [vmem:[%s1452_s27 + $0xa8] sm:$0xff]   ;;  %v273_v14 = vld [vmem:[%s1452_s27 + $0xb0] sm:$0xff]  }
  0x23   : > { %266 = vst [vmem:[%s195_s28 + $0x60] sm:$0xff] %v265_v12   ;;  %270 = vst [vmem:[%s195_s28 + $0x68] sm:$0xff] %v269_v13   ;;  %v277_v15 = vld [vmem:[%s1452_s27 + $0xb8] sm:$0xff]  }
  0x24   : > { %274 = vst [vmem:[%s195_s28 + $0x70] sm:$0xff] %v273_v14   ;;  %278 = vst [vmem:[%s195_s28 + $0x78] sm:$0xff] %v277_v15  }
  0x25 PF: > { %p1025_p12 = scmp.ge.s32.totalorder %s1339_s22, 1  ;;  %p367_p13 = scmp.lt.s32.totalorder %s1339_s22, 5 }
  0x27   : > { %p368_p0 = pnand %p1025_p12, %p367_p13 }
  0x28   : > { %s374_s7 = sand.u32 (!%p368_p0), 1, %s1315_s16   ;;  %s1525_s27 = sshll.u32 (!%p368_p0), %s1323_s18, 4 }
  0x29   : > { %371 = sbr.rel (%p368_p0) target bundleno = 296 (0x128), region = 73  ;;  %s1481_s11 = sshll.u32 (!%p368_p0), %s374_s7, 7 }
  0x2a   : > { %s1490_s24 = scalar_lea.vmem (!%p368_p0), [#allocation2], %s1481_s11  ;;  %p409_p1 = scmp.lt.s32.totalorder (!%p368_p0), %s1327_s19, 1 }
  0x2b   : > { %p411_p2 = scmp.lt.s32.totalorder (!%p368_p0), %s1525_s27, 31  ;;  %s1341_s13 = smov (!%p368_p0), [#allocation3]  }
  0x2e   : > { %v1227_v16 = vld [vmem:[%s1673_s2 + $0x8] sm:$0xff]   ;;  %v1228_v17 = vld [vmem:[%s1673_s2 + $0x18] sm:$0xff]   ;;  %v1229_v18 = vld [vmem:[%s1673_s2] sm:$0xff]   ;;  %vm532_vm0 = vcmask 261120   ;;  %s410_s28 = scalar_select %p409_p1, %s1327_s19, 1  ;;  %vm881_vm1 = vcmask 523264  }
  0x2f   : > { %1114 = vmatprep.subr.bf16.mxu0 %v1227_v16  ;;  %1134 = vmatprep.subr.bf16.mxu1 %v1228_v17  ;;  %v1230_v19 = vld [vmem:[%s1673_s2 + $0x10] sm:$0xff]   ;;  %v1231_v20 = vld [vmem:[%s1490_s24] sm:$0xff]   ;;  %v1233_v22 = vld [vmem:[%s1490_s24 + $0x8] sm:$0xff]   ;;  %s412_s5 = scalar_select %p411_p2, %s1525_s27, 31 }
  0x30   : > { %1115 = vmatpush3.bf16.msra.mxu0 %v1227_v16  ;;  %1135 = vmatpush3.bf16.msra.mxu1 %v1228_v17  ;;  %v1232_v21 = vld [vmem:[%s1490_s24 + $0x40] sm:$0xff]   ;;  %v1234_v23 = vld [vmem:[%s1490_s24 + $0x48] sm:$0xff]   ;;  %v1235_v24 = vld [vmem:[%s1490_s24 + $0x10] sm:$0xff]   ;;  %s1029_s6 = sshll.u32 %s410_s28, 5 }
  0x31   : > { %1116 = vmatprep.subr.bf16.mxu0 %v1229_v18  ;;  %1136 = vmatprep.subr.bf16.mxu1 %v1230_v19  ;;  %v1236_v25 = vld [vmem:[%s1490_s24 + $0x50] sm:$0xff]   ;;  %v1237_v26 = vld [vmem:[%s1490_s24 + $0x18] sm:$0xff]   ;;  %v1239_v28 = vld [vmem:[%s1490_s24 + $0x20] sm:$0xff]   ;;  %s414_s9 = sadd.s32 %s1029_s6, %s412_s5 }
  0x32   : > { %1118 = vmatprep.mubr.msk.bf16.mxu0 %vm532_vm0, %v1231_v20  ;;  %1138 = vmatprep.mubr.msk.bf16.mxu1 %vm532_vm0, %v1232_v21  ;;  %v1238_v27 = vld [vmem:[%s1490_s24 + $0x58] sm:$0xff]   ;;  %v1240_v29 = vld [vmem:[%s1490_s24 + $0x60] sm:$0xff]   ;;  %v1241_v30 = vld [vmem:[%s1490_s24 + $0x28] sm:$0xff]   ;;  %s1030_s10 = sshll.u32 %s414_s9, 3 }
  0x33   : > { %v1242_v31 = vld [vmem:[%s1490_s24 + $0x68] sm:$0xff]   ;;  %v1243_v32 = vld [vmem:[%s1490_s24 + $0x30] sm:$0xff]   ;;  %v1245_v34 = vld [vmem:[%s1490_s24 + $0x38] sm:$0xff]   ;;  %s1534_s14 = scalar_lea.vmem %s1671_s0, %s1030_s10  ;;  %s1620_s10 = scalar_lea.sflag [#allocation4], %s374_s7 }
  0x34   : > { %1117 = vmatpush3.bf16.msra.mxu0 %v1229_v18  ;;  %1137 = vmatpush3.bf16.msra.mxu1 %v1230_v19  ;;  %v1244_v33 = vld [vmem:[%s1490_s24 + $0x70] sm:$0xff]   ;;  %v1246_v35 = vld [vmem:[%s1490_s24 + $0x78] sm:$0xff]   ;;  %v1540_v37 = vld [vmem:[%s1674_s3] ss:$0 sm:$0xff]  ;;  %s1552_s24 = scalar_lea.vmem [#allocation3], %s1481_s11  ;;  %s1090_s11 = sshll.u32 %s1327_s19, 5 }
  0x35   : > { %v423_v36 = vld [vmem:[%s1534_s14 + $0x10] sm:$0xff]  ;;  %v421_v38 = vld [vmem:[%s1534_s14] sm:$0xff]  ;;  %v424_v40 = vld [vmem:[%s1534_s14 + $0x18] sm:$0xff]  ;;  %s911_s28 = sadd.s32 %s1090_s11, %s1525_s27  ;;  %s914_s27 = sshll.u32 %s1552_s24, 4  ;;  %s1612_s27 = int_to_ptr.vmem [resolvable:$true] %s914_s27 }
  0x36   : > { %v446_v39 = vadd.f32 %v1540_v37, %v423_v36  ;;  %v444_v41 = vadd.f32 %v1540_v37, %v421_v38  ;;  %v422_v43 = vld [vmem:[%s1534_s14 + $0x8] sm:$0xff]  ;;  %v447_v46 = vadd.f32 %v1540_v37, %v424_v40  ;;  %v427_v48 = vld [vmem:[%s1534_s14 + $0x30] sm:$0xff]  ;;  %v425_v54 = vld [vmem:[%s1534_s14 + $0x20] sm:$0xff]  ;;  %s1091_s19 = sshll.u32 %s911_s28, 7  ;;  %s1247_s12 = scalar_lea.vmem %s1612_s27, 2048 }
  0x37   : > { %1119 = vmatmul.mubr.msk.bf16.vlgmr.msra.gmra.mxu0 %vm532_vm0, %v1233_v22  ;;  %1139 = vmatmul.mubr.msk.bf16.vlgmr.msra.gmra.mxu1 %vm532_vm0, %v1234_v23  ;;  %v445_v52 = vadd.f32 %v1540_v37, %v422_v43  ;;  %v450_v58 = vadd.f32 %v1540_v37, %v427_v48  ;;  %v428_v60 = vld [vmem:[%s1534_s14 + $0x38] sm:$0xff]  ;;  %v448_v0 = vadd.f32 %v1540_v37, %v425_v54  ;;  %v426_v2 = vld [vmem:[%s1534_s14 + $0x28] sm:$0xff]  ;;  %v431_v8 = vld [vmem:[%s1534_s14 + $0x50] sm:$0xff]  ;;  %s1608_s9 = scalar_lea.hbm %s1675_s4, %s1091_s19  ;;  %p1248_p3 = scmp.ne.s32.totalorder %s1612_s27, %s1247_s12 }
  0x38   : > { %1122 = vmatprep.mubr.msk.bf16.mxu0 %vm532_vm0, %v1235_v24  ;;  %1142 = vmatprep.mubr.msk.bf16.mxu1 %vm532_vm0, %v1236_v25  ;;  %v451_v6 = vadd.f32 %v1540_v37, %v428_v60  ;;  %v449_v12 = vadd.f32 %v1540_v37, %v426_v2  ;;  %v429_v14 = vld [vmem:[%s1534_s14 + $0x40] sm:$0xff]  ;;  %v454_v18 = vadd.f32 %v1540_v37, %v431_v8  ;;  %v432_v20 = vld [vmem:[%s1534_s14 + $0x58] sm:$0xff] }
  0x39   : > { %v452_v24 = vadd.f32 %v1540_v37, %v429_v14  ;;  %p1249_p4 = pnand %p1248_p3, %p1429_p8 }
  0x3b   : > { %p1250_p5 = pneg %p1249_p4 }
  0x3f   : > { %1123 = vmatmul.mubr.msk.bf16.gmra.mxu0 %vm532_vm0, %v1237_v26  ;;  %1143 = vmatmul.mubr.msk.bf16.gmra.mxu1 %vm532_vm0, %v1238_v27  ;;  %v430_v26 = vld [vmem:[%s1534_s14 + $0x48] sm:$0xff] }
  0x40   : > { %1126 = vmatprep.mubr.msk.bf16.mxu0 %vm532_vm0, %v1239_v28  ;;  %1146 = vmatprep.mubr.msk.bf16.mxu1 %vm532_vm0, %v1240_v29  ;;  %v453_v36 = vadd.f32 %v1540_v37, %v430_v26 }
  0x47   : > { %1127 = vmatmul.mubr.msk.bf16.gmra.mxu0 %vm532_vm0, %v1241_v30  ;;  %1147 = vmatmul.mubr.msk.bf16.gmra.mxu1 %vm532_vm0, %v1242_v31  ;;  %v455_v30 = vadd.f32 %v1540_v37, %v432_v20 }
  0x48   : > { %1130 = vmatprep.mubr.msk.bf16.mxu0 %vm532_vm0, %v1243_v32  ;;  %1150 = vmatprep.mubr.msk.bf16.mxu1 %vm532_vm0, %v1244_v33  ;;  %v435_v32 = vld [vmem:[%s1534_s14 + $0x70] sm:$0xff] }
  0x49   : > { %v458_v43 = vadd.f32 %v1540_v37, %v435_v32 }
  0x4f   : > { %1131 = vmatmul.mubr.msk.bf16.gmra.mxu0 %vm532_vm0, %v1245_v34  ;;  %1151 = vmatmul.mubr.msk.bf16.gmra.mxu1 %vm532_vm0, %v1246_v35 }
  0xf7   : > { %v1120_v42 = vpop.f32.mrf.mxu0  ;;  %v1140_v45 = vpop.f32.mrf.mxu1 }
  0xf8   : > { %v656_v44 = vadd.f32 %v1120_v42, %v446_v39  ;;  %v433_v39 = vld [vmem:[%s1534_s14 + $0x60] sm:$0xff] }
  0xf9   : > { %v591_v47 = vpop.f32.mrf.mxu0  ;;  %v802_v51 = vpop.f32.mrf.mxu1 }
  0xfa   : > { %v867_v49 = vadd.f32 %v1140_v45, %v656_v44  ;;  %v654_v50 = vadd.f32 %v591_v47, %v444_v41  ;;  %v436_v45 = vld [vmem:[%s1534_s14 + $0x78] sm:$0xff] }
  0xfb   : > { %v1121_v53 = vpop.f32.mrf.mxu0  ;;  %v1141_v57 = vpop.f32.mrf.mxu1 }
  0xfc   : > { %884 = vst.msk [vmem:[%s1552_s24 + $0x10] sm:$0xff] %vm881_vm1, %v867_v49  ;;  %v865_v55 = vadd.f32 %v802_v51, %v654_v50  ;;  %v657_v56 = vadd.f32 %v1121_v53, %v447_v46  ;;  %v456_v49 = vadd.f32 %v1540_v37, %v433_v39  ;;  %v434_v51 = vld [vmem:[%s1534_s14 + $0x68] sm:$0xff]  ;;  %s1251_s14 = sshll.u32 %s1341_s13, 4  ;;  %s1252_s14 = int_to_ptr.vmem [resolvable:$false] %s1251_s14 }
  0xfd   : > { %v594_v59 = vpop.f32.mrf.mxu0  ;;  %v805_v63 = vpop.f32.mrf.mxu1  ;;  %v457_v60 = vadd.f32 %v1540_v37, %v434_v51  ;;  %s1253_s18 = scalar_lea.vmem %s1252_s14, 4096  ;;  %p1254_p6 = scmp.lt.s32.totalorder %s1612_s27, %s1252_s14 }
  0xfe   : > { %882 = vst.msk [vmem:[%s1552_s24] sm:$0xff] %vm881_vm1, %v865_v55  ;;  %v868_v61 = vadd.f32 %v1141_v57, %v657_v56  ;;  %v655_v62 = vadd.f32 %v594_v59, %v445_v52  ;;  %v459_v55 = vadd.f32 %v1540_v37, %v436_v45  ;;  %p1255_p7 = scmp.lt.s32.totalorder %s1253_s18, %s1247_s12 }
  0xff   : > { %v1124_v1 = vpop.f32.mrf.mxu0  ;;  %v1144_v5 = vpop.f32.mrf.mxu1 }
 0x100   : > { %885 = vst.msk [vmem:[%s1552_s24 + $0x18] sm:$0xff] %vm881_vm1, %v868_v61  ;;  %v866_v3 = vadd.f32 %v805_v63, %v655_v62  ;;  %v660_v4 = vadd.f32 %v1124_v1, %v450_v58  ;;  %p1256_p10 = por %p1255_p7, %p1254_p6 }
 0x101   : > { %v607_v7 = vpop.f32.mrf.mxu0  ;;  %v818_v11 = vpop.f32.mrf.mxu1 }
 0x102   : > { %883 = vst.msk [vmem:[%s1552_s24 + $0x8] sm:$0xff] %vm881_vm1, %v866_v3  ;;  %v871_v9 = vadd.f32 %v1144_v5, %v660_v4  ;;  %v658_v10 = vadd.f32 %v607_v7, %v448_v0  ;;  %p1257_p11 = pnand %p1256_p10, %p1250_p5 }
 0x103   : > { %v1125_v13 = vpop.f32.mrf.mxu0  ;;  %v1145_v17 = vpop.f32.mrf.mxu1 }
 0x104   : > { %888 = vst.msk [vmem:[%s1552_s24 + $0x30] sm:$0xff] %vm881_vm1, %v871_v9  ;;  %v869_v15 = vadd.f32 %v818_v11, %v658_v10  ;;  %v661_v16 = vadd.f32 %v1125_v13, %v451_v6 }
 0x105   : > { %v610_v19 = vpop.f32.mrf.mxu0  ;;  %v821_v23 = vpop.f32.mrf.mxu1 }
 0x106   : > { %886 = vst.msk [vmem:[%s1552_s24 + $0x20] sm:$0xff] %vm881_vm1, %v869_v15  ;;  %v872_v21 = vadd.f32 %v1145_v17, %v661_v16  ;;  %v659_v22 = vadd.f32 %v610_v19, %v449_v12 }
 0x107   : > { %v1128_v25 = vpop.f32.mrf.mxu0  ;;  %v1148_v29 = vpop.f32.mrf.mxu1 }
 0x108   : > { %889 = vst.msk [vmem:[%s1552_s24 + $0x38] sm:$0xff] %vm881_vm1, %v872_v21  ;;  %v870_v27 = vadd.f32 %v821_v23, %v659_v22  ;;  %v664_v28 = vadd.f32 %v1128_v25, %v454_v18 }
 0x109   : > { %v623_v31 = vpop.f32.mrf.mxu0  ;;  %v834_v35 = vpop.f32.mrf.mxu1 }
 0x10a   : > { %887 = vst.msk [vmem:[%s1552_s24 + $0x28] sm:$0xff] %vm881_vm1, %v870_v27  ;;  %v875_v33 = vadd.f32 %v1148_v29, %v664_v28  ;;  %v662_v34 = vadd.f32 %v623_v31, %v452_v24 }
 0x10b   : > { %v1129_v38 = vpop.f32.mrf.mxu0  ;;  %v1149_v42 = vpop.f32.mrf.mxu1 }
 0x10c   : > { %892 = vst.msk [vmem:[%s1552_s24 + $0x50] sm:$0xff] %vm881_vm1, %v875_v33  ;;  %v873_v40 = vadd.f32 %v834_v35, %v662_v34  ;;  %v665_v41 = vadd.f32 %v1129_v38, %v455_v30 }
 0x10d   : > { %v626_v44 = vpop.f32.mrf.mxu0  ;;  %v837_v48 = vpop.f32.mrf.mxu1 }
 0x10e   : > { %890 = vst.msk [vmem:[%s1552_s24 + $0x40] sm:$0xff] %vm881_vm1, %v873_v40  ;;  %v876_v46 = vadd.f32 %v1149_v42, %v665_v41  ;;  %v663_v47 = vadd.f32 %v626_v44, %v453_v36 }
 0x10f   : > { %v1132_v50 = vpop.f32.mrf.mxu0  ;;  %v1152_v54 = vpop.f32.mrf.mxu1 }
 0x110   : > { %893 = vst.msk [vmem:[%s1552_s24 + $0x58] sm:$0xff] %vm881_vm1, %v876_v46  ;;  %v874_v52 = vadd.f32 %v837_v48, %v663_v47  ;;  %v668_v53 = vadd.f32 %v1132_v50, %v458_v43 }
 0x111   : > { %v639_v56 = vpop.f32.mrf.mxu0  ;;  %v850_v59 = vpop.f32.mrf.mxu1 }
 0x112   : > { %891 = vst.msk [vmem:[%s1552_s24 + $0x48] sm:$0xff] %vm881_vm1, %v874_v52  ;;  %v879_v57 = vadd.f32 %v1152_v54, %v668_v53  ;;  %v666_v58 = vadd.f32 %v639_v56, %v456_v49 }
 0x113   : > { %v1133_v61 = vpop.f32.mrf.mxu0  ;;  %v1153_v0 = vpop.f32.mrf.mxu1 }
 0x114   : > { %896 = vst.msk [vmem:[%s1552_s24 + $0x70] sm:$0xff] %vm881_vm1, %v879_v57  ;;  %v877_v62 = vadd.f32 %v850_v59, %v666_v58  ;;  %v669_v63 = vadd.f32 %v1133_v61, %v459_v55 }
 0x115   : > { %v642_v1 = vpop.f32.mrf.mxu0  ;;  %v853_v3 = vpop.f32.mrf.mxu1 }
 0x116   : > { %894 = vst.msk [vmem:[%s1552_s24 + $0x60] sm:$0xff] %vm881_vm1, %v877_v62  ;;  %v880_v37 = vadd.f32 %v1153_v0, %v669_v63  ;;  %v667_v2 = vadd.f32 %v642_v1, %v457_v60 }
 0x118   : > { %897 = vst.msk [vmem:[%s1552_s24 + $0x78] sm:$0xff] %vm881_vm1, %v880_v37  ;;  %v878_v4 = vadd.f32 %v853_v3, %v667_v2 }
 0x11a   : > { %895 = vst.msk [vmem:[%s1552_s24 + $0x68] sm:$0xff] %vm881_vm1, %v878_v4 }
 0x11b   : > { %1260 = shalt.err (!%p1257_p11)
}
 0x11c   : > { %s1261_s7 = scalar_lea.hbm %s1608_s9, 2048  ;;  %s1265_s11 = scalar_lea.hbm %s1675_s4, 8192 }
 0x11d   : > { %p1262_p12 = scmp.ne.s32.totalorder %s1608_s9, %s1261_s7  ;;  %p1266_p1 = scmp.lt.s32.totalorder %s1608_s9, %s1675_s4 }
 0x11e   : > { %p1267_p2 = scmp.lt.s32.totalorder %s1265_s11, %s1261_s7 }
 0x11f   : > { %p1263_p13 = pnand %p1262_p12, %p1429_p8 }
 0x120   : > { %p1268_p3 = por %p1267_p2, %p1266_p1 }
 0x121   : > { %p1264_p0 = pneg %p1263_p13 }
 0x123   : > { %p1269_p4 = pnand %p1268_p3, %p1264_p0 }
 0x125   : > { %1272 = shalt.err (!%p1269_p4)
}
 0x126   : > { %s1342_s5 = smov 128   ;;  %s1343_s6 = smov 8  }
 0x127   : > { %1154 = dma.vmem_to_hbm [thread:$0]  (%p1429_p8), %s1612_s27, 2048, %s1608_s9, %s1620_s10, %s1342_s5, %s1342_s5, %s1343_s6  }
 0x128 PF: > { %p1160_p5 = scmp.ge.s32.totalorder %s1339_s22, 2  ;;  %s929_s12 = sand.u32 1, %s1311_s15  }
 0x129   : > { %s930_s13 = scalar_lea.sflag [#allocation4], %s929_s12 }
 0x12a   : > { %p1157_p6 = pnand %p1160_p5, %p1433_p9 }
 0x12c   : > { %p1158_p7 = pneg %p1157_p6 }
 0x12e   : > { %1306 = dma.done.wait (%p1158_p7), %s930_s13, 2048  }
 0x12f   : > { %1308 = vsyncadd (%p1158_p7), %s930_s13, 4294965248  ;;  %s17_s22 = sadd.s32 1, %s1339_s22   ;;  %s1679_s15 = smov %s1315_s16 }
 0x130   : > { %p14_p10 = scmp.ge.s32.totalorder %s17_s22, 6   ;;  %s1680_s16 = smov %s1319_s17 }
 0x131   : > { %s1681_s17 = smov %s1441_s8  ;;  %s1682_s18 = smov %s1331_s20 }
 0x132   : > { %s1683_s19 = smov %s1335_s21  ;;  %s1684_s20 = smov %s1687_s25 }
 0x133   : > { %s1685_s21 = smov %s1691_s26  ;;  %16 = sbr.rel (!%p14_p10) target bundleno = 5 (0x5), region = 122 }
 0x138   :  { %935 = vsyncpa [#allocation4], 1 }
 0x139   :  { %937 = vsyncpa [#allocation4 + $0x1], 1 }

// kernel: attention_block_pallas.4
= control target key start
LH: loop header
LB: loop body
LE: loop exit
PB: predicated region body
PF: predicated region fallthrough
CT: control target
= control target key end

     0   :  { %s2217_s12 = smov 0   ;;  %s2219_s13 = smov 0   ;;  %s2807_s0 = inlined_call_operand.vmem [shape: bf16[2,2,256,32], index: 0, kind: input, shape index: {}]   ;;  %s2808_s1 = inlined_call_operand.vmem [shape: bf16[2,2,256,32], index: 1, kind: input, shape index: {}]   ;;  %s2809_s2 = inlined_call_operand.vmem [shape: bf16[2,2,256,32], index: 2, kind: input, shape index: {}]   ;;  %s2810_s3 = inlined_call_operand.vmem [shape: bf16[2,2,256,32], index: 3, kind: output, shape index: {}]  }
   0x1   :  { %s2221_s14 = smov 0   ;;  %s2223_s15 = smov 0  }
   0x2   :  { %s2225_s16 = smov 0   ;;  %s2227_s17 = smov 0  }
   0x3   :  { %s2229_s18 = smov 0   ;;  %s2231_s19 = smov 0  }
   0x4   :  { %s2233_s20 = smov 0  }
   0x5 LB: > { %s28_s21 = sadd.s32 1, %s2175_s16  ;;  %s31_s22 = sadd.s32 1, %s2179_s17  ;;  %s2191_s20 = sphi %s2233_s20, %s13_s20   ;;  %s2187_s19 = sphi %s2231_s19, %s2820_s19   ;;  %s2183_s18 = sphi %s2229_s18, %s2819_s18   ;;  %s2179_s17 = sphi %s2227_s17, %s2818_s17   ;;  %s2175_s16 = sphi %s2225_s16, %s2817_s16   ;;  %s2171_s15 = sphi %s2223_s15, %s2816_s15   ;;  %s2167_s14 = sphi %s2221_s14, %s2815_s14   ;;  %s2163_s13 = sphi %s2219_s13, %s2814_s13   ;;  %s2159_s12 = sphi %s2217_s12, %s2813_s12  }
   0x6   : > { %p29_p0 = scmp.ge.s32.totalorder %s28_s21, 2  ;;  %p1732_p1 = scmp.ge.s32.totalorder %s2191_s20, 1 }
   0x7   : > { %p226_p2 = scmp.lt.s32.totalorder %s2191_s20, 17  ;;  %s35_s23 = sadd.s32 1, %s2183_s18 }
   0x8   : > { %s2822_s21 = smov (%p29_p0, %s28_s21), 0  ;;  %s2824_s22 = smov (!%p29_p0, %s31_s22), %s2179_s17 }
   0x9   : > { %p33_p3 = scmp.ge.s32.totalorder %s2824_s22, 2  ;;  %p227_p4 = pnand %p1732_p1, %p226_p2 }
   0xa   : > { %s39_s24 = sadd.s32 1, %s2187_s19  ;;  %s1733_s25 = sshll.u32 (!%p227_p4), %s2163_s13, 4 }
   0xb   : > { %s2826_s22 = smov (%p33_p3, %s2824_s22), 0  ;;  %s2828_s23 = smov (!%p33_p3, %s35_s23), %s2183_s18 }
   0xc   : > { %p37_p5 = scmp.ge.s32.totalorder %s2828_s23, 2  ;;  %p293_p7 = scmp.lt.s32.totalorder (!%p227_p4), %s2171_s15, 1 }
   0xd   : > { %p295_p8 = scmp.lt.s32.totalorder (!%p227_p4), %s2167_s14, 1  ;;  %p297_p9 = scmp.lt.s32.totalorder (!%p227_p4), %s1733_s25, 31 }
   0xe   : > { %s2830_s23 = smov (%p37_p5, %s2828_s23), 0  ;;  %s2832_s24 = smov (!%p37_p5, %s39_s24), %s2187_s19 }
   0xf   : > { %p41_p6 = scmp.ge.s32.totalorder %s2832_s24, 2  ;;  %230 = sbr.rel (%p227_p4) target bundleno = 1015 (0x3f7), region = 32 }
  0x10   : > { %s1737_s29 = sshll.u32 (!%p227_p4), %s2159_s12, 4  ;;  %p1749_p11 = scmp.ne.s32.totalorder (!%p227_p4), %s2159_s12, 0 }
  0x11   : > { %s2834_s24 = smov (%p41_p6, %s2832_s24), 0  ;;  %p311_p10 = scmp.lt.s32.totalorder (!%p227_p4), %s1737_s29, 31 }
  0x12   : > { %2811 = sst [smem:[#allocation5_spill]] %s2834_s24 }
  0x14   : > { %s2836_s15 = smov (!%p293_p7, %s2171_s15), 1  ;;  %s2838_s14 = smov (!%p295_p8, %s2167_s14), 1 }
  0x15   : > { %s2840_s25 = smov (!%p297_p9, %s1733_s25), 31  ;;  %s1734_s26 = sshll.u32 %s2838_s14, 5 }
  0x16   : > { %s1735_s27 = sshll.u32 %s2836_s15, 6  ;;  %s300_s28 = sadd.s32 %s1734_s26, %s2840_s25 }
  0x17   : > { %s302_s30 = sadd.s32 %s1735_s27, %s300_s28  ;;  %s2842_s29 = smov (!%p311_p10, %s1737_s29), 31 }
  0x18   : > { %s1736_s4 = sshll.u32 %s302_s30, 2  ;;  %s314_s11 = sadd.s32 %s1734_s26, %s2842_s29 }
  0x19   : > { %s2284_s7 = scalar_lea.vmem %s2807_s0, %s1736_s4  ;;  %s2289_s10 = scalar_lea.vmem %s2810_s3, %s1736_s4 }
  0x1a   : > { %s316_s13 = sadd.s32 %s1735_s27, %s314_s11  ;;  %352 = sbr.rel (%p1749_p11) target bundleno = 56 (0x38), region = 36 }
  0x1b   : > { %s1740_s14 = sshll.u32 %s316_s13, 2 }
  0x1c   : > { %s2294_s28 = scalar_lea.vmem %s2808_s1, %s1740_s14  ;;  %s2299_s5 = scalar_lea.vmem %s2809_s2, %s1740_s14 }
  0x1f   : > { %vm353_vm0 = vcmask 7168   ;;  %vm386_vm1 = vcmask 261120   ;;  %v2193_v0 = vmov -inf   ;;  %v2194_v1 = vmov 0.0  }
  0x20   : > { %354 = vst.msk [vmem:[#allocation2] sm:$0xff] %vm353_vm0, %v2193_v0  ;;  %355 = vst.msk [vmem:[#allocation2 + $0x8] sm:$0xff] %vm353_vm0, %v2193_v0 }
  0x21   : > { %356 = vst.msk [vmem:[#allocation2 + $0x10] sm:$0xff] %vm353_vm0, %v2193_v0  ;;  %357 = vst.msk [vmem:[#allocation2 + $0x18] sm:$0xff] %vm353_vm0, %v2193_v0 }
  0x22   : > { %358 = vst.msk [vmem:[#allocation2 + $0x20] sm:$0xff] %vm353_vm0, %v2193_v0  ;;  %359 = vst.msk [vmem:[#allocation2 + $0x28] sm:$0xff] %vm353_vm0, %v2193_v0 }
  0x23   : > { %360 = vst.msk [vmem:[#allocation2 + $0x30] sm:$0xff] %vm353_vm0, %v2193_v0  ;;  %361 = vst.msk [vmem:[#allocation2 + $0x38] sm:$0xff] %vm353_vm0, %v2193_v0 }
  0x24   : > { %362 = vst.msk [vmem:[#allocation2 + $0x40] sm:$0xff] %vm353_vm0, %v2193_v0  ;;  %363 = vst.msk [vmem:[#allocation2 + $0x48] sm:$0xff] %vm353_vm0, %v2193_v0 }
  0x25   : > { %364 = vst.msk [vmem:[#allocation2 + $0x50] sm:$0xff] %vm353_vm0, %v2193_v0  ;;  %365 = vst.msk [vmem:[#allocation2 + $0x58] sm:$0xff] %vm353_vm0, %v2193_v0 }
  0x26   : > { %366 = vst.msk [vmem:[#allocation2 + $0x60] sm:$0xff] %vm353_vm0, %v2193_v0  ;;  %367 = vst.msk [vmem:[#allocation2 + $0x68] sm:$0xff] %vm353_vm0, %v2193_v0 }
  0x27   : > { %368 = vst.msk [vmem:[#allocation2 + $0x70] sm:$0xff] %vm353_vm0, %v2193_v0  ;;  %369 = vst.msk [vmem:[#allocation2 + $0x78] sm:$0xff] %vm353_vm0, %v2193_v0 }
  0x28   : > { %370 = vst.msk [vmem:[#allocation3] sm:$0xff] %vm353_vm0, %v2194_v1  ;;  %371 = vst.msk [vmem:[#allocation3 + $0x8] sm:$0xff] %vm353_vm0, %v2194_v1 }
  0x29   : > { %372 = vst.msk [vmem:[#allocation3 + $0x10] sm:$0xff] %vm353_vm0, %v2194_v1  ;;  %373 = vst.msk [vmem:[#allocation3 + $0x18] sm:$0xff] %vm353_vm0, %v2194_v1 }
  0x2a   : > { %374 = vst.msk [vmem:[#allocation3 + $0x20] sm:$0xff] %vm353_vm0, %v2194_v1  ;;  %375 = vst.msk [vmem:[#allocation3 + $0x28] sm:$0xff] %vm353_vm0, %v2194_v1 }
  0x2b   : > { %376 = vst.msk [vmem:[#allocation3 + $0x30] sm:$0xff] %vm353_vm0, %v2194_v1  ;;  %377 = vst.msk [vmem:[#allocation3 + $0x38] sm:$0xff] %vm353_vm0, %v2194_v1 }
  0x2c   : > { %378 = vst.msk [vmem:[#allocation3 + $0x40] sm:$0xff] %vm353_vm0, %v2194_v1  ;;  %379 = vst.msk [vmem:[#allocation3 + $0x48] sm:$0xff] %vm353_vm0, %v2194_v1 }
  0x2d   : > { %380 = vst.msk [vmem:[#allocation3 + $0x50] sm:$0xff] %vm353_vm0, %v2194_v1  ;;  %381 = vst.msk [vmem:[#allocation3 + $0x58] sm:$0xff] %vm353_vm0, %v2194_v1 }
  0x2e   : > { %382 = vst.msk [vmem:[#allocation3 + $0x60] sm:$0xff] %vm353_vm0, %v2194_v1  ;;  %383 = vst.msk [vmem:[#allocation3 + $0x68] sm:$0xff] %vm353_vm0, %v2194_v1 }
  0x2f   : > { %384 = vst.msk [vmem:[#allocation3 + $0x70] sm:$0xff] %vm353_vm0, %v2194_v1  ;;  %385 = vst.msk [vmem:[#allocation3 + $0x78] sm:$0xff] %vm353_vm0, %v2194_v1 }
  0x30   : > { %387 = vst.msk [vmem:[#allocation4] sm:$0xff] %vm386_vm1, %v2194_v1  ;;  %388 = vst.msk [vmem:[#allocation4 + $0x8] sm:$0xff] %vm386_vm1, %v2194_v1 }
  0x31   : > { %389 = vst.msk [vmem:[#allocation4 + $0x10] sm:$0xff] %vm386_vm1, %v2194_v1  ;;  %390 = vst.msk [vmem:[#allocation4 + $0x18] sm:$0xff] %vm386_vm1, %v2194_v1 }
  0x32   : > { %391 = vst.msk [vmem:[#allocation4 + $0x20] sm:$0xff] %vm386_vm1, %v2194_v1  ;;  %392 = vst.msk [vmem:[#allocation4 + $0x28] sm:$0xff] %vm386_vm1, %v2194_v1 }
  0x33   : > { %393 = vst.msk [vmem:[#allocation4 + $0x30] sm:$0xff] %vm386_vm1, %v2194_v1  ;;  %394 = vst.msk [vmem:[#allocation4 + $0x38] sm:$0xff] %vm386_vm1, %v2194_v1 }
  0x34   : > { %395 = vst.msk [vmem:[#allocation4 + $0x40] sm:$0xff] %vm386_vm1, %v2194_v1  ;;  %396 = vst.msk [vmem:[#allocation4 + $0x48] sm:$0xff] %vm386_vm1, %v2194_v1 }
  0x35   : > { %397 = vst.msk [vmem:[#allocation4 + $0x50] sm:$0xff] %vm386_vm1, %v2194_v1  ;;  %398 = vst.msk [vmem:[#allocation4 + $0x58] sm:$0xff] %vm386_vm1, %v2194_v1 }
  0x36   : > { %399 = vst.msk [vmem:[#allocation4 + $0x60] sm:$0xff] %vm386_vm1, %v2194_v1  ;;  %400 = vst.msk [vmem:[#allocation4 + $0x68] sm:$0xff] %vm386_vm1, %v2194_v1 }
  0x37   : > { %401 = vst.msk [vmem:[#allocation4 + $0x70] sm:$0xff] %vm386_vm1, %v2194_v1  ;;  %402 = vst.msk [vmem:[#allocation4 + $0x78] sm:$0xff] %vm386_vm1, %v2194_v1 }
  0x38 PF: > { %v1999_v2 = vld [vmem:[%s2294_s28 + $0x38] sm:$0xff]   ;;  %vm531_vm2 = vcmask 261120   ;;  %v2000_v3 = vld [vmem:[%s2294_s28 + $0x30] sm:$0xff]   ;;  %v2001_v5 = vld [vmem:[%s2294_s28 + $0x28] sm:$0xff]   ;;  %v2195_v33 = vmov 0   ;;  %vm997_vm3 = vcmask 7168  }
  0x39   : > { %1913 = vmatprep.subr.msk.bf16.mxu0 %vm531_vm2, %v1999_v2  ;;  %v578_v4 = vsel %vm531_vm2, %v1999_v2, 0  ;;  %v575_v6 = vsel %vm531_vm2, %v2000_v3, 0  ;;  %v2007_v7 = vld [vmem:[%s2284_s7] sm:$0xff]   ;;  %v572_v8 = vsel %vm531_vm2, %v2001_v5, 0  ;;  %v2003_v11 = vld [vmem:[%s2294_s28 + $0x18] sm:$0xff]   ;;  %v2004_v13 = vld [vmem:[%s2294_s28 + $0x10] sm:$0xff]   ;;  %1998 = vset.pattern.permute.xlu1 %v2195_v33 }
  0x3a   : > { %1850 = vmatpush3.bf16.xpose.msra.mxu0 %v578_v4  ;;  %1865 = vmatprep.mubr.msk.bf16.mxu0 %vm531_vm2, %v2007_v7  ;;  %v2002_v9 = vld [vmem:[%s2294_s28 + $0x20] sm:$0xff]   ;;  %v566_v12 = vsel %vm531_vm2, %v2003_v11, 0  ;;  %v563_v14 = vsel %vm531_vm2, %v2004_v13, 0  ;;  %v2005_v15 = vld [vmem:[%s2294_s28 + $0x8] sm:$0xff]   ;;  %v2009_v20 = vld [vmem:[%s2284_s7 + $0x10] sm:$0xff]   ;;  %p1782_p12 = scmp.ne.s32.totalorder %s2159_s12, 1 }
  0x3b   : > { %1914 = vmatprep.subr.msk.bf16.mxu0 %vm531_vm2, %v2000_v3  ;;  %v569_v10 = vsel %vm531_vm2, %v2002_v9, 0  ;;  %v560_v16 = vsel %vm531_vm2, %v2005_v15, 0  ;;  %v2006_v17 = vld [vmem:[%s2294_s28] sm:$0xff]   ;;  %v2008_v19 = vld [vmem:[%s2284_s7 + $0x8] sm:$0xff]   ;;  %v2010_v21 = vld [vmem:[%s2284_s7 + $0x18] sm:$0xff]   ;;  %1997 = vset.pattern.permute.xlu0 %v2195_v33 }
  0x3c   : > { %v557_v18 = vsel %vm531_vm2, %v2006_v17, 0  ;;  %v2011_v22 = vld [vmem:[%s2284_s7 + $0x20] sm:$0xff]   ;;  %v2012_v23 = vld [vmem:[%s2284_s7 + $0x28] sm:$0xff]   ;;  %v2013_v24 = vld [vmem:[%s2284_s7 + $0x30] sm:$0xff]  }
  0x3d   : > { %v2014_v25 = vld [vmem:[%s2284_s7 + $0x38] sm:$0xff]   ;;  %v2439_v44 = vld [vmem:[#allocation2 + $0x10] sm:$0xff]  ;;  %v2442_v47 = vld [vmem:[#allocation2] sm:$0xff] }
  0x3e   : > { %v2015_v43 = vld [vmem:[%s2299_s5 + $0x38] sm:$0xff]   ;;  %v2016_v45 = vld [vmem:[%s2299_s5 + $0x30] sm:$0xff]   ;;  %v2017_v51 = vld [vmem:[%s2299_s5 + $0x28] sm:$0xff]  }
  0x3f   : > { %1881 = vmatprep.subr.bf16.mxu1 %v2015_v43  ;;  %v2447_v50 = vld [vmem:[#allocation2 + $0x18] sm:$0xff]  ;;  %v2456_v54 = vld [vmem:[#allocation2 + $0x8] sm:$0xff]  ;;  %v2018_v57 = vld [vmem:[%s2299_s5 + $0x20] sm:$0xff]  }
  0x40   : > { %1882 = vmatpush3.bf16.msra.mxu1 %v2015_v43  ;;  %v2471_v59 = vld [vmem:[#allocation2 + $0x20] sm:$0xff]  ;;  %v2475_v61 = vld [vmem:[#allocation2 + $0x38] sm:$0xff]  ;;  %v2482_v1 = vld [vmem:[#allocation2 + $0x30] sm:$0xff] }
  0x41   : > { %1883 = vmatprep.subr.bf16.mxu1 %v2016_v45  ;;  %v2019_v62 = vld [vmem:[%s2299_s5 + $0x18] sm:$0xff]   ;;  %v2489_v4 = vld [vmem:[#allocation2 + $0x28] sm:$0xff] }
  0x42   : > { %1852 = vmatpush3.bf16.xpose.msra.mxu0 %v575_v6 }
  0x43   : > { %1915 = vmatprep.subr.msk.bf16.mxu0 %vm531_vm2, %v2001_v5  ;;  %v2020_v5 = vld [vmem:[%s2299_s5 + $0x10] sm:$0xff]  }
  0x44   : > { %1884 = vmatpush3.bf16.msra.mxu1 %v2016_v45  ;;  %v2536_v45 = vld [vmem:[#allocation2 + $0x78] sm:$0xff] }
  0x45   : > { %1885 = vmatprep.subr.bf16.mxu1 %v2017_v51 }
  0x48   : > { %1886 = vmatpush3.bf16.msra.mxu1 %v2017_v51  ;;  %v2544_v51 = vld [vmem:[#allocation2 + $0x70] sm:$0xff] }
  0x49   : > { %1887 = vmatprep.subr.bf16.mxu1 %v2018_v57 }
  0x4a   : > { %1854 = vmatpush3.bf16.xpose.msra.mxu0 %v572_v8  ;;  %v2497_v8 = vld [vmem:[#allocation2 + $0x40] sm:$0xff] }
  0x4b   : > { %1916 = vmatprep.subr.msk.bf16.mxu0 %vm531_vm2, %v2002_v9 }
  0x4c   : > { %1888 = vmatpush3.bf16.msra.mxu1 %v2018_v57 }
  0x4d   : > { %1889 = vmatprep.subr.bf16.mxu1 %v2019_v62 }
  0x50   : > { %1890 = vmatpush3.bf16.msra.mxu1 %v2019_v62 }
  0x51   : > { %1891 = vmatprep.subr.bf16.mxu1 %v2020_v5 }
  0x52   : > { %1856 = vmatpush3.bf16.xpose.msra.mxu0 %v569_v10 }
  0x53   : > { %1917 = vmatprep.subr.msk.bf16.mxu0 %vm531_vm2, %v2003_v11  ;;  %v2505_v11 = vld [vmem:[#allocation2 + $0x58] sm:$0xff] }
  0x54   : > { %1892 = vmatpush3.bf16.msra.mxu1 %v2020_v5 }
  0x5a   : > { %1858 = vmatpush3.bf16.xpose.msra.mxu0 %v566_v12  ;;  %v2021_v12 = vld [vmem:[%s2299_s5 + $0x8] sm:$0xff]  }
  0x5b   : > { %1918 = vmatprep.subr.msk.bf16.mxu0 %vm531_vm2, %v2004_v13  ;;  %1893 = vmatprep.subr.bf16.mxu1 %v2021_v12 }
  0x5c   : > { %1894 = vmatpush3.bf16.msra.mxu1 %v2021_v12 }
  0x62   : > { %1860 = vmatpush3.bf16.xpose.msra.mxu0 %v563_v14 }
  0x63   : > { %1919 = vmatprep.subr.msk.bf16.mxu0 %vm531_vm2, %v2005_v15  ;;  %v2513_v15 = vld [vmem:[#allocation2 + $0x50] sm:$0xff] }
  0x6a   : > { %1862 = vmatpush3.bf16.xpose.msra.mxu0 %v560_v16 }
  0x6b   : > { %1920 = vmatprep.subr.msk.bf16.mxu0 %vm531_vm2, %v2006_v17 }
  0x72   : > { %1864 = vmatpush3.bf16.xpose.msra.mxu0 %v557_v18 }
  0x79   : > { %1866 = vmatmul.mubr.msk.bf16.vlgmr.msra.gmra.mxu0 %vm531_vm2, %v2008_v19  ;;  %v2521_v19 = vld [vmem:[#allocation2 + $0x48] sm:$0xff] }
  0x7a   : > { %1869 = vmatprep.mubr.msk.bf16.mxu0 %vm531_vm2, %v2009_v20  ;;  %v2022_v20 = vld [vmem:[%s2299_s5] sm:$0xff]  }
  0x7b   : > { %1895 = vmatprep.subr.bf16.mxu1 %v2022_v20 }
  0x7c   : > { %1896 = vmatpush3.bf16.msra.mxu1 %v2022_v20 }
  0x81   : > { %1870 = vmatmul.mubr.msk.bf16.gmra.mxu0 %vm531_vm2, %v2010_v21 }
  0x82   : > { %1873 = vmatprep.mubr.msk.bf16.mxu0 %vm531_vm2, %v2011_v22 }
  0x89   : > { %1874 = vmatmul.mubr.msk.bf16.gmra.mxu0 %vm531_vm2, %v2012_v23 }
  0x8a   : > { %1877 = vmatprep.mubr.msk.bf16.mxu0 %vm531_vm2, %v2013_v24  ;;  %v2530_v24 = vld [vmem:[#allocation2 + $0x60] sm:$0xff] }
  0x91   : > { %1878 = vmatmul.mubr.msk.bf16.gmra.mxu0 %vm531_vm2, %v2014_v25 }
 0x139   : > { %v2390_v26 = vpop.f32.mrf.mxu0 }
 0x13a   : > { %697 = vmax.xlane.f32.xlu1 %v2390_v26 }
 0x13b   : > { %v2393_v27 = vpop.f32.mrf.mxu0 }
 0x13c   : > { %693 = vmax.xlane.f32.xlu0 %v2393_v27 }
 0x13d   : > { %v2396_v28 = vpop.f32.mrf.mxu0 }
 0x13e   : > { %699 = vmax.xlane.f32.xlu1 %v2396_v28 }
 0x13f   : > { %v2399_v29 = vpop.f32.mrf.mxu0 }
 0x140   : > { %695 = vmax.xlane.f32.xlu0 %v2399_v29 }
 0x141   : > { %v2402_v30 = vpop.f32.mrf.mxu0 }
 0x143   : > { %v2404_v31 = vpop.f32.mrf.mxu0 }
 0x144   : > { %701 = vmax.xlane.f32.xlu0 %v2404_v31 }
 0x145   : > { %v2407_v32 = vpop.f32.mrf.mxu0 }
 0x146   : > { %707 = vmax.xlane.f32.xlu1 %v2407_v32 }
 0x147   : > { %v2410_v34 = vpop.f32.mrf.mxu0 }
 0x148   : > { %705 = vmax.xlane.f32.xlu0 %v2402_v30 }
 0x149   : > { %v2413_v35 = vpop.f32.mrf.mxu0 }
 0x14a   : > { %703 = vmax.xlane.f32.xlu1 %v2410_v34 }
 0x14b   : > { %v2416_v36 = vpop.f32.mrf.mxu0 }
 0x14c   : > { %709 = vmax.xlane.f32.xlu0 %v2416_v36 }
 0x14d   : > { %v2419_v37 = vpop.f32.mrf.mxu0 }
 0x14e   : > { %715 = vmax.xlane.f32.xlu1 %v2419_v37 }
 0x14f   : > { %v2422_v38 = vpop.f32.mrf.mxu0 }
 0x150   : > { %713 = vmax.xlane.f32.xlu0 %v2413_v35 }
 0x151   : > { %v2425_v39 = vpop.f32.mrf.mxu0 }
 0x152   : > { %711 = vmax.xlane.f32.xlu1 %v2422_v38 }
 0x153   : > { %v2428_v40 = vpop.f32.mrf.mxu0 }
 0x154   : > { %717 = vmax.xlane.f32.xlu0 %v2428_v40 }
 0x155   : > { %v2431_v41 = vpop.f32.mrf.mxu0 }
 0x156   : > { %723 = vmax.xlane.f32.xlu1 %v2431_v41 }
 0x157   : > { %v2435_v42 = vpop.f32.mrf.mxu0 }
 0x158   : > { %721 = vmax.xlane.f32.xlu0 %v2425_v39 }
 0x15a   : > { %719 = vmax.xlane.f32.xlu1 %v2435_v42 }
 0x1c3   : > { %v698_v46 = vpop.xlane.xlu1 %697 }
 0x1c4   : > { %v2445_v48 = vmax.f32 %v2439_v44, %v698_v46 }
 0x1c5   : > { %v694_v49 = vpop.xlane.xlu0 %693 }
 0x1c6   : > { %1313 = vst.msk [vmem:[#allocation2 + $0x10] sm:$0xff] %vm997_vm3, %v2445_v48  ;;  %v2453_v52 = vmax.f32 %v2442_v47, %v694_v49  ;;  %801 = vperm.xlu1 %1998, %v2445_v48  }
 0x1c7   : > { %v700_v53 = vpop.xlane.xlu1 %699 }
 0x1c8   : > { %1311 = vst.msk [vmem:[#allocation2] sm:$0xff] %vm997_vm3, %v2453_v52  ;;  %v2461_v55 = vmax.f32 %v2447_v50, %v700_v53  ;;  %791 = vperm.xlu0 %1997, %v2453_v52   ;;  %v741_v16 = vsub.f32 %v2442_v47, %v2453_v52 }
 0x1c9   : > { %v696_v56 = vpop.xlane.xlu0 %695 }
 0x1ca   : > { %1314 = vst.msk [vmem:[#allocation2 + $0x18] sm:$0xff] %vm997_vm3, %v2461_v55  ;;  %v2468_v58 = vmax.f32 %v2456_v54, %v696_v56  ;;  %806 = vperm.xlu1 %1998, %v2461_v55   ;;  %v744_v22 = vsub.f32 %v2447_v50, %v2461_v55  ;;  %v757_v25 = vmul.f32 1.442695, %v741_v16  ;;  %v690_v55 = vld [vmem:[#allocation2 + $0x68] sm:$0xff]  ;;  %v743_v56 = vsub.f32 %v2439_v44, %v2445_v48 }
 0x1cc   : > { %1312 = vst.msk [vmem:[#allocation2 + $0x8] sm:$0xff] %vm997_vm3, %v2468_v58  ;;  %v742_v46 = vsub.f32 %v2456_v54, %v2468_v58  ;;  %v763_v49 = vmul.f32 1.442695, %v744_v22  ;;  %2023 = vpow2.f32 %v757_v25 }
 0x1cd   : > { %v702_v60 = vpop.xlane.xlu0 %701 }
 0x1ce   : > { %v2479_v63 = vmax.f32 %v2471_v59, %v702_v60  ;;  %796 = vperm.xlu1 %1998, %v2468_v58   ;;  %v759_v57 = vmul.f32 1.442695, %v742_v46  ;;  %2025 = vpow2.f32 %v763_v49 }
 0x1cf   : > { %v708_v0 = vpop.xlane.xlu1 %707 }
 0x1d0   : > { %1315 = vst.msk [vmem:[#allocation2 + $0x20] sm:$0xff] %vm997_vm3, %v2479_v63  ;;  %v2487_v2 = vmax.f32 %v2475_v61, %v708_v0  ;;  %2027 = vpow2.f32 %v759_v57 }
 0x1d1   : > { %v706_v3 = vpop.xlane.xlu0 %705 }
 0x1d2   : > { %1318 = vst.msk [vmem:[#allocation2 + $0x38] sm:$0xff] %vm997_vm3, %v2487_v2  ;;  %v2495_v6 = vmax.f32 %v2482_v1, %v706_v3  ;;  %v748_v52 = vsub.f32 %v2475_v61, %v2487_v2  ;;  %v745_v3 = vsub.f32 %v2471_v59, %v2479_v63 }
 0x1d3   : > { %v704_v7 = vpop.xlane.xlu1 %703 }
 0x1d4   : > { %1317 = vst.msk [vmem:[#allocation2 + $0x30] sm:$0xff] %vm997_vm3, %v2495_v6  ;;  %v2502_v9 = vmax.f32 %v2489_v4, %v704_v7  ;;  %821 = vperm.xlu1 %1998, %v2495_v6   ;;  %v771_v62 = vmul.f32 1.442695, %v748_v52  ;;  %v765_v7 = vmul.f32 1.442695, %v745_v3 }
 0x1d5   : > { %v710_v10 = vpop.xlane.xlu0 %709 }
 0x1d6   : > { %1316 = vst.msk [vmem:[#allocation2 + $0x28] sm:$0xff] %vm997_vm3, %v2502_v9  ;;  %v2511_v13 = vmax.f32 %v2497_v8, %v710_v10  ;;  %v746_v0 = vsub.f32 %v2489_v4, %v2502_v9  ;;  %2029 = vpow2.f32 %v771_v62 }
 0x1d7   : > { %v716_v14 = vpop.xlane.xlu1 %715 }
 0x1d8   : > { %1319 = vst.msk [vmem:[#allocation2 + $0x40] sm:$0xff] %vm997_vm3, %v2511_v13  ;;  %v736_v17 = vmax.f32 %v2505_v11, %v716_v14  ;;  %811 = vperm.xlu1 %1998, %v2479_v63   ;;  %v767_v5 = vmul.f32 1.442695, %v746_v0  ;;  %v749_v16 = vsub.f32 %v2497_v8, %v2511_v13 }
 0x1d9   : > { %v714_v18 = vpop.xlane.xlu0 %713  ;;  %v2580_v63 = vpop.eup %2023 }
 0x1da   : > { %1322 = vst.msk [vmem:[#allocation2 + $0x58] sm:$0xff] %vm997_vm3, %v736_v17  ;;  %v2526_v21 = vmax.f32 %v2513_v15, %v714_v18  ;;  %v752_v4 = vsub.f32 %v2505_v11, %v736_v17  ;;  %v773_v20 = vmul.f32 1.442695, %v749_v16 }
 0x1db   : > { %v712_v23 = vpop.xlane.xlu1 %711  ;;  %v2585_v14 = vpop.eup %2025 }
 0x1dc   : > { %1321 = vst.msk [vmem:[#allocation2 + $0x50] sm:$0xff] %vm997_vm3, %v2526_v21  ;;  %v734_v33 = vmax.f32 %v2521_v19, %v712_v23  ;;  %816 = vperm.xlu1 %1998, %v2502_v9   ;;  %v747_v9 = vsub.f32 %v2482_v1, %v2495_v6  ;;  %v779_v10 = vmul.f32 1.442695, %v752_v4  ;;  %v751_v11 = vsub.f32 %v2513_v15, %v2526_v21 }
 0x1dd   : > { %v718_v43 = vpop.xlane.xlu0 %717  ;;  %v2591_v18 = vpop.eup %2027 }
 0x1de   : > { %1320 = vst.msk [vmem:[#allocation2 + $0x48] sm:$0xff] %vm997_vm3, %v734_v33  ;;  %v2542_v47 = vmax.f32 %v2530_v24, %v718_v43  ;;  %836 = vperm.xlu0 %1997, %v734_v33   ;;  %v750_v59 = vsub.f32 %v2521_v19, %v734_v33  ;;  %v769_v12 = vmul.f32 1.442695, %v747_v9 }
 0x1df   : > { %v724_v50 = vpop.xlane.xlu1 %723 }
 0x1e0   : > { %1323 = vst.msk [vmem:[#allocation2 + $0x60] sm:$0xff] %vm997_vm3, %v2542_v47  ;;  %v2551_v53 = vmax.f32 %v2536_v45, %v724_v50  ;;  %826 = vperm.xlu1 %1998, %v2487_v2   ;;  %v761_v2 = vmul.f32 1.442695, %v743_v56  ;;  %v775_v1 = vmul.f32 1.442695, %v750_v59 }
 0x1e1   : > { %v722_v54 = vpop.xlane.xlu0 %721 }
 0x1e2   : > { %v756_v58 = vsub.f32 %v2536_v45, %v2551_v53  ;;  %1326 = vst.msk [vmem:[#allocation2 + $0x78] sm:$0xff] %vm997_vm3, %v2551_v53  ;;  %v2561_v60 = vmax.f32 %v2544_v51, %v722_v54  ;;  %846 = vperm.xlu0 %1997, %v736_v17   ;;  %2031 = vpow2.f32 %v761_v2  ;;  %v777_v17 = vmul.f32 1.442695, %v751_v11 }
 0x1e3   : > { %v720_v61 = vpop.xlane.xlu1 %719  ;;  %2033 = vpow2.f32 %v767_v5  ;;  %v2594_v19 = vpop.eup %2029 }
 0x1e4   : > { %v755_v44 = vsub.f32 %v2544_v51, %v2561_v60  ;;  %1325 = vst.msk [vmem:[#allocation2 + $0x70] sm:$0xff] %vm997_vm3, %v2561_v60  ;;  %v738_v48 = vmax.f32 %v690_v55, %v720_v61  ;;  %831 = vperm.xlu1 %1998, %v2511_v13   ;;  %2035 = vpow2.f32 %v765_v7 }
 0x1e5   : > { %2037 = vpow2.f32 %v779_v10 }
 0x1e6   : > { %1324 = vst.msk [vmem:[#allocation2 + $0x68] sm:$0xff] %vm997_vm3, %v738_v48  ;;  %856 = vperm.xlu0 %1997, %v738_v48   ;;  %v754_v6 = vsub.f32 %v690_v55, %v738_v48  ;;  %2039 = vpow2.f32 %v769_v12 }
 0x1e7   : > { %2041 = vpow2.f32 %v775_v1 }
 0x1e8   : > { %841 = vperm.xlu1 %1998, %v2526_v21   ;;  %v783_v15 = vmul.f32 1.442695, %v754_v6  ;;  %2043 = vpow2.f32 %v777_v17  ;;  %v753_v21 = vsub.f32 %v2530_v24, %v2542_v47 }
 0x1ea   : > { %866 = vperm.xlu0 %1997, %v2551_v53   ;;  %2045 = vpow2.f32 %v783_v15  ;;  %v781_v13 = vmul.f32 1.442695, %v753_v21 }
 0x1eb   : > { %2047 = vpow2.f32 %v773_v20 }
 0x1ec   : > { %851 = vperm.xlu1 %1998, %v2542_v47   ;;  %2049 = vpow2.f32 %v781_v13 }
 0x1ee   : > { %1032 = vperm.xlu0 %1997, %v2580_v63  }
 0x1ef   : > { %v2599_v22 = vpop.eup %2031 }
 0x1f0   : > { %861 = vperm.xlu1 %1998, %v2561_v60   ;;  %v2602_v8 = vpop.eup %2033 }
 0x1f1   : > { %v2605_v23 = vpop.eup %2035 }
 0x1f2   : > { %1047 = vperm.xlu0 %1997, %v2585_v14   ;;  %v2608_v25 = vpop.eup %2037 }
 0x1f3   : > { %v2611_v24 = vpop.eup %2039 }
 0x1f4   : > { %1037 = vperm.xlu1 %1998, %v2591_v18   ;;  %v2614_v33 = vpop.eup %2041 }
 0x1f5   : > { %v2617_v43 = vpop.eup %2043 }
 0x1f6   : > { %1067 = vperm.xlu0 %1997, %v2594_v19  }
 0x1f7   : > { %v2620_v46 = vpop.eup %2045 }
 0x1f8   : > { %1042 = vperm.xlu1 %1998, %v2599_v22   ;;  %v2623_v47 = vpop.eup %2047 }
 0x1f9   : > { %v2626_v49 = vpop.eup %2049 }
 0x1fa   : > { %1057 = vperm.xlu0 %1997, %v2602_v8  }
 0x1fc   : > { %1052 = vperm.xlu1 %1998, %v2605_v23  }
 0x1fe   : > { %1087 = vperm.xlu0 %1997, %v2608_v25  }
 0x200   : > { %1062 = vperm.xlu1 %1998, %v2611_v24  }
 0x202   : > { %1077 = vperm.xlu0 %1997, %v2614_v33  }
 0x204   : > { %1082 = vperm.xlu1 %1998, %v2617_v43  }
 0x206   : > { %1097 = vperm.xlu0 %1997, %v2620_v46  }
 0x208   : > { %1072 = vperm.xlu1 %1998, %v2623_v47  }
 0x20c   : > { %1092 = vperm.xlu1 %1998, %v2626_v49  }
 0x241   : > { %v802_v50 = vpop.permute.xlu1 %801 }
 0x242   : > { %v871_v52 = vsub.f32 %v2390_v26, %v802_v50 }
 0x243   : > { %v792_v54 = vpop.permute.xlu0 %791 }
 0x244   : > { %v889_v55 = vmul.f32 1.442695, %v871_v52  ;;  %v869_v56 = vsub.f32 %v2393_v27, %v792_v54 }
 0x245   : > { %v807_v57 = vpop.permute.xlu1 %806 }
 0x246   : > { %2051 = vpow2.f32 %v889_v55  ;;  %v885_v61 = vmul.f32 1.442695, %v869_v56  ;;  %v872_v62 = vsub.f32 %v2396_v28, %v807_v57 }
 0x248   : > { %2053 = vpow2.f32 %v885_v61  ;;  %v891_v0 = vmul.f32 1.442695, %v872_v62 }
 0x249   : > { %v797_v48 = vpop.permute.xlu1 %796 }
 0x24a   : > { %v870_v2 = vsub.f32 %v2399_v29, %v797_v48  ;;  %2055 = vpow2.f32 %v891_v0 }
 0x24c   : > { %v887_v3 = vmul.f32 1.442695, %v870_v2 }
 0x24e   : > { %2057 = vpow2.f32 %v887_v3 }
 0x24f   : > { %v822_v5 = vpop.permute.xlu1 %821 }
 0x250   : > { %v875_v26 = vsub.f32 %v2402_v30, %v822_v5 }
 0x252   : > { %v897_v4 = vmul.f32 1.442695, %v875_v26 }
 0x253   : > { %v2052_v7 = vpop.eup %2051  ;;  %v812_v9 = vpop.permute.xlu1 %811 }
 0x254   : > { %2059 = vpow2.f32 %v897_v4  ;;  %v873_v27 = vsub.f32 %v2404_v31, %v812_v9  ;;  %953 = vadd.xlane.f32.xlu0 %v2052_v7 }
 0x255   : > { %v2054_v10 = vpop.eup %2053 }
 0x256   : > { %v893_v28 = vmul.f32 1.442695, %v873_v27  ;;  %949 = vadd.xlane.f32.xlu1 %v2054_v10 }
 0x257   : > { %v817_v59 = vpop.permute.xlu1 %816  ;;  %v2056_v12 = vpop.eup %2055 }
 0x258   : > { %2061 = vpow2.f32 %v893_v28  ;;  %v874_v29 = vsub.f32 %v2410_v34, %v817_v59  ;;  %v1127_v20 = vpack.c.bf16 %v2056_v12, %v2052_v7 }
 0x259   : > { %v837_v11 = vpop.permute.xlu0 %836 }
 0x25a   : > { %v895_v1 = vmul.f32 1.442695, %v874_v29  ;;  %955 = vadd.xlane.f32.xlu1 %v2056_v12  ;;  %v878_v30 = vsub.f32 %v2422_v38, %v837_v11 }
 0x25b   : > { %v2058_v6 = vpop.eup %2057  ;;  %v827_v16 = vpop.permute.xlu1 %826 }
 0x25c   : > { %2063 = vpow2.f32 %v895_v1  ;;  %v876_v17 = vsub.f32 %v2407_v32, %v827_v16  ;;  %951 = vadd.xlane.f32.xlu0 %v2058_v6  ;;  %v1126_v31 = vpack.c.bf16 %v2058_v6, %v2054_v10  ;;  %v903_v13 = vmul.f32 1.442695, %v878_v30 }
 0x25d   : > { %v847_v15 = vpop.permute.xlu0 %846 }
 0x25e   : > { %v899_v21 = vmul.f32 1.442695, %v876_v17  ;;  %1897 = vmatprep.mubr.bf16.mxu1 %v1126_v31  ;;  %v880_v34 = vsub.f32 %v2419_v37, %v847_v15  ;;  %v785_v17 = vmul.f32 1.442695, %v755_v44  ;;  %v787_v31 = vmul.f32 1.442695, %v756_v58 }
 0x25f   : > { %1898 = vmatmul.mubr.bf16.vlgmr.msra.gmra.mxu1 %v1127_v20  ;;  %v832_v50 = vpop.permute.xlu1 %831 }
 0x260   : > { %2065 = vpow2.f32 %v899_v21  ;;  %v877_v52 = vsub.f32 %v2416_v36, %v832_v50  ;;  %v907_v32 = vmul.f32 1.442695, %v880_v34 }
 0x261   : > { %v2060_v54 = vpop.eup %2059  ;;  %v857_v38 = vpop.permute.xlu0 %856  ;;  %2067 = vpow2.f32 %v903_v13 }
 0x262   : > { %v901_v55 = vmul.f32 1.442695, %v877_v52  ;;  %961 = vadd.xlane.f32.xlu0 %v2060_v54  ;;  %v882_v56 = vsub.f32 %v2435_v42, %v857_v38 }
 0x263   : > { %v842_v57 = vpop.permute.xlu1 %841 }
 0x264   : > { %2069 = vpow2.f32 %v901_v55  ;;  %v879_v61 = vsub.f32 %v2413_v35, %v842_v57  ;;  %v911_v48 = vmul.f32 1.442695, %v882_v56  ;;  %v919_v55 = vld [vmem:[#allocation3 + $0x10] sm:$0xff]  ;;  %v917_v56 = vld [vmem:[#allocation3] sm:$0xff] }
 0x265   : > { %v2062_v62 = vpop.eup %2061  ;;  %v867_v0 = vpop.permute.xlu0 %866  ;;  %2071 = vpow2.f32 %v907_v32  ;;  %v935_v57 = vmul.f32 %v2599_v22, %v919_v55 }
 0x266   : > { %v905_v37 = vmul.f32 1.442695, %v879_v61  ;;  %957 = vadd.xlane.f32.xlu0 %v2062_v62  ;;  %v884_v36 = vsub.f32 %v2431_v41, %v867_v0  ;;  %v933_v0 = vmul.f32 %v2580_v63, %v917_v56 }
 0x267   : > { %v852_v2 = vpop.permute.xlu1 %851 }
 0x268   : > { %2073 = vpow2.f32 %v905_v37  ;;  %v881_v3 = vsub.f32 %v2428_v40, %v852_v2  ;;  %v915_v42 = vmul.f32 1.442695, %v884_v36  ;;  %v918_v2 = vld [vmem:[#allocation3 + $0x8] sm:$0xff] }
 0x269   : > { %v2064_v5 = vpop.eup %2063  ;;  %2075 = vpow2.f32 %v911_v48  ;;  %v2657_v21 = vpop.permute.xlu0 %1032  ;;  %v920_v48 = vld [vmem:[#allocation3 + $0x18] sm:$0xff] }
 0x26a   : > { %v909_v26 = vmul.f32 1.442695, %v881_v3  ;;  %v1128_v4 = vpack.c.bf16 %v2064_v5, %v2062_v62  ;;  %v936_v3 = vmul.f32 %v2585_v14, %v920_v48 }
 0x26b   : > { %v862_v7 = vpop.permute.xlu1 %861 }
 0x26c   : > { %2077 = vpow2.f32 %v909_v26  ;;  %v883_v35 = vsub.f32 %v2425_v39, %v862_v7  ;;  %1901 = vmatprep.mubr.bf16.mxu1 %v1128_v4  ;;  %v934_v4 = vmul.f32 %v2591_v18, %v918_v2  ;;  %v923_v7 = vld [vmem:[#allocation3 + $0x30] sm:$0xff]  ;;  %v924_v18 = vld [vmem:[#allocation3 + $0x38] sm:$0xff] }
 0x26d   : > { %v2066_v9 = vpop.eup %2065  ;;  %2079 = vpow2.f32 %v915_v42  ;;  %v2661_v60 = vpop.permute.xlu0 %1047  ;;  %v939_v63 = vmul.f32 %v2611_v24, %v923_v7 }
 0x26e   : > { %v913_v27 = vmul.f32 1.442695, %v883_v35  ;;  %963 = vadd.xlane.f32.xlu1 %v2066_v9  ;;  %v1129_v10 = vpack.c.bf16 %v2066_v9, %v2060_v54  ;;  %v2068_v41 = vpop.eup %2067  ;;  %v921_v9 = vld [vmem:[#allocation3 + $0x20] sm:$0xff] }
 0x26f   : > { %v2659_v51 = vpop.permute.xlu1 %1037  ;;  %v937_v14 = vmul.f32 %v2605_v23, %v921_v9  ;;  %v1017_v9 = vld [vmem:[#allocation4 + $0x18] sm:$0xff] }
 0x270   : > { %2081 = vpow2.f32 %v913_v27  ;;  %1902 = vmatmul.mubr.bf16.gmra.mxu1 %v1129_v10 }
 0x271   : > { %v2070_v28 = vpop.eup %2069  ;;  %2083 = vpow2.f32 %v785_v17  ;;  %v2665_v13 = vpop.permute.xlu0 %1067  ;;  %v926_v17 = vld [vmem:[#allocation3 + $0x48] sm:$0xff] }
 0x272   : > { %959 = vadd.xlane.f32.xlu1 %v2064_v5  ;;  %v1130_v40 = vpack.c.bf16 %v2068_v41, %v2070_v28  ;;  %v2072_v59 = vpop.eup %2071  ;;  %2085 = vpow2.f32 %v787_v31  ;;  %v942_v56 = vmul.f32 %v2614_v33, %v926_v17 }
 0x273   : > { %v2663_v44 = vpop.permute.xlu1 %1042 }
 0x274   : > { %1905 = vmatprep.mubr.bf16.mxu1 %v1130_v40 }
 0x275   : > { %v2074_v29 = vpop.eup %2073  ;;  %v2669_v53 = vpop.permute.xlu0 %1057 }
 0x276   : > { %971 = vadd.xlane.f32.xlu1 %v2072_v59  ;;  %969 = vadd.xlane.f32.xlu0 %v2074_v29  ;;  %v1131_v12 = vpack.c.bf16 %v2072_v59, %v2074_v29  ;;  %v2076_v11 = vpop.eup %2075  ;;  %v922_v59 = vld [vmem:[#allocation3 + $0x28] sm:$0xff] }
 0x277   : > { %v2667_v45 = vpop.permute.xlu1 %1052  ;;  %v938_v24 = vmul.f32 %v2602_v8, %v922_v59 }
 0x278   : > { %1906 = vmatmul.mubr.bf16.gmra.mxu1 %v1131_v12 }
 0x279   : > { %v2078_v39 = vpop.eup %2077  ;;  %v2673_v34 = vpop.permute.xlu0 %1087 }
 0x27a   : > { %967 = vadd.xlane.f32.xlu1 %v2068_v41  ;;  %965 = vadd.xlane.f32.xlu0 %v2070_v28  ;;  %v1132_v1 = vpack.c.bf16 %v2076_v11, %v2078_v39  ;;  %v2080_v6 = vpop.eup %2079  ;;  %v940_v28 = vmul.f32 %v2594_v19, %v924_v18  ;;  %v925_v19 = vld [vmem:[#allocation3 + $0x40] sm:$0xff] }
 0x27b   : > { %v2671_v58 = vpop.permute.xlu1 %1062  ;;  %v941_v8 = vmul.f32 %v2623_v47, %v925_v19  ;;  %v930_v47 = vld [vmem:[#allocation3 + $0x68] sm:$0xff] }
 0x27c   : > { %1909 = vmatprep.mubr.bf16.mxu1 %v1132_v1 }
 0x27d   : > { %v2082_v30 = vpop.eup %2081  ;;  %v2677_v52 = vpop.permute.xlu0 %1077 }
 0x27e   : > { %979 = vadd.xlane.f32.xlu1 %v2080_v6  ;;  %977 = vadd.xlane.f32.xlu0 %v2082_v30  ;;  %v1133_v16 = vpack.c.bf16 %v2080_v6, %v2082_v30  ;;  %v2651_v15 = vpop.eup %2083 }
 0x27f   : > { %v2654_v20 = vpop.eup %2085  ;;  %v2675_v50 = vpop.permute.xlu1 %1082 }
 0x280   : > { %1910 = vmatmul.mubr.bf16.gmra.mxu1 %v1133_v16 }
 0x281   : > { %v2681_v38 = vpop.permute.xlu0 %1097 }
 0x282   : > { %975 = vadd.xlane.f32.xlu1 %v2076_v11  ;;  %973 = vadd.xlane.f32.xlu0 %v2078_v39  ;;  %v927_v11 = vld [vmem:[#allocation3 + $0x50] sm:$0xff]  ;;  %v928_v39 = vld [vmem:[#allocation3 + $0x58] sm:$0xff] }
 0x283   : > { %v2679_v54 = vpop.permute.xlu1 %1072  ;;  %v943_v23 = vmul.f32 %v2617_v43, %v927_v11  ;;  %v944_v6 = vmul.f32 %v2608_v25, %v928_v39  ;;  %v932_v43 = vld [vmem:[#allocation3 + $0x78] sm:$0xff] }
 0x284   : > { %v948_v48 = vmul.f32 %v2654_v20, %v932_v43 }
 0x287   : > { %v2683_v32 = vpop.permute.xlu1 %1092 }
 0x293   : > { %1102 = vperm.xlu1 %1998, %v2651_v15  }
 0x298   : > { %1107 = vperm.xlu0 %1997, %v2654_v20   ;;  %v1016_v20 = vld [vmem:[#allocation4 + $0x10] sm:$0xff] }
 0x2dd   : > { %v954_v61 = vpop.xlane.xlu0 %953 }
 0x2de   : > { %v983_v62 = vadd.f32 %v954_v61, %v935_v57 }
 0x2df   : > { %v950_v37 = vpop.xlane.xlu1 %949 }
 0x2e0   : > { %1000 = vst.msk [vmem:[#allocation3 + $0x10] sm:$0xff] %vm997_vm3, %v983_v62  ;;  %v981_v36 = vadd.f32 %v950_v37, %v933_v0  ;;  %v931_v62 = vld [vmem:[#allocation3 + $0x70] sm:$0xff] }
 0x2e1   : > { %v947_v37 = vmul.f32 %v2651_v15, %v931_v62  ;;  %v1023_v62 = vld [vmem:[#allocation4 + $0x48] sm:$0xff] }
 0x2e2   : > { %998 = vst.msk [vmem:[#allocation3] sm:$0xff] %vm997_vm3, %v981_v36 }
 0x2e3   : > { %v956_v5 = vpop.xlane.xlu1 %955 }
 0x2e4   : > { %v984_v26 = vadd.f32 %v956_v5, %v936_v3  ;;  %v929_v3 = vld [vmem:[#allocation3 + $0x60] sm:$0xff] }
 0x2e5   : > { %v952_v42 = vpop.xlane.xlu0 %951 }
 0x2e6   : > { %1001 = vst.msk [vmem:[#allocation3 + $0x18] sm:$0xff] %vm997_vm3, %v984_v26  ;;  %v982_v22 = vadd.f32 %v952_v42, %v934_v4  ;;  %v945_v26 = vmul.f32 %v2626_v49, %v929_v3  ;;  %v946_v4 = vmul.f32 %v2620_v46, %v930_v47  ;;  %v1015_v49 = vld [vmem:[#allocation4 + $0x8] sm:$0xff]  ;;  %v1113_v46 = vmul.f32 %v2661_v60, %v1017_v9  ;;  %v1021_v60 = vld [vmem:[#allocation4 + $0x38] sm:$0xff] }
 0x2e8   : > { %999 = vst.msk [vmem:[#allocation3 + $0x8] sm:$0xff] %vm997_vm3, %v982_v22 }
 0x2eb   : > { %v962_v35 = vpop.xlane.xlu0 %961 }
 0x2ec   : > { %v987_v27 = vadd.f32 %v962_v35, %v939_v63  ;;  %v1014_v63 = vld [vmem:[#allocation4] sm:$0xff]  ;;  %v1112_v35 = vmul.f32 %v2663_v44, %v1016_v20 }
 0x2ee   : > { %1004 = vst.msk [vmem:[#allocation3 + $0x30] sm:$0xff] %vm997_vm3, %v987_v27 }
 0x2ef   : > { %v958_v10 = vpop.xlane.xlu0 %957 }
 0x2f0   : > { %v985_v41 = vadd.f32 %v958_v10, %v937_v14  ;;  %v1110_v14 = vmul.f32 %v2657_v21, %v1014_v63  ;;  %v1020_v21 = vld [vmem:[#allocation4 + $0x30] sm:$0xff] }
 0x2f2   : > { %1002 = vst.msk [vmem:[#allocation3 + $0x20] sm:$0xff] %vm997_vm3, %v985_v41 }
 0x2f7   : > { %v964_v40 = vpop.xlane.xlu1 %963 }
 0x2f8   : > { %v988_v29 = vadd.f32 %v964_v40, %v940_v28  ;;  %v1111_v40 = vmul.f32 %v2659_v51, %v1015_v49 }
 0x2fa   : > { %1005 = vst.msk [vmem:[#allocation3 + $0x38] sm:$0xff] %vm997_vm3, %v988_v29 }
 0x2fb   : > { %v960_v12 = vpop.xlane.xlu1 %959 }
 0x2fc   : > { %v986_v1 = vadd.f32 %v960_v12, %v938_v24  ;;  %v1018_v24 = vld [vmem:[#allocation4 + $0x20] sm:$0xff]  ;;  %v1116_v12 = vmul.f32 %v2671_v58, %v1020_v21 }
 0x2fd   : > { %v1114_v39 = vmul.f32 %v2667_v45, %v1018_v24  ;;  %v1022_v58 = vld [vmem:[#allocation4 + $0x40] sm:$0xff] }
 0x2fe   : > { %1003 = vst.msk [vmem:[#allocation3 + $0x28] sm:$0xff] %vm997_vm3, %v986_v1 }
 0x2ff   : > { %v970_v30 = vpop.xlane.xlu0 %969  ;;  %v972_v16 = vpop.xlane.xlu1 %971 }
 0x300   : > { %v991_v31 = vadd.f32 %v970_v30, %v943_v23  ;;  %v992_v55 = vadd.f32 %v972_v16, %v944_v6  ;;  %v1019_v23 = vld [vmem:[#allocation4 + $0x28] sm:$0xff]  ;;  %v1117_v6 = vmul.f32 %v2665_v13, %v1021_v60  ;;  %v1024_v16 = vld [vmem:[#allocation4 + $0x50] sm:$0xff]  ;;  %v1118_v13 = vmul.f32 %v2679_v54, %v1022_v58 }
 0x301   : > { %v1115_v17 = vmul.f32 %v2669_v53, %v1019_v23 }
 0x302   : > { %1008 = vst.msk [vmem:[#allocation3 + $0x50] sm:$0xff] %vm997_vm3, %v991_v31  ;;  %1009 = vst.msk [vmem:[#allocation3 + $0x58] sm:$0xff] %vm997_vm3, %v992_v55 }
 0x303   : > { %v966_v57 = vpop.xlane.xlu0 %965  ;;  %v968_v61 = vpop.xlane.xlu1 %967 }
 0x304   : > { %v989_v0 = vadd.f32 %v966_v57, %v941_v8  ;;  %v990_v25 = vadd.f32 %v968_v61, %v942_v56  ;;  %v1120_v8 = vmul.f32 %v2675_v50, %v1024_v16  ;;  %v1025_v56 = vld [vmem:[#allocation4 + $0x58] sm:$0xff] }
 0x305   : > { %v1121_v53 = vmul.f32 %v2673_v34, %v1025_v56 }
 0x306   : > { %1006 = vst.msk [vmem:[#allocation3 + $0x40] sm:$0xff] %vm997_vm3, %v989_v0  ;;  %1007 = vst.msk [vmem:[#allocation3 + $0x48] sm:$0xff] %vm997_vm3, %v990_v25  ;;  %v1028_v25 = vld [vmem:[#allocation4 + $0x70] sm:$0xff] }
 0x307   : > { %v978_v36 = vpop.xlane.xlu0 %977  ;;  %v980_v2 = vpop.xlane.xlu1 %979 }
 0x308   : > { %v995_v5 = vadd.f32 %v978_v36, %v947_v37  ;;  %v996_v33 = vadd.f32 %v980_v2, %v948_v48  ;;  %v1119_v48 = vmul.f32 %v2677_v52, %v1023_v62  ;;  %v1026_v2 = vld [vmem:[#allocation4 + $0x60] sm:$0xff] }
 0x30a   : > { %1012 = vst.msk [vmem:[#allocation3 + $0x70] sm:$0xff] %vm997_vm3, %v995_v5  ;;  %1013 = vst.msk [vmem:[#allocation3 + $0x78] sm:$0xff] %vm997_vm3, %v996_v33  ;;  %v1029_v5 = vld [vmem:[#allocation4 + $0x78] sm:$0xff] }
 0x30b   : > { %v974_v42 = vpop.xlane.xlu0 %973  ;;  %v976_v22 = vpop.xlane.xlu1 %975 }
 0x30c   : > { %v993_v7 = vadd.f32 %v974_v42, %v945_v26  ;;  %v994_v15 = vadd.f32 %v976_v22, %v946_v4  ;;  %v1122_v26 = vmul.f32 %v2683_v32, %v1026_v2  ;;  %v1027_v42 = vld [vmem:[#allocation4 + $0x68] sm:$0xff] }
 0x30d   : > { %v1123_v20 = vmul.f32 %v2681_v38, %v1027_v42 }
 0x30e   : > { %1010 = vst.msk [vmem:[#allocation3 + $0x60] sm:$0xff] %vm997_vm3, %v993_v7  ;;  %1011 = vst.msk [vmem:[#allocation3 + $0x68] sm:$0xff] %vm997_vm3, %v994_v15 }
 0x30f   : > { %v1103_v37 = vpop.permute.xlu1 %1102 }
 0x310   : > { %v1124_v3 = vmul.f32 %v1103_v37, %v1028_v25 }
 0x313   : > { %v1108_v33 = vpop.permute.xlu0 %1107 }
 0x314   : > { %v1125_v52 = vmul.f32 %v1108_v33, %v1029_v5 }
 0x31f   : > { %v1899_v27 = vpop.f32.mrf.mxu1 }
 0x320   : > { %v1281_v10 = vadd.f32 %v1899_v27, %v1112_v35 }
 0x321   : > { %v1216_v41 = vpop.f32.mrf.mxu1 }
 0x322   : > { %1297 = vst.msk [vmem:[#allocation4 + $0x10] sm:$0xff] %vm531_vm2, %v1281_v10  ;;  %v1279_v18 = vadd.f32 %v1216_v41, %v1110_v14 }
 0x323   : > { %v1900_v28 = vpop.f32.mrf.mxu1 }
 0x324   : > { %1295 = vst.msk [vmem:[#allocation4] sm:$0xff] %vm531_vm2, %v1279_v18  ;;  %v1282_v59 = vadd.f32 %v1900_v28, %v1113_v46 }
 0x325   : > { %v1219_v29 = vpop.f32.mrf.mxu1 }
 0x326   : > { %1298 = vst.msk [vmem:[#allocation4 + $0x18] sm:$0xff] %vm531_vm2, %v1282_v59  ;;  %v1280_v44 = vadd.f32 %v1219_v29, %v1111_v40 }
 0x328   : > { %1296 = vst.msk [vmem:[#allocation4 + $0x8] sm:$0xff] %vm531_vm2, %v1280_v44 }
 0x330   : > { %v1903_v11 = vpop.f32.mrf.mxu1 }
 0x331   : > { %v1285_v1 = vadd.f32 %v1903_v11, %v1116_v12 }
 0x332   : > { %v1232_v51 = vpop.f32.mrf.mxu1 }
 0x333   : > { %1301 = vst.msk [vmem:[#allocation4 + $0x30] sm:$0xff] %vm531_vm2, %v1285_v1  ;;  %v1283_v30 = vadd.f32 %v1232_v51, %v1114_v39 }
 0x334   : > { %v1904_v19 = vpop.f32.mrf.mxu1 }
 0x335   : > { %1299 = vst.msk [vmem:[#allocation4 + $0x20] sm:$0xff] %vm531_vm2, %v1283_v30  ;;  %v1286_v31 = vadd.f32 %v1904_v19, %v1117_v6 }
 0x336   : > { %v1235_v55 = vpop.f32.mrf.mxu1 }
 0x337   : > { %1302 = vst.msk [vmem:[#allocation4 + $0x38] sm:$0xff] %vm531_vm2, %v1286_v31  ;;  %v1284_v45 = vadd.f32 %v1235_v55, %v1115_v17 }
 0x338   : > { %v1907_v57 = vpop.f32.mrf.mxu1 }
 0x339   : > { %1300 = vst.msk [vmem:[#allocation4 + $0x28] sm:$0xff] %vm531_vm2, %v1284_v45  ;;  %v1289_v61 = vadd.f32 %v1907_v57, %v1120_v8 }
 0x33a   : > { %v1248_v43 = vpop.f32.mrf.mxu1 }
 0x33b   : > { %1305 = vst.msk [vmem:[#allocation4 + $0x50] sm:$0xff] %vm531_vm2, %v1289_v61  ;;  %v1287_v0 = vadd.f32 %v1248_v43, %v1118_v13 }
 0x33c   : > { %v1908_v50 = vpop.f32.mrf.mxu1 }
 0x33d   : > { %1303 = vst.msk [vmem:[#allocation4 + $0x40] sm:$0xff] %vm531_vm2, %v1287_v0  ;;  %v1290_v36 = vadd.f32 %v1908_v50, %v1121_v53 }
 0x33e   : > { %v1251_v54 = vpop.f32.mrf.mxu1 }
 0x33f   : > { %1306 = vst.msk [vmem:[#allocation4 + $0x58] sm:$0xff] %vm531_vm2, %v1290_v36  ;;  %v1288_v47 = vadd.f32 %v1251_v54, %v1119_v48 }
 0x340   : > { %v1911_v34 = vpop.f32.mrf.mxu1 }
 0x341   : > { %1304 = vst.msk [vmem:[#allocation4 + $0x48] sm:$0xff] %vm531_vm2, %v1288_v47  ;;  %v1293_v4 = vadd.f32 %v1911_v34, %v1124_v3 }
 0x342   : > { %v1264_v22 = vpop.f32.mrf.mxu1 }
 0x343   : > { %1309 = vst.msk [vmem:[#allocation4 + $0x70] sm:$0xff] %vm531_vm2, %v1293_v4  ;;  %v1291_v7 = vadd.f32 %v1264_v22, %v1122_v26 }
 0x344   : > { %v1912_v15 = vpop.f32.mrf.mxu1 }
 0x345   : > { %1307 = vst.msk [vmem:[#allocation4 + $0x60] sm:$0xff] %vm531_vm2, %v1291_v7  ;;  %v1294_v63 = vadd.f32 %v1912_v15, %v1125_v52  ;;  %1330 = sbr.rel (%p1782_p12) target bundleno = 1015 (0x3f7), region = 40 }
 0x346   : > { %v1267_v35 = vpop.f32.mrf.mxu1 }
 0x347   : > { %1310 = vst.msk [vmem:[#allocation4 + $0x78] sm:$0xff] %vm531_vm2, %v1294_v63  ;;  %v1292_v9 = vadd.f32 %v1267_v35, %v1123_v20 }
 0x349   : > { %1308 = vst.msk [vmem:[#allocation4 + $0x68] sm:$0xff] %vm531_vm2, %v1292_v9 }
 0x34a   : > { %v1349_v32 = vld [vmem:[#allocation3 + $0x10] sm:$0xff]  ;;  %v1347_v27 = vld [vmem:[#allocation3] sm:$0xff]  ;;  %v1350_v14 = vld [vmem:[#allocation3 + $0x18] sm:$0xff]  ;;  %v2196_v10 = vmov 0   ;;  %vm1539_vm4 = vcmask 257024  }
 0x34b   : > { %2088 = vset.pattern.permute.xlu1 %v2196_v10  ;;  %2087 = vset.pattern.permute.xlu0 %v2196_v10  ;;  %2089 = vrcp.f32 %v1349_v32  ;;  %v1348_v38 = vld [vmem:[#allocation3 + $0x8] sm:$0xff]  ;;  %v1351_v41 = vld [vmem:[#allocation3 + $0x20] sm:$0xff]  ;;  %v1354_v46 = vld [vmem:[#allocation3 + $0x38] sm:$0xff] }
 0x34c   : > { %2091 = vrcp.f32 %v1347_v27  ;;  %v1352_v49 = vld [vmem:[#allocation3 + $0x28] sm:$0xff]  ;;  %v1353_v18 = vld [vmem:[#allocation3 + $0x30] sm:$0xff]  ;;  %v1355_v40 = vld [vmem:[#allocation3 + $0x40] sm:$0xff] }
 0x34d   : > { %2093 = vrcp.f32 %v1350_v14  ;;  %v1356_v28 = vld [vmem:[#allocation3 + $0x48] sm:$0xff]  ;;  %v1358_v21 = vld [vmem:[#allocation3 + $0x58] sm:$0xff]  ;;  %v1357_v12 = vld [vmem:[#allocation3 + $0x50] sm:$0xff] }
 0x34e   : > { %2095 = vrcp.f32 %v1348_v38  ;;  %v1360_v11 = vld [vmem:[#allocation3 + $0x68] sm:$0xff]  ;;  %v1359_v1 = vld [vmem:[#allocation3 + $0x60] sm:$0xff]  ;;  %v1362_v51 = vld [vmem:[#allocation3 + $0x78] sm:$0xff] }
 0x34f   : > { %2097 = vrcp.f32 %v1352_v49  ;;  %v1361_v30 = vld [vmem:[#allocation3 + $0x70] sm:$0xff]  ;;  %v1331_v57 = vld [vmem:[#allocation4] sm:$0xff]  ;;  %v1334_v53 = vld [vmem:[#allocation4 + $0x18] sm:$0xff] }
 0x350   : > { %2099 = vrcp.f32 %v1351_v41  ;;  %v1333_v56 = vld [vmem:[#allocation4 + $0x10] sm:$0xff]  ;;  %v1332_v25 = vld [vmem:[#allocation4 + $0x8] sm:$0xff]  ;;  %v1335_v47 = vld [vmem:[#allocation4 + $0x20] sm:$0xff] }
 0x351   : > { %2101 = vrcp.f32 %v1354_v46  ;;  %v1336_v54 = vld [vmem:[#allocation4 + $0x28] sm:$0xff]  ;;  %v1338_v42 = vld [vmem:[#allocation4 + $0x38] sm:$0xff]  ;;  %v1337_v52 = vld [vmem:[#allocation4 + $0x30] sm:$0xff] }
 0x352   : > { %2103 = vrcp.f32 %v1353_v18  ;;  %v1340_v9 = vld [vmem:[#allocation4 + $0x48] sm:$0xff]  ;;  %v1339_v27 = vld [vmem:[#allocation4 + $0x40] sm:$0xff]  ;;  %v1342_v46 = vld [vmem:[#allocation4 + $0x58] sm:$0xff] }
 0x353   : > { %2105 = vrcp.f32 %v1356_v28  ;;  %v1341_v28 = vld [vmem:[#allocation4 + $0x50] sm:$0xff] }
 0x354   : > { %2107 = vrcp.f32 %v1355_v40 }
 0x355   : > { %2109 = vrcp.f32 %v1358_v21 }
 0x356   : > { %2111 = vrcp.f32 %v1357_v12 }
 0x357   : > { %2113 = vrcp.f32 %v1360_v11 }
 0x358   : > { %v2090_v59 = vpop.eup %2089  ;;  %2115 = vrcp.f32 %v1359_v1 }
 0x359   : > { %v2092_v29 = vpop.eup %2091  ;;  %1391 = vperm.xlu1 %2088, %v2090_v59   ;;  %2117 = vrcp.f32 %v1362_v51 }
 0x35a   : > { %v2094_v44 = vpop.eup %2093  ;;  %1381 = vperm.xlu0 %2087, %v2092_v29   ;;  %2119 = vrcp.f32 %v1361_v30 }
 0x35b   : > { %v2096_v24 = vpop.eup %2095 }
 0x35c   : > { %v2098_v60 = vpop.eup %2097 }
 0x35d   : > { %1396 = vperm.xlu1 %2088, %v2094_v44   ;;  %v2100_v39 = vpop.eup %2099 }
 0x35e   : > { %1386 = vperm.xlu0 %2087, %v2096_v24   ;;  %v2102_v23 = vpop.eup %2101  ;;  %v1344_v24 = vld [vmem:[#allocation4 + $0x68] sm:$0xff] }
 0x35f   : > { %v2104_v6 = vpop.eup %2103 }
 0x360   : > { %v2106_v16 = vpop.eup %2105 }
 0x361   : > { %1406 = vperm.xlu1 %2088, %v2098_v60   ;;  %v2108_v19 = vpop.eup %2107  ;;  %v1343_v60 = vld [vmem:[#allocation4 + $0x60] sm:$0xff] }
 0x362   : > { %1401 = vperm.xlu0 %2087, %v2100_v39   ;;  %v2110_v17 = vpop.eup %2109 }
 0x363   : > { %v2112_v31 = vpop.eup %2111 }
 0x364   : > { %v2114_v58 = vpop.eup %2113 }
 0x365   : > { %1416 = vperm.xlu1 %2088, %v2102_v23   ;;  %v2116_v55 = vpop.eup %2115 }
 0x366   : > { %1411 = vperm.xlu0 %2087, %v2104_v6   ;;  %v2118_v8 = vpop.eup %2117  ;;  %v1346_v6 = vld [vmem:[#allocation4 + $0x78] sm:$0xff] }
 0x367   : > { %v2120_v45 = vpop.eup %2119 }
 0x369   : > { %1426 = vperm.xlu1 %2088, %v2106_v16   ;;  %v1345_v16 = vld [vmem:[#allocation4 + $0x70] sm:$0xff] }
 0x36a   : > { %1421 = vperm.xlu0 %2087, %v2108_v19  }
 0x36d   : > { %1436 = vperm.xlu1 %2088, %v2110_v17  }
 0x36e   : > { %1431 = vperm.xlu0 %2087, %v2112_v31  }
 0x371   : > { %1446 = vperm.xlu1 %2088, %v2114_v58  }
 0x372   : > { %1441 = vperm.xlu0 %2087, %v2116_v55  }
 0x375   : > { %1456 = vperm.xlu1 %2088, %v2118_v8  }
 0x376   : > { %1451 = vperm.xlu0 %2087, %v2120_v45  }
 0x3d4   : > { %v1392_v13 = vpop.permute.xlu1 %1391 }
 0x3d5   : > { %v1461_v61 = vmul.f32 %v1392_v13, %v1333_v56  ;;  %v1382_v62 = vpop.permute.xlu0 %1381 }
 0x3d6   : > { %v1459_v43 = vmul.f32 %v1382_v62, %v1331_v57 }
 0x3d7   : > { %v1803_v0 = vpack.c.bf16 %v1461_v61, %v1461_v61 }
 0x3d8   : > { %v1801_v37 = vpack.c.bf16 %v1459_v43, %v1459_v43  ;;  %v1397_v50 = vpop.permute.xlu1 %1396 }
 0x3d9   : > { %1542 = vst.msk [vmem:[%s2289_s10 + $0x8] sm:$0xf] %vm1539_vm4, %v1803_v0  ;;  %v1462_v48 = vmul.f32 %v1397_v50, %v1334_v53  ;;  %v1387_v36 = vpop.permute.xlu0 %1386 }
 0x3da   : > { %1540 = vst.msk [vmem:[%s2289_s10] sm:$0xf] %vm1539_vm4, %v1801_v37  ;;  %v1460_v2 = vmul.f32 %v1387_v36, %v1332_v25 }
 0x3db   : > { %v1804_v3 = vpack.c.bf16 %v1462_v48, %v1462_v48 }
 0x3dc   : > { %v1802_v5 = vpack.c.bf16 %v1460_v2, %v1460_v2  ;;  %v1407_v33 = vpop.permute.xlu1 %1406 }
 0x3dd   : > { %1543 = vst.msk [vmem:[%s2289_s10 + $0xc] sm:$0xf] %vm1539_vm4, %v1804_v3  ;;  %v1464_v34 = vmul.f32 %v1407_v33, %v1336_v54  ;;  %v1402_v26 = vpop.permute.xlu0 %1401 }
 0x3de   : > { %1541 = vst.msk [vmem:[%s2289_s10 + $0x4] sm:$0xf] %vm1539_vm4, %v1802_v5  ;;  %v1463_v4 = vmul.f32 %v1402_v26, %v1335_v47 }
 0x3df   : > { %v1806_v22 = vpack.c.bf16 %v1464_v34, %v1464_v34 }
 0x3e0   : > { %v1805_v7 = vpack.c.bf16 %v1463_v4, %v1463_v4  ;;  %v1417_v15 = vpop.permute.xlu1 %1416 }
 0x3e1   : > { %1545 = vst.msk [vmem:[%s2289_s10 + $0x14] sm:$0xf] %vm1539_vm4, %v1806_v22  ;;  %v1466_v20 = vmul.f32 %v1417_v15, %v1338_v42  ;;  %v1412_v63 = vpop.permute.xlu0 %1411 }
 0x3e2   : > { %1544 = vst.msk [vmem:[%s2289_s10 + $0x10] sm:$0xf] %vm1539_vm4, %v1805_v7  ;;  %v1465_v35 = vmul.f32 %v1412_v63, %v1337_v52 }
 0x3e3   : > { %v1808_v32 = vpack.c.bf16 %v1466_v20, %v1466_v20 }
 0x3e4   : > { %v1807_v14 = vpack.c.bf16 %v1465_v35, %v1465_v35  ;;  %v1427_v10 = vpop.permute.xlu1 %1426 }
 0x3e5   : > { %1547 = vst.msk [vmem:[%s2289_s10 + $0x1c] sm:$0xf] %vm1539_vm4, %v1808_v32  ;;  %v1468_v38 = vmul.f32 %v1427_v10, %v1340_v9  ;;  %v1422_v49 = vpop.permute.xlu0 %1421 }
 0x3e6   : > { %1546 = vst.msk [vmem:[%s2289_s10 + $0x18] sm:$0xf] %vm1539_vm4, %v1807_v14  ;;  %v1467_v41 = vmul.f32 %v1422_v49, %v1339_v27 }
 0x3e7   : > { %v1810_v18 = vpack.c.bf16 %v1468_v38, %v1468_v38 }
 0x3e8   : > { %v1809_v40 = vpack.c.bf16 %v1467_v41, %v1467_v41  ;;  %v1437_v59 = vpop.permute.xlu1 %1436 }
 0x3e9   : > { %1549 = vst.msk [vmem:[%s2289_s10 + $0x24] sm:$0xf] %vm1539_vm4, %v1810_v18  ;;  %v1470_v29 = vmul.f32 %v1437_v59, %v1342_v46  ;;  %v1432_v44 = vpop.permute.xlu0 %1431 }
 0x3ea   : > { %1548 = vst.msk [vmem:[%s2289_s10 + $0x20] sm:$0xf] %vm1539_vm4, %v1809_v40  ;;  %v1469_v21 = vmul.f32 %v1432_v44, %v1341_v28 }
 0x3eb   : > { %v1812_v12 = vpack.c.bf16 %v1470_v29, %v1470_v29 }
 0x3ec   : > { %v1811_v11 = vpack.c.bf16 %v1469_v21, %v1469_v21  ;;  %v1447_v39 = vpop.permute.xlu1 %1446 }
 0x3ed   : > { %1551 = vst.msk [vmem:[%s2289_s10 + $0x2c] sm:$0xf] %vm1539_vm4, %v1812_v12  ;;  %v1472_v1 = vmul.f32 %v1447_v39, %v1344_v24  ;;  %v1442_v23 = vpop.permute.xlu0 %1441 }
 0x3ee   : > { %1550 = vst.msk [vmem:[%s2289_s10 + $0x28] sm:$0xf] %vm1539_vm4, %v1811_v11  ;;  %v1471_v51 = vmul.f32 %v1442_v23, %v1343_v60 }
 0x3ef   : > { %v1814_v30 = vpack.c.bf16 %v1472_v1, %v1472_v1 }
 0x3f0   : > { %v1813_v19 = vpack.c.bf16 %v1471_v51, %v1471_v51  ;;  %v1457_v17 = vpop.permute.xlu1 %1456 }
 0x3f1   : > { %1553 = vst.msk [vmem:[%s2289_s10 + $0x34] sm:$0xf] %vm1539_vm4, %v1814_v30  ;;  %v1474_v31 = vmul.f32 %v1457_v17, %v1346_v6  ;;  %v1452_v58 = vpop.permute.xlu0 %1451 }
 0x3f2   : > { %1552 = vst.msk [vmem:[%s2289_s10 + $0x30] sm:$0xf] %vm1539_vm4, %v1813_v19  ;;  %v1473_v55 = vmul.f32 %v1452_v58, %v1345_v16 }
 0x3f3   : > { %v1816_v8 = vpack.c.bf16 %v1474_v31, %v1474_v31 }
 0x3f4   : > { %v1815_v45 = vpack.c.bf16 %v1473_v55, %v1473_v55 }
 0x3f5   : > { %1555 = vst.msk [vmem:[%s2289_s10 + $0x3c] sm:$0xf] %vm1539_vm4, %v1816_v8 }
 0x3f6   : > { %1554 = vst.msk [vmem:[%s2289_s10 + $0x38] sm:$0xf] %vm1539_vm4, %v1815_v45 }
 0x3f7 PF: > { %s13_s20 = sadd.s32 1, %s2191_s20   ;;  %s2812_s24 = sld [smem:[#allocation5_spill]] }
 0x3f8   : > { %p10_p13 = scmp.ge.s32.totalorder %s13_s20, 18   ;;  %s2813_s12 = smov %s2175_s16 }
 0x3f9   : > { %s2814_s13 = smov %s2179_s17  ;;  %s2815_s14 = smov %s2183_s18 }
 0x3fa   : > { %s2816_s15 = smov %s2187_s19  ;;  %s2817_s16 = smov %s2822_s21 }
 0x3fb   : > { %s2818_s17 = smov %s2826_s22  ;;  %s2819_s18 = smov %s2830_s23 }
 0x3fc   :  { %12 = sbr.rel (!%p10_p13) target bundleno = 5 (0x5), region = 76 }
 0x3fd   : > { %s2820_s19 = smov %s2812_s24 }

// kernel: attention_block_pallas.3
= control target key start
LH: loop header
LB: loop body
LE: loop exit
PB: predicated region body
PF: predicated region fallthrough
CT: control target
= control target key end

     0   :  { %s3046_s24 = smov 0   ;;  %s3048_s25 = smov 0   ;;  %s4102_s0 = inlined_call_operand.vmem [shape: f32[2,256,64], index: 0, kind: input, shape index: {}]   ;;  %s4103_s1 = inlined_call_operand.vmem [shape: f32[64,32], index: 1, kind: input, shape index: {}]   ;;  %s4104_s2 = inlined_call_operand.vmem [shape: f32[32,64], index: 2, kind: input, shape index: {}]   ;;  %s4105_s3 = inlined_call_operand.vmem [shape: bf16[2,3,64,32], index: 3, kind: input, shape index: {}]   ;;  %s4106_s4 = inlined_call_operand.vmem [shape: f32[2,3,1,32], index: 4, kind: input, shape index: {}]   ;;  %s4107_s5 = inlined_call_operand.vmem [shape: bf16[2,2,256,32], index: 5, kind: output, shape index: {0}]   ;;  %s4108_s6 = inlined_call_operand.vmem [shape: bf16[2,2,256,32], index: 6, kind: output, shape index: {1}]   ;;  %s4109_s7 = inlined_call_operand.vmem [shape: bf16[2,2,256,32], index: 7, kind: output, shape index: {2}]  }
   0x1   :  { %s3050_s26 = smov 0   ;;  %s3052_s27 = smov 0  }
   0x2   :  { %s3054_s28 = smov 0  }
   0x3 LB: > { %s27_s29 = sadd.s32 1, %s2994_s26  ;;  %s30_s30 = sadd.s32 1, %s2998_s27  ;;  %s3002_s28 = sphi %s3054_s28, %s18_s28   ;;  %s2998_s27 = sphi %s3052_s27, %s4113_s27   ;;  %s2994_s26 = sphi %s3050_s26, %s4112_s26   ;;  %s2990_s25 = sphi %s3048_s25, %s4111_s25   ;;  %s2986_s24 = sphi %s3046_s24, %s4110_s24  }
   0x4   : > { %p28_p0 = scmp.ge.s32.totalorder %s27_s29, 2  ;;  %p2337_p1 = scmp.ge.s32.totalorder %s3002_s28, 1 }
   0x5   : > { %p279_p2 = scmp.lt.s32.totalorder %s3002_s28, 5 }
   0x6   : > { %s4115_s29 = smov (%p28_p0, %s27_s29), 0  ;;  %s4117_s30 = smov (!%p28_p0, %s30_s30), %s2998_s27 }
   0x7   : > { %p280_p3 = pnand %p2337_p1, %p279_p2  ;;  %p32_p4 = scmp.ge.s32.totalorder %s4117_s30, 2 }
   0x8   : > { %p342_p5 = scmp.lt.s32.totalorder (!%p280_p3), %s2990_s25, 1  ;;  %p347_p6 = scmp.lt.s32.totalorder (!%p280_p3), %s2986_s24, 1 }
   0x9   : > { %s4119_s30 = smov (%p32_p4, %s4117_s30), 0  ;;  %283 = sbr.rel (%p280_p3) target bundleno = 1266 (0x4f2), region = 40 }
   0xe   : > { %v3081_v0 = vld [vmem:[%s4103_s1 + $0x38] sm:$0xff]  ;;  %v3004_v1 = vmov 0.0   ;;  %v3087_v2 = vld [vmem:[%s4103_s1 + $0x30] sm:$0xff]  ;;  %vm3005_vm0 = vmmov 0   ;;  %s4121_s25 = smov (!%p342_p5, %s2990_s25), 1  ;;  %v3104_v4 = vld [vmem:[%s4103_s1 + $0x28] sm:$0xff] }
   0xf   : > { %2718 = vmatprep.subr.mxu0 %v3004_v1  ;;  %2734 = vmatprep.mubr.msk.f32.mxu0 %vm3005_vm0, %v3004_v1  ;;  %v3098_v3 = vld [vmem:[%s4104_s2 + $0x18] sm:$0xff]  ;;  %v3110_v5 = vld [vmem:[%s4104_s2 + $0x10] sm:$0xff]  ;;  %s2533_s18 = sshll.u32 %s4121_s25, 8  ;;  %vm416_vm1 = vcmask 523264   ;;  %v3119_v6 = vld [vmem:[%s4103_s1 + $0x20] sm:$0xff]  ;;  %vm572_vm2 = vcmask 261120  }
  0x10   : > { %2719 = vmatpush3.msra.mxu0 %v3081_v0  ;;  %2737 = vmatprep.subr.mxu1 %v3004_v1  ;;  %s3124_s23 = scalar_lea.vmem %s4102_s0, %s2533_s18  ;;  %v3142_v10 = vld [vmem:[%s4103_s1 + $0x18] sm:$0xff]  ;;  %v3163_v17 = vld [vmem:[%s4103_s1 + $0x10] sm:$0xff]  ;;  %v3175_v21 = vld [vmem:[%s4103_s1 + $0x8] sm:$0xff]  ;;  %s4123_s24 = smov (!%p347_p6, %s2986_s24), 1  ;;  %vm1360_vm3 = vcmask 257024  }
  0x11   : > { %2720 = vmatprep.subr.mxu0 %v3004_v1  ;;  %2738 = vmatpush3.msra.mxu1 %v3098_v3  ;;  %v3129_v7 = vld [vmem:[%s3124_s23] sm:$0xff]  ;;  %v3132_v8 = vld [vmem:[%s3124_s23 + $0x8] sm:$0xff]  ;;  %v3135_v9 = vld [vmem:[%s3124_s23 + $0x10] sm:$0xff]  ;;  %s2906_s20 = smul.u32 96, %s4123_s24  ;;  %s2341_s9 = sshll.u32 %s4123_s24, 5 }
  0x12   : > { %2721 = vmatpush3.msra.mxu0 %v3087_v2  ;;  %2739 = vmatprep.subr.mxu1 %v3004_v1  ;;  %v3145_v11 = vld [vmem:[%s3124_s23 + $0x18] sm:$0xff]  ;;  %v417_v12 = vsel %vm416_vm1, %v3129_v7, 0.0  ;;  %v418_v13 = vsel %vm416_vm1, %v3132_v8, 0.0  ;;  %v420_v14 = vsel %vm416_vm1, %v3135_v9, 0.0  ;;  %v3157_v15 = vld [vmem:[%s3124_s23 + $0x20] sm:$0xff]  ;;  %v3169_v19 = vld [vmem:[%s3124_s23 + $0x28] sm:$0xff] }
  0x13   : > { %2722 = vmatprep.subr.mxu0 %v3004_v1  ;;  %2740 = vmatpush3.msra.mxu1 %v3110_v5  ;;  %v419_v16 = vadd.f32 %v418_v13, %v417_v12  ;;  %v422_v18 = vsel %vm416_vm1, %v3145_v11, 0.0  ;;  %v424_v22 = vsel %vm416_vm1, %v3157_v15, 0.0  ;;  %v3181_v23 = vld [vmem:[%s3124_s23 + $0x30] sm:$0xff]  ;;  %v3187_v25 = vld [vmem:[%s4103_s1] sm:$0xff]  ;;  %v426_v26 = vsel %vm416_vm1, %v3169_v19, 0.0  ;;  %v3193_v27 = vld [vmem:[%s3124_s23 + $0x38] sm:$0xff] }
  0x14   : > { %2723 = vmatpush3.msra.mxu0 %v3104_v4  ;;  %2741 = vmatprep.subr.mxu1 %v3004_v1  ;;  %v428_v29 = vsel %vm416_vm1, %v3181_v23, 0.0  ;;  %v3200_v30 = vld [vmem:[%s3124_s23 + $0x40] sm:$0xff]  ;;  %v430_v32 = vsel %vm416_vm1, %v3193_v27, 0.0  ;;  %v3206_v33 = vld [vmem:[%s3124_s23 + $0x48] sm:$0xff]  ;;  %v3211_v36 = vld [vmem:[%s3124_s23 + $0x50] sm:$0xff]  ;;  %s2907_s8 = smul.u32 3, %s4123_s24 }
  0x15   : > { %2724 = vmatprep.subr.mxu0 %v3004_v1  ;;  %2745 = vmatprep.mubr.msk.f32.mxu1 %vm3005_vm0, %v3004_v1  ;;  %v421_v20 = vadd.f32 %v420_v14, %v419_v16  ;;  %v432_v35 = vsel %vm416_vm1, %v3200_v30, 0.0  ;;  %v434_v38 = vsel %vm416_vm1, %v3206_v33, 0.0  ;;  %v3216_v39 = vld [vmem:[%s3124_s23 + $0x58] sm:$0xff]  ;;  %v436_v41 = vsel %vm416_vm1, %v3211_v36, 0.0  ;;  %v3221_v42 = vld [vmem:[%s3124_s23 + $0x60] sm:$0xff]  ;;  %v3226_v45 = vld [vmem:[%s3124_s23 + $0x68] sm:$0xff] }
  0x16   : > { %2725 = vmatpush3.msra.mxu0 %v3119_v6  ;;  %v438_v44 = vsel %vm416_vm1, %v3216_v39, 0.0  ;;  %v440_v47 = vsel %vm416_vm1, %v3221_v42, 0.0  ;;  %v3231_v48 = vld [vmem:[%s3124_s23 + $0x70] sm:$0xff]  ;;  %v442_v50 = vsel %vm416_vm1, %v3226_v45, 0.0  ;;  %v3236_v51 = vld [vmem:[%s3124_s23 + $0x78] sm:$0xff]  ;;  %v3241_v54 = vld [vmem:[%s3124_s23 + $0x80] sm:$0xff]  ;;  %s3768_s13 = scalar_lea.vmem %s4106_s4, %s2907_s8 }
  0x17   : > { %2726 = vmatprep.subr.mxu0 %v3004_v1  ;;  %v423_v24 = vadd.f32 %v422_v18, %v421_v20  ;;  %v444_v53 = vsel %vm416_vm1, %v3231_v48, 0.0  ;;  %v446_v56 = vsel %vm416_vm1, %v3236_v51, 0.0  ;;  %v3246_v57 = vld [vmem:[%s3124_s23 + $0x88] sm:$0xff]  ;;  %v448_v59 = vsel %vm416_vm1, %v3241_v54, 0.0  ;;  %v3251_v60 = vld [vmem:[%s3124_s23 + $0x90] sm:$0xff]  ;;  %v3256_v63 = vld [vmem:[%s3124_s23 + $0x98] sm:$0xff] }
  0x18   : > { %2727 = vmatpush3.msra.mxu0 %v3142_v10  ;;  %v450_v62 = vsel %vm416_vm1, %v3246_v57, 0.0  ;;  %v452_v13 = vsel %vm416_vm1, %v3251_v60, 0.0  ;;  %v3261_v14 = vld [vmem:[%s3124_s23 + $0xa0] sm:$0xff]  ;;  %v454_v18 = vsel %vm416_vm1, %v3256_v63, 0.0  ;;  %v3266_v20 = vld [vmem:[%s3124_s23 + $0xa8] sm:$0xff]  ;;  %s2342_s10 = sshll.u32 %s4121_s25, 6 }
  0x19   : > { %2728 = vmatprep.subr.mxu0 %v3004_v1  ;;  %v425_v28 = vadd.f32 %v424_v22, %v423_v24  ;;  %v456_v24 = vsel %vm416_vm1, %v3261_v14, 0.0  ;;  %s362_s14 = sadd.s32 %s2342_s10, %s2341_s9 }
  0x1a   : > { %2729 = vmatpush3.msra.mxu0 %v3163_v17  ;;  %s3773_s15 = sshll.u32 %s362_s14, 2 }
  0x1b   : > { %2730 = vmatprep.subr.mxu0 %v3004_v1  ;;  %v427_v31 = vadd.f32 %v426_v26, %v425_v28  ;;  %v3271_v26 = vld [vmem:[%s3124_s23 + $0xb0] sm:$0xff]  ;;  %s3781_s16 = scalar_lea.vmem %s4107_s5, %s3773_s15  ;;  %s3885_s19 = scalar_lea.vmem %s4108_s6, %s3773_s15 }
  0x1c   : > { %2731 = vmatpush3.msra.mxu0 %v3175_v21  ;;  %s3891_s22 = scalar_lea.vmem %s4109_s7, %s3773_s15 }
  0x1d   : > { %2732 = vmatprep.subr.mxu0 %v3004_v1  ;;  %v429_v34 = vadd.f32 %v428_v29, %v427_v31  ;;  %v458_v29 = vsel %vm416_vm1, %v3266_v20, 0.0  ;;  %v3276_v31 = vld [vmem:[%s3124_s23 + $0xb8] sm:$0xff] }
  0x1e   : > { %2733 = vmatpush3.msra.mxu0 %v3187_v25 }
  0x1f   : > { %2767 = vmatprep.subr.mxu0 %v3004_v1  ;;  %v431_v37 = vadd.f32 %v430_v32, %v429_v34  ;;  %v460_v34 = vsel %vm416_vm1, %v3271_v26, 0.0 }
  0x21   : > { %v433_v40 = vadd.f32 %v432_v35, %v431_v37  ;;  %v3281_v35 = vld [vmem:[%s3124_s23 + $0xc0] sm:$0xff] }
  0x23   : > { %v435_v43 = vadd.f32 %v434_v38, %v433_v40  ;;  %v462_v38 = vsel %vm416_vm1, %v3276_v31, 0.0  ;;  %v3286_v40 = vld [vmem:[%s3124_s23 + $0xc8] sm:$0xff] }
  0x25   : > { %v437_v46 = vadd.f32 %v436_v41, %v435_v43  ;;  %v464_v43 = vsel %vm416_vm1, %v3281_v35, 0.0 }
  0x27   : > { %v439_v49 = vadd.f32 %v438_v44, %v437_v46  ;;  %v3291_v44 = vld [vmem:[%s3124_s23 + $0xd0] sm:$0xff] }
  0x29   : > { %v441_v52 = vadd.f32 %v440_v47, %v439_v49  ;;  %v466_v47 = vsel %vm416_vm1, %v3286_v40, 0.0  ;;  %v3296_v49 = vld [vmem:[%s3124_s23 + $0xd8] sm:$0xff] }
  0x2b   : > { %v443_v55 = vadd.f32 %v442_v50, %v441_v52  ;;  %v468_v52 = vsel %vm416_vm1, %v3291_v44, 0.0 }
  0x2d   : > { %v445_v58 = vadd.f32 %v444_v53, %v443_v55  ;;  %v3301_v53 = vld [vmem:[%s3124_s23 + $0xe0] sm:$0xff] }
  0x2f   : > { %v447_v61 = vadd.f32 %v446_v56, %v445_v58  ;;  %v470_v56 = vsel %vm416_vm1, %v3296_v49, 0.0  ;;  %v3306_v58 = vld [vmem:[%s3124_s23 + $0xe8] sm:$0xff] }
  0x31   : > { %v449_v12 = vadd.f32 %v448_v59, %v447_v61  ;;  %v472_v61 = vsel %vm416_vm1, %v3301_v53, 0.0 }
  0x33   : > { %v451_v16 = vadd.f32 %v450_v62, %v449_v12  ;;  %v3311_v62 = vld [vmem:[%s3124_s23 + $0xf0] sm:$0xff] }
  0x35   : > { %v453_v22 = vadd.f32 %v452_v13, %v451_v16  ;;  %v474_v13 = vsel %vm416_vm1, %v3306_v58, 0.0  ;;  %v3316_v16 = vld [vmem:[%s3124_s23 + $0xf8] sm:$0xff]  ;;  %s3596_s23 = scalar_lea.vmem %s4105_s3, %s2906_s20 }
  0x37   : > { %v455_v28 = vadd.f32 %v454_v18, %v453_v22  ;;  %v476_v22 = vsel %vm416_vm1, %v3311_v62, 0.0 }
  0x39   : > { %v457_v32 = vadd.f32 %v456_v24, %v455_v28  ;;  %v478_v28 = vsel %vm416_vm1, %v3316_v16, 0.0 }
  0x3b   : > { %v459_v37 = vadd.f32 %v458_v29, %v457_v32 }
  0x3d   : > { %v461_v41 = vadd.f32 %v460_v34, %v459_v37 }
  0x3f   : > { %v463_v46 = vadd.f32 %v462_v38, %v461_v41 }
  0x41   : > { %v465_v50 = vadd.f32 %v464_v43, %v463_v46 }
  0x43   : > { %v467_v55 = vadd.f32 %v466_v47, %v465_v50  ;;  %v569_v47 = vld [vmem:[%s4104_s2 + $0x8] sm:$0xff] }
  0x44   : > { %2742 = vmatpush3.msra.mxu1 %v569_v47 }
  0x45   : > { %v469_v59 = vadd.f32 %v468_v52, %v467_v55  ;;  %2743 = vmatprep.subr.mxu1 %v3004_v1 }
  0x47   : > { %v471_v12 = vadd.f32 %v470_v56, %v469_v59 }
  0x49   : > { %v473_v18 = vadd.f32 %v472_v61, %v471_v12 }
  0x4b   : > { %v475_v24 = vadd.f32 %v474_v13, %v473_v18 }
  0x4d   : > { %v477_v29 = vadd.f32 %v476_v22, %v475_v24 }
  0x4f   : > { %v479_v32 = vadd.f32 %v478_v28, %v477_v29 }
  0x51   : > { %v480_v34 = vrot.slane %v479_v32, 4 }
  0x53   : > { %v481_v37 = vadd.f32 %v480_v34, %v479_v32 }
  0x55   : > { %v482_v38 = vrot.slane %v481_v37, 2 }
  0x57   : > { %v483_v41 = vadd.f32 %v482_v38, %v481_v37 }
  0x59   : > { %v484_v43 = vrot.slane %v483_v41, 1 }
  0x5b   : > { %v485_v46 = vadd.f32 %v484_v43, %v483_v41 }
  0x5d   : > { %2735 = vmatmul.mubr.msk.f32.vlgmr.msra.gmra.mxu0 %vm416_vm1, %v485_v46 }
  0x5e   : > { %2768 = vmatpush3.msra.mxu0 %v3098_v3  ;;  %2775 = vmatprep.mubr.msk.f32.mxu0 %vm3005_vm0, %v3004_v1  ;;  %v568_v3 = vld [vmem:[%s4104_s2] sm:$0xff] }
  0x5f   : > { %2769 = vmatprep.subr.mxu0 %v3004_v1  ;;  %2744 = vmatpush3.msra.mxu1 %v568_v3 }
  0x60   : > { %2770 = vmatpush3.msra.mxu0 %v3110_v5  ;;  %2748 = vmatprep.subr.mxu1 %v3004_v1 }
  0x61   : > { %2771 = vmatprep.subr.mxu0 %v3004_v1 }
  0x62   : > { %2772 = vmatpush3.msra.mxu0 %v569_v47 }
  0x63   : > { %2773 = vmatprep.subr.mxu0 %v3004_v1 }
  0x64   : > { %2774 = vmatpush3.msra.mxu0 %v568_v3 }
 0x11d   : > { %v563_v5 = vpop.f32.mrf.mxu0 }
 0x11e   : > { %v567_v50 = vmul.f32 0.001953125, %v563_v5 }
 0x11f   : > { %v2736_v52 = vpop.f32.mrf.mxu0 }
 0x120   : > { %2746 = vmatmul.mubr.msk.f32.vlgmr.msra.gmra.mxu1 %vm572_vm2, %v567_v50 }
 0x121   : > { %2749 = vmatpush3.msra.mxu1 %v3081_v0  ;;  %2764 = vmatprep.mubr.msk.f32.mxu1 %vm3005_vm0, %v3004_v1  ;;  %v646_v0 = vlaneseq }
 0x122   : > { %2750 = vmatprep.subr.mxu1 %v3004_v1 }
 0x123   : > { %2751 = vmatpush3.msra.mxu1 %v3087_v2  ;;  %v3356_v2 = vshrl.u32 %v646_v0, 7 }
 0x124   : > { %2752 = vmatprep.subr.mxu1 %v3004_v1 }
 0x125   : > { %2753 = vmatpush3.msra.mxu1 %v3104_v4  ;;  %v648_v55 = vsub.s32 0, %v3356_v2 }
 0x126   : > { %2754 = vmatprep.subr.mxu1 %v3004_v1 }
 0x127   : > { %2755 = vmatpush3.msra.mxu1 %v3119_v6 }
 0x128   : > { %2756 = vmatprep.subr.mxu1 %v3004_v1 }
 0x129   : > { %2757 = vmatpush3.msra.mxu1 %v3142_v10 }
 0x12a   : > { %2758 = vmatprep.subr.mxu1 %v3004_v1 }
 0x12b   : > { %2759 = vmatpush3.msra.mxu1 %v3163_v17 }
 0x12c   : > { %2760 = vmatprep.subr.mxu1 %v3004_v1 }
 0x12d   : > { %2761 = vmatpush3.msra.mxu1 %v3175_v21 }
 0x12e   : > { %2762 = vmatprep.subr.mxu1 %v3004_v1 }
 0x12f   : > { %2763 = vmatpush3.msra.mxu1 %v3187_v25 }
 0x1e0   : > { %v642_v4 = vpop.f32.mrf.mxu1 }
 0x1e1   : > { %v3361_v10 = vrot.slane %v642_v4, %v648_v55 }
 0x1e2   : > { %v2747_v6 = vpop.f32.mrf.mxu1 }
 0x1e3   : > { %v3365_v17 = vsub.f32 %v3129_v7, %v3361_v10  ;;  %v3369_v1 = vsub.f32 %v3132_v8, %v3361_v10  ;;  %v3373_v21 = vsub.f32 %v3135_v9, %v3361_v10  ;;  %v3377_v25 = vsub.f32 %v3145_v11, %v3361_v10 }
 0x1e4   : > { %v3385_v7 = vsub.f32 %v3157_v15, %v3361_v10  ;;  %v3391_v9 = vsub.f32 %v3169_v19, %v3361_v10  ;;  %v3399_v18 = vsub.f32 %v3181_v23, %v3361_v10  ;;  %v3406_v19 = vsub.f32 %v3193_v27, %v3361_v10 }
 0x1e5   : > { %v682_v56 = vmul.f32 %v3365_v17, %v3365_v17  ;;  %v683_v59 = vmul.f32 %v3369_v1, %v3369_v1  ;;  %v684_v8 = vmul.f32 %v3373_v21, %v3373_v21  ;;  %v685_v11 = vmul.f32 %v3377_v25, %v3377_v25 }
 0x1e6   : > { %v686_v15 = vmul.f32 %v3385_v7, %v3385_v7  ;;  %v687_v28 = vmul.f32 %v3391_v9, %v3391_v9  ;;  %v3413_v23 = vsub.f32 %v3200_v30, %v3361_v10  ;;  %v688_v34 = vmul.f32 %v3399_v18, %v3399_v18 }
 0x1e7   : > { %v714_v61 = vsel %vm416_vm1, %v682_v56, 0.0  ;;  %v715_v12 = vsel %vm416_vm1, %v683_v59, 0.0  ;;  %v717_v22 = vsel %vm416_vm1, %v684_v8, 0.0  ;;  %v719_v29 = vsel %vm416_vm1, %v685_v11, 0.0 }
 0x1e8   : > { %v716_v13 = vadd.f32 %v715_v12, %v714_v61  ;;  %v721_v37 = vsel %vm416_vm1, %v686_v15, 0.0  ;;  %v3420_v27 = vsub.f32 %v3206_v33, %v3361_v10  ;;  %v689_v41 = vmul.f32 %v3406_v19, %v3406_v19 }
 0x1e9   : > { %v723_v43 = vsel %vm416_vm1, %v687_v28, 0.0  ;;  %v3427_v30 = vsub.f32 %v3211_v36, %v3361_v10  ;;  %v690_v47 = vmul.f32 %v3413_v23, %v3413_v23  ;;  %v725_v3 = vsel %vm416_vm1, %v688_v34, 0.0 }
 0x1ea   : > { %v718_v24 = vadd.f32 %v717_v22, %v716_v13  ;;  %v3434_v33 = vsub.f32 %v3216_v39, %v3361_v10  ;;  %v691_v50 = vmul.f32 %v3420_v27, %v3420_v27  ;;  %v727_v52 = vsel %vm416_vm1, %v689_v41, 0.0 }
 0x1eb   : > { %v3441_v36 = vsub.f32 %v3221_v42, %v3361_v10  ;;  %v692_v4 = vmul.f32 %v3427_v30, %v3427_v30  ;;  %v729_v6 = vsel %vm416_vm1, %v690_v47, 0.0  ;;  %v3448_v39 = vsub.f32 %v3226_v45, %v3361_v10 }
 0x1ec   : > { %v720_v32 = vadd.f32 %v719_v29, %v718_v24  ;;  %v693_v59 = vmul.f32 %v3434_v33, %v3434_v33  ;;  %v731_v8 = vsel %vm416_vm1, %v691_v50, 0.0  ;;  %v3455_v42 = vsub.f32 %v3231_v48, %v3361_v10 }
 0x1ed   : > { %v694_v61 = vmul.f32 %v3441_v36, %v3441_v36  ;;  %v733_v12 = vsel %vm416_vm1, %v692_v4, 0.0  ;;  %v3462_v45 = vsub.f32 %v3236_v51, %v3361_v10  ;;  %v695_v15 = vmul.f32 %v3448_v39, %v3448_v39 }
 0x1ee   : > { %v722_v38 = vadd.f32 %v721_v37, %v720_v32  ;;  %v735_v22 = vsel %vm416_vm1, %v693_v59, 0.0  ;;  %v3469_v48 = vsub.f32 %v3241_v54, %v3361_v10  ;;  %v696_v28 = vmul.f32 %v3455_v42, %v3455_v42 }
 0x1ef   : > { %v737_v29 = vsel %vm416_vm1, %v694_v61, 0.0  ;;  %v3476_v51 = vsub.f32 %v3246_v57, %v3361_v10  ;;  %v697_v34 = vmul.f32 %v3462_v45, %v3462_v45  ;;  %v739_v37 = vsel %vm416_vm1, %v695_v15, 0.0 }
 0x1f0   : > { %v724_v46 = vadd.f32 %v723_v43, %v722_v38  ;;  %v3483_v54 = vsub.f32 %v3251_v60, %v3361_v10  ;;  %v698_v41 = vmul.f32 %v3469_v48, %v3469_v48  ;;  %v741_v43 = vsel %vm416_vm1, %v696_v28, 0.0 }
 0x1f1   : > { %v3490_v57 = vsub.f32 %v3256_v63, %v3361_v10  ;;  %v699_v47 = vmul.f32 %v3476_v51, %v3476_v51  ;;  %v3497_v60 = vsub.f32 %v3261_v14, %v3361_v10  ;;  %v3504_v63 = vsub.f32 %v3266_v20, %v3361_v10 }
 0x1f2   : > { %v726_v5 = vadd.f32 %v725_v3, %v724_v46  ;;  %v743_v3 = vsel %vm416_vm1, %v697_v34, 0.0  ;;  %v700_v50 = vmul.f32 %v3483_v54, %v3483_v54  ;;  %v3511_v14 = vsub.f32 %v3271_v26, %v3361_v10 }
 0x1f3   : > { %v701_v4 = vmul.f32 %v3490_v57, %v3490_v57  ;;  %v702_v59 = vmul.f32 %v3497_v60, %v3497_v60  ;;  %v3518_v20 = vsub.f32 %v3276_v31, %v3361_v10  ;;  %v703_v61 = vmul.f32 %v3504_v63, %v3504_v63 }
 0x1f4   : > { %v728_v0 = vadd.f32 %v727_v52, %v726_v5  ;;  %v745_v52 = vsel %vm416_vm1, %v698_v41, 0.0  ;;  %v3525_v26 = vsub.f32 %v3281_v35, %v3361_v10  ;;  %v704_v15 = vmul.f32 %v3511_v14, %v3511_v14 }
 0x1f5   : > { %v3532_v31 = vsub.f32 %v3286_v40, %v3361_v10  ;;  %v705_v28 = vmul.f32 %v3518_v20, %v3518_v20  ;;  %v3539_v35 = vsub.f32 %v3291_v44, %v3361_v10  ;;  %v3546_v40 = vsub.f32 %v3296_v49, %v3361_v10 }
 0x1f6   : > { %v730_v56 = vadd.f32 %v729_v6, %v728_v0  ;;  %v747_v6 = vsel %vm416_vm1, %v699_v47, 0.0  ;;  %v706_v34 = vmul.f32 %v3525_v26, %v3525_v26  ;;  %v3553_v44 = vsub.f32 %v3301_v53, %v3361_v10 }
 0x1f7   : > { %v707_v41 = vmul.f32 %v3532_v31, %v3532_v31  ;;  %v708_v47 = vmul.f32 %v3539_v35, %v3539_v35  ;;  %v3560_v49 = vsub.f32 %v3306_v58, %v3361_v10  ;;  %v3567_v53 = vsub.f32 %v3311_v62, %v3361_v10 }
 0x1f8   : > { %v732_v11 = vadd.f32 %v731_v8, %v730_v56  ;;  %v749_v8 = vsel %vm416_vm1, %v700_v50, 0.0  ;;  %v709_v50 = vmul.f32 %v3546_v40, %v3546_v40  ;;  %v3574_v58 = vsub.f32 %v3316_v16, %v3361_v10 }
 0x1f9   : > { %v712_v62 = vmul.f32 %v3567_v53, %v3567_v53 }
 0x1fa   : > { %v734_v13 = vadd.f32 %v733_v12, %v732_v11  ;;  %v751_v12 = vsel %vm416_vm1, %v701_v4, 0.0  ;;  %v710_v4 = vmul.f32 %v3553_v44, %v3553_v44 }
 0x1fc   : > { %v736_v24 = vadd.f32 %v735_v22, %v734_v13  ;;  %v753_v22 = vsel %vm416_vm1, %v702_v59, 0.0  ;;  %v711_v59 = vmul.f32 %v3560_v49, %v3560_v49 }
 0x1fe   : > { %v738_v32 = vadd.f32 %v737_v29, %v736_v24  ;;  %v755_v29 = vsel %vm416_vm1, %v703_v61, 0.0  ;;  %v769_v61 = vsel %vm416_vm1, %v710_v4, 0.0  ;;  %v771_v16 = vsel %vm416_vm1, %v711_v59, 0.0  ;;  %v2953_v4 = vld [vmem:[%s3596_s23] sm:$0xff]  }
 0x200   : > { %v740_v38 = vadd.f32 %v739_v37, %v738_v32  ;;  %v757_v37 = vsel %vm416_vm1, %v704_v15, 0.0  ;;  %v773_v15 = vsel %vm416_vm1, %v712_v62, 0.0 }
 0x202   : > { %v742_v46 = vadd.f32 %v741_v43, %v740_v38  ;;  %v759_v43 = vsel %vm416_vm1, %v705_v28, 0.0 }
 0x204   : > { %v744_v5 = vadd.f32 %v743_v3, %v742_v46  ;;  %v761_v3 = vsel %vm416_vm1, %v706_v34, 0.0 }
 0x206   : > { %v746_v0 = vadd.f32 %v745_v52, %v744_v5  ;;  %v763_v52 = vsel %vm416_vm1, %v707_v41, 0.0 }
 0x208   : > { %v748_v56 = vadd.f32 %v747_v6, %v746_v0  ;;  %v765_v6 = vsel %vm416_vm1, %v708_v47, 0.0  ;;  %v2952_v47 = vld [vmem:[%s3596_s23 + $0x8] sm:$0xff]  }
 0x20a   : > { %v750_v11 = vadd.f32 %v749_v8, %v748_v56  ;;  %v767_v8 = vsel %vm416_vm1, %v709_v50, 0.0 }
 0x20c   : > { %v752_v13 = vadd.f32 %v751_v12, %v750_v11 }
 0x20e   : > { %v754_v24 = vadd.f32 %v753_v22, %v752_v13  ;;  %v713_v13 = vmul.f32 %v3574_v58, %v3574_v58 }
 0x210   : > { %v756_v32 = vadd.f32 %v755_v29, %v754_v24  ;;  %v775_v24 = vsel %vm416_vm1, %v713_v13, 0.0 }
 0x212   : > { %v758_v38 = vadd.f32 %v757_v37, %v756_v32 }
 0x214   : > { %v760_v46 = vadd.f32 %v759_v43, %v758_v38  ;;  %v2950_v43 = vld [vmem:[%s3596_s23 + $0x18] sm:$0xff]  }
 0x215   : > { %2778 = vmatprep.subr.bf16.mxu0 %v2950_v43  ;;  %2898 = vmatprep.subr.bf16.mxu1 %v2950_v43 }
 0x216   : > { %v762_v5 = vadd.f32 %v761_v3, %v760_v46  ;;  %v2951_v46 = vld [vmem:[%s3596_s23 + $0x10] sm:$0xff]  }
 0x218   : > { %v764_v0 = vadd.f32 %v763_v52, %v762_v5 }
 0x21a   : > { %v766_v56 = vadd.f32 %v765_v6, %v764_v0  ;;  %v2954_v6 = vld [vmem:[%s3596_s23 + $0x38] sm:$0xff]  }
 0x21c   : > { %v768_v11 = vadd.f32 %v767_v8, %v766_v56  ;;  %v2955_v56 = vld [vmem:[%s3596_s23 + $0x58] sm:$0xff]  }
 0x21e   : > { %v770_v12 = vadd.f32 %v769_v61, %v768_v11 }
 0x220   : > { %v772_v10 = vadd.f32 %v771_v16, %v770_v12 }
 0x222   : > { %v774_v22 = vadd.f32 %v773_v15, %v772_v10 }
 0x224   : > { %v776_v28 = vadd.f32 %v775_v24, %v774_v22 }
 0x226   : > { %v777_v29 = vrot.slane %v776_v28, 4 }
 0x228   : > { %v778_v32 = vadd.f32 %v777_v29, %v776_v28 }
 0x22a   : > { %v779_v34 = vrot.slane %v778_v32, 2 }
 0x22c   : > { %v780_v37 = vadd.f32 %v779_v34, %v778_v32  ;;  %v2959_v32 = vld [vmem:[%s3596_s23 + $0x48] sm:$0xff]  }
 0x22e   : > { %v781_v38 = vrot.slane %v780_v37, 1 }
 0x230   : > { %v782_v41 = vadd.f32 %v781_v38, %v780_v37 }
 0x232   : > { %2765 = vmatmul.mubr.msk.f32.vlgmr.msra.gmra.mxu1 %vm416_vm1, %v782_v41  ;;  %v2960_v41 = vld [vmem:[%s3596_s23 + $0x20] sm:$0xff]  }
 0x233   : > { %2902 = vmatpush3.bf16.msra.mxu1 %v2950_v43 }
 0x234   : > { %2899 = vmatprep.subr.bf16.mxu1 %v2951_v46 }
 0x237   : > { %2903 = vmatpush3.bf16.msra.mxu1 %v2951_v46 }
 0x238   : > { %2900 = vmatprep.subr.bf16.mxu1 %v2952_v47 }
 0x23b   : > { %2904 = vmatpush3.bf16.msra.mxu1 %v2952_v47 }
 0x23c   : > { %2901 = vmatprep.subr.bf16.mxu1 %v2953_v4 }
 0x23f   : > { %2905 = vmatpush3.bf16.msra.mxu1 %v2953_v4 }
 0x240   : > { %2818 = vmatprep.subr.bf16.mxu1 %v2954_v6 }
 0x2f2   : > { %v852_v3 = vpop.f32.mrf.mxu1 }
 0x2f3   : > { %v856_v5 = vmul.f32 0.001953125, %v852_v3 }
 0x2f4   : > { %v2766_v50 = vpop.f32.mrf.mxu1 }
 0x2f5   : > { %v857_v52 = vadd.f32 1e-05, %v856_v5 }
 0x2f7   : > { %2962 = vrsqrt.f32 %v857_v52 }
 0x304   : > { %v2963_v0 = vpop.eup %2962 }
 0x305   : > { %2776 = vmatmul.mubr.msk.f32.vlgmr.msra.gmra.mxu0 %vm572_vm2, %v2963_v0 }
 0x306   : > { %2779 = vmatpush3.bf16.msra.mxu0 %v2950_v43  ;;  %v2961_v43 = vld [vmem:[%s3596_s23 + $0x40] sm:$0xff]  }
 0x307   : > { %2780 = vmatprep.subr.bf16.mxu0 %v2951_v46 }
 0x30a   : > { %2781 = vmatpush3.bf16.msra.mxu0 %v2951_v46 }
 0x30b   : > { %2782 = vmatprep.subr.bf16.mxu0 %v2952_v47 }
 0x30e   : > { %2783 = vmatpush3.bf16.msra.mxu0 %v2952_v47 }
 0x30f   : > { %2784 = vmatprep.subr.bf16.mxu0 %v2953_v4 }
 0x312   : > { %2785 = vmatpush3.bf16.msra.mxu0 %v2953_v4 }
 0x313   : > { %2858 = vmatprep.subr.bf16.mxu0 %v2955_v56 }
 0x3c5   : > { %v928_v59 = vpop.f32.mrf.mxu0 }
 0x3c6   : > { %v3607_v8 = vrot.slane %v928_v59, %v648_v55 }
 0x3c7   : > { %v2777_v11 = vpop.f32.mrf.mxu0 }
 0x3c8   : > { %v936_v62 = vmul.f32 %v3607_v8, %v3365_v17  ;;  %v937_v61 = vmul.f32 %v3607_v8, %v3369_v1  ;;  %v952_v12 = vmul.f32 %v3607_v8, %v3469_v48  ;;  %v953_v13 = vmul.f32 %v3607_v8, %v3476_v51 }
 0x3c9   : > { %v938_v2 = vmul.f32 %v3607_v8, %v3373_v21  ;;  %v939_v55 = vmul.f32 %v3607_v8, %v3377_v25  ;;  %v954_v17 = vmul.f32 %v3607_v8, %v3483_v54  ;;  %v955_v1 = vmul.f32 %v3607_v8, %v3490_v57 }
 0x3ca   : > { %v3625_v16 = vpack.c.bf16 %v937_v61, %v936_v62  ;;  %v3627_v48 = vpack.c.bf16 %v953_v13, %v952_v12  ;;  %v940_v51 = vmul.f32 %v3607_v8, %v3385_v7  ;;  %v941_v10 = vmul.f32 %v3607_v8, %v3391_v9  ;;  %v2956_v7 = vld [vmem:[%s3596_s23 + $0x30] sm:$0xff]  }
 0x3cb   : > { %v3633_v21 = vpack.c.bf16 %v939_v55, %v938_v2  ;;  %v3635_v15 = vpack.c.bf16 %v955_v1, %v954_v17  ;;  %v956_v25 = vmul.f32 %v3607_v8, %v3497_v60  ;;  %v957_v54 = vmul.f32 %v3607_v8, %v3504_v63  ;;  %v2957_v9 = vld [vmem:[%s3596_s23 + $0x50] sm:$0xff]  }
 0x3cc   : > { %2786 = vmatprep.mubr.msk.bf16.mxu0 %vm416_vm1, %v3625_v16  ;;  %2802 = vmatprep.mubr.msk.bf16.mxu1 %vm416_vm1, %v3627_v48  ;;  %v3651_v57 = vpack.c.bf16 %v941_v10, %v940_v51  ;;  %v942_v63 = vmul.f32 %v3607_v8, %v3399_v18  ;;  %v943_v22 = vmul.f32 %v3607_v8, %v3406_v19  ;;  %v2958_v18 = vld [vmem:[%s3596_s23 + $0x28] sm:$0xff]  }
 0x3cd   : > { %2787 = vmatmul.mubr.msk.bf16.vlgmr.msra.gmra.mxu0 %vm416_vm1, %v3633_v21  ;;  %2803 = vmatmul.mubr.msk.bf16.vlgmr.msra.gmra.mxu1 %vm416_vm1, %v3635_v15  ;;  %v3653_v60 = vpack.c.bf16 %v957_v54, %v956_v25  ;;  %v958_v24 = vmul.f32 %v3607_v8, %v3511_v14  ;;  %v959_v28 = vmul.f32 %v3607_v8, %v3518_v20 }
 0x3ce   : > { %2819 = vmatpush3.bf16.msra.mxu1 %v2954_v6  ;;  %2859 = vmatpush3.bf16.msra.mxu0 %v2955_v56  ;;  %v944_v29 = vmul.f32 %v3607_v8, %v3413_v23  ;;  %v945_v19 = vmul.f32 %v3607_v8, %v3420_v27  ;;  %v960_v34 = vmul.f32 %v3607_v8, %v3525_v26 }
 0x3cf   : > { %2790 = vmatprep.mubr.msk.bf16.mxu0 %vm416_vm1, %v3651_v57  ;;  %2806 = vmatprep.mubr.msk.bf16.mxu1 %vm416_vm1, %v3653_v60  ;;  %v961_v14 = vmul.f32 %v3607_v8, %v3532_v31  ;;  %v971_v20 = vpack.c.bf16 %v943_v22, %v942_v63  ;;  %v3677_v37 = vpack.c.bf16 %v959_v28, %v958_v24 }
 0x3d0   : > { %2820 = vmatprep.subr.bf16.mxu1 %v2956_v7  ;;  %2860 = vmatprep.subr.bf16.mxu0 %v2957_v9  ;;  %v972_v23 = vpack.c.bf16 %v945_v19, %v944_v29  ;;  %v946_v27 = vmul.f32 %v3607_v8, %v3427_v30  ;;  %v947_v26 = vmul.f32 %v3607_v8, %v3434_v33 }
 0x3d1   : > { %v980_v38 = vpack.c.bf16 %v961_v14, %v960_v34  ;;  %v962_v31 = vmul.f32 %v3607_v8, %v3539_v35  ;;  %v963_v46 = vmul.f32 %v3607_v8, %v3546_v40  ;;  %v948_v47 = vmul.f32 %v3607_v8, %v3441_v36 }
 0x3d2   : > { %2821 = vmatpush3.bf16.msra.mxu1 %v2956_v7  ;;  %2861 = vmatpush3.bf16.msra.mxu0 %v2957_v9  ;;  %v949_v3 = vmul.f32 %v3607_v8, %v3448_v39  ;;  %v964_v30 = vmul.f32 %v3607_v8, %v3553_v44  ;;  %v965_v33 = vmul.f32 %v3607_v8, %v3560_v49 }
 0x3d3   : > { %2822 = vmatprep.subr.bf16.mxu1 %v2958_v18  ;;  %2862 = vmatprep.subr.bf16.mxu0 %v2959_v32  ;;  %v973_v35 = vpack.c.bf16 %v947_v26, %v946_v27  ;;  %v981_v5 = vpack.c.bf16 %v963_v46, %v962_v31  ;;  %v950_v36 = vmul.f32 %v3607_v8, %v3455_v42  ;;  %v3771_v42 = vld [vmem:[%s3768_s13] ss:$0 sm:$0xff] }
 0x3d4   : > { %v974_v40 = vpack.c.bf16 %v949_v3, %v948_v47  ;;  %v982_v50 = vpack.c.bf16 %v965_v33, %v964_v30  ;;  %v951_v39 = vmul.f32 %v3607_v8, %v3462_v45  ;;  %v966_v44 = vmul.f32 %v3607_v8, %v3567_v53 }
 0x3d5   : > { %2791 = vmatmul.mubr.msk.bf16.gmra.mxu0 %vm416_vm1, %v971_v20  ;;  %2807 = vmatmul.mubr.msk.bf16.gmra.mxu1 %vm416_vm1, %v3677_v37  ;;  %v967_v49 = vmul.f32 %v3607_v8, %v3574_v58 }
 0x3d6   : > { %2794 = vmatprep.mubr.msk.bf16.mxu0 %vm416_vm1, %v972_v23  ;;  %2810 = vmatprep.mubr.msk.bf16.mxu1 %vm416_vm1, %v980_v38  ;;  %v975_v52 = vpack.c.bf16 %v951_v39, %v950_v36 }
 0x3d7   : > { %2823 = vmatpush3.bf16.msra.mxu1 %v2958_v18  ;;  %2863 = vmatpush3.bf16.msra.mxu0 %v2959_v32  ;;  %v983_v0 = vpack.c.bf16 %v967_v49, %v966_v44 }
 0x3d8   : > { %2824 = vmatprep.subr.bf16.mxu1 %v2960_v41  ;;  %2864 = vmatprep.subr.bf16.mxu0 %v2961_v43 }
 0x3db   : > { %2825 = vmatpush3.bf16.msra.mxu1 %v2960_v41  ;;  %2865 = vmatpush3.bf16.msra.mxu0 %v2961_v43 }
 0x3dd   : > { %2795 = vmatmul.mubr.msk.bf16.gmra.mxu0 %vm416_vm1, %v973_v35  ;;  %2811 = vmatmul.mubr.msk.bf16.gmra.mxu1 %vm416_vm1, %v981_v5 }
 0x3de   : > { %2798 = vmatprep.mubr.msk.bf16.mxu0 %vm416_vm1, %v974_v40  ;;  %2814 = vmatprep.mubr.msk.bf16.mxu1 %vm416_vm1, %v982_v50 }
 0x3e5   : > { %2799 = vmatmul.mubr.msk.bf16.gmra.mxu0 %vm416_vm1, %v975_v52  ;;  %2815 = vmatmul.mubr.msk.bf16.gmra.mxu1 %vm416_vm1, %v983_v0 }
 0x3e6   : > { %2826 = vmatprep.mubr.msk.bf16.mxu1 %vm416_vm1, %v3625_v16  ;;  %2866 = vmatprep.mubr.msk.bf16.mxu0 %vm416_vm1, %v3625_v16 }
 0x3ed   : > { %2827 = vmatmul.mubr.msk.bf16.vlgmr.msra.gmra.mxu1 %vm416_vm1, %v3633_v21  ;;  %2867 = vmatmul.mubr.msk.bf16.vlgmr.msra.gmra.mxu0 %vm416_vm1, %v3633_v21 }
 0x3ee   : > { %2830 = vmatprep.mubr.msk.bf16.mxu1 %vm416_vm1, %v3651_v57  ;;  %2870 = vmatprep.mubr.msk.bf16.mxu0 %vm416_vm1, %v3651_v57 }
 0x3f5   : > { %2831 = vmatmul.mubr.msk.bf16.gmra.mxu1 %vm416_vm1, %v971_v20  ;;  %2871 = vmatmul.mubr.msk.bf16.gmra.mxu0 %vm416_vm1, %v971_v20 }
 0x3f6   : > { %2834 = vmatprep.mubr.msk.bf16.mxu1 %vm416_vm1, %v972_v23  ;;  %2874 = vmatprep.mubr.msk.bf16.mxu0 %vm416_vm1, %v972_v23 }
 0x3fd   : > { %2835 = vmatmul.mubr.msk.bf16.gmra.mxu1 %vm416_vm1, %v973_v35  ;;  %2875 = vmatmul.mubr.msk.bf16.gmra.mxu0 %vm416_vm1, %v973_v35 }
 0x3fe   : > { %2838 = vmatprep.mubr.msk.bf16.mxu1 %vm416_vm1, %v974_v40  ;;  %2878 = vmatprep.mubr.msk.bf16.mxu0 %vm416_vm1, %v974_v40 }
 0x405   : > { %2839 = vmatmul.mubr.msk.bf16.gmra.mxu1 %vm416_vm1, %v975_v52  ;;  %2879 = vmatmul.mubr.msk.bf16.gmra.mxu0 %vm416_vm1, %v975_v52 }
 0x406   : > { %2842 = vmatprep.mubr.msk.bf16.mxu1 %vm416_vm1, %v3627_v48  ;;  %2882 = vmatprep.mubr.msk.bf16.mxu0 %vm416_vm1, %v3627_v48 }
 0x40d   : > { %2843 = vmatmul.mubr.msk.bf16.gmra.mxu1 %vm416_vm1, %v3635_v15  ;;  %2883 = vmatmul.mubr.msk.bf16.gmra.mxu0 %vm416_vm1, %v3635_v15 }
 0x40e   : > { %2846 = vmatprep.mubr.msk.bf16.mxu1 %vm416_vm1, %v3653_v60  ;;  %2886 = vmatprep.mubr.msk.bf16.mxu0 %vm416_vm1, %v3653_v60 }
 0x415   : > { %2847 = vmatmul.mubr.msk.bf16.gmra.mxu1 %vm416_vm1, %v3677_v37  ;;  %2887 = vmatmul.mubr.msk.bf16.gmra.mxu0 %vm416_vm1, %v3677_v37 }
 0x416   : > { %2850 = vmatprep.mubr.msk.bf16.mxu1 %vm416_vm1, %v980_v38  ;;  %2890 = vmatprep.mubr.msk.bf16.mxu0 %vm416_vm1, %v980_v38 }
 0x41d   : > { %2851 = vmatmul.mubr.msk.bf16.gmra.mxu1 %vm416_vm1, %v981_v5  ;;  %2891 = vmatmul.mubr.msk.bf16.gmra.mxu0 %vm416_vm1, %v981_v5 }
 0x41e   : > { %2854 = vmatprep.mubr.msk.bf16.mxu1 %vm416_vm1, %v982_v50  ;;  %2894 = vmatprep.mubr.msk.bf16.mxu0 %vm416_vm1, %v982_v50 }
 0x425   : > { %2855 = vmatmul.mubr.msk.bf16.gmra.mxu1 %vm416_vm1, %v983_v0  ;;  %2895 = vmatmul.mubr.msk.bf16.gmra.mxu0 %vm416_vm1, %v983_v0 }
 0x48d   : > { %v2788_v45 = vpop.f32.mrf.mxu0  ;;  %v2804_v53 = vpop.f32.mrf.mxu1 }
 0x48e   : > { %v1114_v58 = vadd.f32 %v2788_v45, %v3771_v42  ;;  %v1178_v4 = vadd.f32 %v2804_v53, %v3771_v42 }
 0x48f   : > { %v1105_v6 = vpop.f32.mrf.mxu0  ;;  %v1169_v56 = vpop.f32.mrf.mxu1 }
 0x490   : > { %v2536_v59 = vpack.c.bf16 %v1114_v58, %v1114_v58  ;;  %v2552_v8 = vpack.c.bf16 %v1178_v4, %v1178_v4  ;;  %v1106_v11 = vadd.f32 %v3771_v42, %v1105_v6  ;;  %v1170_v62 = vadd.f32 %v3771_v42, %v1169_v56 }
 0x491   : > { %v2789_v61 = vpop.f32.mrf.mxu0  ;;  %v2805_v12 = vpop.f32.mrf.mxu1 }
 0x492   : > { %1363 = vst.msk [vmem:[%s3781_s16 + $0x8] sm:$0xf] %vm1360_vm3, %v2536_v59  ;;  %1379 = vst.msk [vmem:[%s3781_s16 + $0x48] sm:$0xf] %vm1360_vm3, %v2552_v8  ;;  %v2534_v13 = vpack.c.bf16 %v1106_v11, %v1106_v11  ;;  %v2550_v2 = vpack.c.bf16 %v1170_v62, %v1170_v62  ;;  %v1117_v55 = vadd.f32 %v2789_v61, %v3771_v42 }
 0x493   : > { %v1181_v17 = vadd.f32 %v2805_v12, %v3771_v42  ;;  %v1108_v1 = vpop.f32.mrf.mxu0  ;;  %v1172_v16 = vpop.f32.mrf.mxu1 }
 0x494   : > { %1361 = vst.msk [vmem:[%s3781_s16] sm:$0xf] %vm1360_vm3, %v2534_v13  ;;  %1377 = vst.msk [vmem:[%s3781_s16 + $0x40] sm:$0xf] %vm1360_vm3, %v2550_v2  ;;  %v2537_v48 = vpack.c.bf16 %v1117_v55, %v1117_v55  ;;  %v1109_v10 = vadd.f32 %v3771_v42, %v1108_v1  ;;  %v1173_v21 = vadd.f32 %v3771_v42, %v1172_v16 }
 0x495   : > { %v2553_v51 = vpack.c.bf16 %v1181_v17, %v1181_v17  ;;  %v2792_v15 = vpop.f32.mrf.mxu0  ;;  %v2808_v25 = vpop.f32.mrf.mxu1 }
 0x496   : > { %1364 = vst.msk [vmem:[%s3781_s16 + $0xc] sm:$0xf] %vm1360_vm3, %v2537_v48  ;;  %v2535_v54 = vpack.c.bf16 %v1109_v10, %v1109_v10  ;;  %v2551_v7 = vpack.c.bf16 %v1173_v21, %v1173_v21  ;;  %v1130_v9 = vadd.f32 %v2792_v15, %v3771_v42  ;;  %v1194_v57 = vadd.f32 %v2808_v25, %v3771_v42 }
 0x497   : > { %1380 = vst.msk [vmem:[%s3781_s16 + $0x4c] sm:$0xf] %vm1360_vm3, %v2553_v51  ;;  %v1121_v60 = vpop.f32.mrf.mxu0  ;;  %v1185_v63 = vpop.f32.mrf.mxu1 }
 0x498   : > { %1362 = vst.msk [vmem:[%s3781_s16 + $0x4] sm:$0xf] %vm1360_vm3, %v2535_v54  ;;  %1378 = vst.msk [vmem:[%s3781_s16 + $0x44] sm:$0xf] %vm1360_vm3, %v2551_v7  ;;  %v2540_v22 = vpack.c.bf16 %v1130_v9, %v1130_v9  ;;  %v2556_v24 = vpack.c.bf16 %v1194_v57, %v1194_v57  ;;  %v1122_v28 = vadd.f32 %v3771_v42, %v1121_v60  ;;  %v3864_v57 = vld [vmem:[%s3768_s13 + $0x1] ss:$0 sm:$0xff] }
 0x499   : > { %v1186_v29 = vadd.f32 %v3771_v42, %v1185_v63  ;;  %v2793_v18 = vpop.f32.mrf.mxu0  ;;  %v2809_v32 = vpop.f32.mrf.mxu1  ;;  %v3867_v60 = vld [vmem:[%s3768_s13 + $0x2] ss:$0 sm:$0xff] }
 0x49a   : > { %1367 = vst.msk [vmem:[%s3781_s16 + $0x18] sm:$0xf] %vm1360_vm3, %v2540_v22  ;;  %1383 = vst.msk [vmem:[%s3781_s16 + $0x58] sm:$0xf] %vm1360_vm3, %v2556_v24  ;;  %v2538_v19 = vpack.c.bf16 %v1122_v28, %v1122_v28  ;;  %v1133_v14 = vadd.f32 %v2793_v18, %v3771_v42  ;;  %v1197_v20 = vadd.f32 %v2809_v32, %v3771_v42 }
 0x49b   : > { %v2554_v34 = vpack.c.bf16 %v1186_v29, %v1186_v29  ;;  %v1124_v37 = vpop.f32.mrf.mxu0  ;;  %v1188_v23 = vpop.f32.mrf.mxu1 }
 0x49c   : > { %1365 = vst.msk [vmem:[%s3781_s16 + $0x10] sm:$0xf] %vm1360_vm3, %v2538_v19  ;;  %v2541_v38 = vpack.c.bf16 %v1133_v14, %v1133_v14  ;;  %v2557_v41 = vpack.c.bf16 %v1197_v20, %v1197_v20  ;;  %v1125_v43 = vadd.f32 %v3771_v42, %v1124_v37  ;;  %v1189_v27 = vadd.f32 %v3771_v42, %v1188_v23 }
 0x49d   : > { %1381 = vst.msk [vmem:[%s3781_s16 + $0x50] sm:$0xf] %vm1360_vm3, %v2554_v34  ;;  %v2796_v26 = vpop.f32.mrf.mxu0  ;;  %v2812_v31 = vpop.f32.mrf.mxu1 }
 0x49e   : > { %1368 = vst.msk [vmem:[%s3781_s16 + $0x1c] sm:$0xf] %vm1360_vm3, %v2541_v38  ;;  %1384 = vst.msk [vmem:[%s3781_s16 + $0x5c] sm:$0xf] %vm1360_vm3, %v2557_v41  ;;  %v2539_v46 = vpack.c.bf16 %v1125_v43, %v1125_v43  ;;  %v2555_v47 = vpack.c.bf16 %v1189_v27, %v1189_v27  ;;  %v1146_v3 = vadd.f32 %v2796_v26, %v3771_v42 }
 0x49f   : > { %v1210_v30 = vadd.f32 %v2812_v31, %v3771_v42  ;;  %v1137_v33 = vpop.f32.mrf.mxu0  ;;  %v1201_v35 = vpop.f32.mrf.mxu1 }
 0x4a0   : > { %1366 = vst.msk [vmem:[%s3781_s16 + $0x14] sm:$0xf] %vm1360_vm3, %v2539_v46  ;;  %1382 = vst.msk [vmem:[%s3781_s16 + $0x54] sm:$0xf] %vm1360_vm3, %v2555_v47  ;;  %v2544_v5 = vpack.c.bf16 %v1146_v3, %v1146_v3  ;;  %v1138_v50 = vadd.f32 %v3771_v42, %v1137_v33  ;;  %v1202_v36 = vadd.f32 %v3771_v42, %v1201_v35 }
 0x4a1   : > { %v2560_v40 = vpack.c.bf16 %v1210_v30, %v1210_v30  ;;  %v2797_v39 = vpop.f32.mrf.mxu0  ;;  %v2813_v44 = vpop.f32.mrf.mxu1 }
 0x4a2   : > { %1371 = vst.msk [vmem:[%s3781_s16 + $0x28] sm:$0xf] %vm1360_vm3, %v2544_v5  ;;  %v2542_v49 = vpack.c.bf16 %v1138_v50, %v1138_v50  ;;  %v2558_v52 = vpack.c.bf16 %v1202_v36, %v1202_v36  ;;  %v1149_v0 = vadd.f32 %v2797_v39, %v3771_v42  ;;  %v1213_v45 = vadd.f32 %v2813_v44, %v3771_v42 }
 0x4a3   : > { %1387 = vst.msk [vmem:[%s3781_s16 + $0x68] sm:$0xf] %vm1360_vm3, %v2560_v40  ;;  %v1140_v53 = vpop.f32.mrf.mxu0  ;;  %v1204_v58 = vpop.f32.mrf.mxu1 }
 0x4a4   : > { %1369 = vst.msk [vmem:[%s3781_s16 + $0x20] sm:$0xf] %vm1360_vm3, %v2542_v49  ;;  %1385 = vst.msk [vmem:[%s3781_s16 + $0x60] sm:$0xf] %vm1360_vm3, %v2558_v52  ;;  %v2545_v4 = vpack.c.bf16 %v1149_v0, %v1149_v0  ;;  %v2561_v6 = vpack.c.bf16 %v1213_v45, %v1213_v45  ;;  %v1141_v56 = vadd.f32 %v3771_v42, %v1140_v53 }
 0x4a5   : > { %v1205_v59 = vadd.f32 %v3771_v42, %v1204_v58  ;;  %v2800_v8 = vpop.f32.mrf.mxu0  ;;  %v2816_v11 = vpop.f32.mrf.mxu1 }
 0x4a6   : > { %1372 = vst.msk [vmem:[%s3781_s16 + $0x2c] sm:$0xf] %vm1360_vm3, %v2545_v4  ;;  %1388 = vst.msk [vmem:[%s3781_s16 + $0x6c] sm:$0xf] %vm1360_vm3, %v2561_v6  ;;  %v2543_v62 = vpack.c.bf16 %v1141_v56, %v1141_v56  ;;  %v1162_v12 = vadd.f32 %v2800_v8, %v3771_v42  ;;  %v1226_v13 = vadd.f32 %v2816_v11, %v3771_v42 }
 0x4a7   : > { %v2559_v61 = vpack.c.bf16 %v1205_v59, %v1205_v59  ;;  %v1153_v2 = vpop.f32.mrf.mxu0  ;;  %v1217_v55 = vpop.f32.mrf.mxu1 }
 0x4a8   : > { %1370 = vst.msk [vmem:[%s3781_s16 + $0x24] sm:$0xf] %vm1360_vm3, %v2543_v62  ;;  %v2548_v17 = vpack.c.bf16 %v1162_v12, %v1162_v12  ;;  %v2564_v1 = vpack.c.bf16 %v1226_v13, %v1226_v13  ;;  %v1154_v16 = vadd.f32 %v3771_v42, %v1153_v2  ;;  %v1218_v48 = vadd.f32 %v3771_v42, %v1217_v55 }
 0x4a9   : > { %1386 = vst.msk [vmem:[%s3781_s16 + $0x64] sm:$0xf] %vm1360_vm3, %v2559_v61  ;;  %v2801_v51 = vpop.f32.mrf.mxu0  ;;  %v2817_v10 = vpop.f32.mrf.mxu1 }
 0x4aa   : > { %1375 = vst.msk [vmem:[%s3781_s16 + $0x38] sm:$0xf] %vm1360_vm3, %v2548_v17  ;;  %1391 = vst.msk [vmem:[%s3781_s16 + $0x78] sm:$0xf] %vm1360_vm3, %v2564_v1  ;;  %v2546_v21 = vpack.c.bf16 %v1154_v16, %v1154_v16  ;;  %v2562_v15 = vpack.c.bf16 %v1218_v48, %v1218_v48  ;;  %v1165_v25 = vadd.f32 %v2801_v51, %v3771_v42 }
 0x4ab   : > { %v1229_v54 = vadd.f32 %v2817_v10, %v3771_v42  ;;  %v1156_v7 = vpop.f32.mrf.mxu0  ;;  %v1220_v9 = vpop.f32.mrf.mxu1 }
 0x4ac   : > { %1373 = vst.msk [vmem:[%s3781_s16 + $0x30] sm:$0xf] %vm1360_vm3, %v2546_v21  ;;  %1389 = vst.msk [vmem:[%s3781_s16 + $0x70] sm:$0xf] %vm1360_vm3, %v2562_v15  ;;  %v2549_v63 = vpack.c.bf16 %v1165_v25, %v1165_v25  ;;  %v1157_v24 = vadd.f32 %v3771_v42, %v1156_v7  ;;  %v1221_v28 = vadd.f32 %v3771_v42, %v1220_v9 }
 0x4ad   : > { %v2565_v22 = vpack.c.bf16 %v1229_v54, %v1229_v54  ;;  %v2828_v29 = vpop.f32.mrf.mxu1  ;;  %v2868_v18 = vpop.f32.mrf.mxu0 }
 0x4ae   : > { %1376 = vst.msk [vmem:[%s3781_s16 + $0x3c] sm:$0xf] %vm1360_vm3, %v2549_v63  ;;  %v2547_v32 = vpack.c.bf16 %v1157_v24, %v1157_v24  ;;  %v2563_v19 = vpack.c.bf16 %v1221_v28, %v1221_v28  ;;  %v1477_v34 = vadd.f32 %v2828_v29, %v3864_v57  ;;  %v1839_v14 = vadd.f32 %v2868_v18, %v3867_v60 }
 0x4af   : > { %1392 = vst.msk [vmem:[%s3781_s16 + $0x7c] sm:$0xf] %vm1360_vm3, %v2565_v22  ;;  %v1468_v42 = vpop.f32.mrf.mxu1  ;;  %v1830_v20 = vpop.f32.mrf.mxu0 }
 0x4b0   : > { %1374 = vst.msk [vmem:[%s3781_s16 + $0x34] sm:$0xf] %vm1360_vm3, %v2547_v32  ;;  %1390 = vst.msk [vmem:[%s3781_s16 + $0x74] sm:$0xf] %vm1360_vm3, %v2563_v19  ;;  %v2568_v37 = vpack.c.bf16 %v1477_v34, %v1477_v34  ;;  %v2600_v23 = vpack.c.bf16 %v1839_v14, %v1839_v14  ;;  %v1469_v38 = vadd.f32 %v3864_v57, %v1468_v42 }
 0x4b1   : > { %v1831_v41 = vadd.f32 %v3867_v60, %v1830_v20  ;;  %v2829_v43 = vpop.f32.mrf.mxu1  ;;  %v2869_v27 = vpop.f32.mrf.mxu0 }
 0x4b2   : > { %1725 = vst.msk [vmem:[%s3885_s19 + $0x8] sm:$0xf] %vm1360_vm3, %v2568_v37  ;;  %2087 = vst.msk [vmem:[%s3891_s22 + $0x8] sm:$0xf] %vm1360_vm3, %v2600_v23  ;;  %v2566_v26 = vpack.c.bf16 %v1469_v38, %v1469_v38  ;;  %v1480_v46 = vadd.f32 %v2829_v43, %v3864_v57  ;;  %v1842_v47 = vadd.f32 %v2869_v27, %v3867_v60 }
 0x4b3   : > { %v2598_v31 = vpack.c.bf16 %v1831_v41, %v1831_v41  ;;  %v1471_v3 = vpop.f32.mrf.mxu1  ;;  %v1833_v30 = vpop.f32.mrf.mxu0 }
 0x4b4   : > { %1723 = vst.msk [vmem:[%s3885_s19] sm:$0xf] %vm1360_vm3, %v2566_v26  ;;  %v2569_v33 = vpack.c.bf16 %v1480_v46, %v1480_v46  ;;  %v2601_v35 = vpack.c.bf16 %v1842_v47, %v1842_v47  ;;  %v1472_v5 = vadd.f32 %v3864_v57, %v1471_v3  ;;  %v1834_v40 = vadd.f32 %v3867_v60, %v1833_v30 }
 0x4b5   : > { %2085 = vst.msk [vmem:[%s3891_s22] sm:$0xf] %vm1360_vm3, %v2598_v31  ;;  %v2832_v50 = vpop.f32.mrf.mxu1  ;;  %v2872_v36 = vpop.f32.mrf.mxu0 }
 0x4b6   : > { %1726 = vst.msk [vmem:[%s3885_s19 + $0xc] sm:$0xf] %vm1360_vm3, %v2569_v33  ;;  %2088 = vst.msk [vmem:[%s3891_s22 + $0xc] sm:$0xf] %vm1360_vm3, %v2601_v35  ;;  %v2567_v39 = vpack.c.bf16 %v1472_v5, %v1472_v5  ;;  %v2599_v44 = vpack.c.bf16 %v1834_v40, %v1834_v40  ;;  %v1493_v49 = vadd.f32 %v2832_v50, %v3864_v57 }
 0x4b7   : > { %v1855_v52 = vadd.f32 %v2872_v36, %v3867_v60  ;;  %v1484_v0 = vpop.f32.mrf.mxu1  ;;  %v1846_v45 = vpop.f32.mrf.mxu0 }
 0x4b8   : > { %1724 = vst.msk [vmem:[%s3885_s19 + $0x4] sm:$0xf] %vm1360_vm3, %v2567_v39  ;;  %2086 = vst.msk [vmem:[%s3891_s22 + $0x4] sm:$0xf] %vm1360_vm3, %v2599_v44  ;;  %v2572_v53 = vpack.c.bf16 %v1493_v49, %v1493_v49  ;;  %v1485_v4 = vadd.f32 %v3864_v57, %v1484_v0  ;;  %v1847_v6 = vadd.f32 %v3867_v60, %v1846_v45 }
 0x4b9   : > { %v2604_v58 = vpack.c.bf16 %v1855_v52, %v1855_v52  ;;  %v2833_v56 = vpop.f32.mrf.mxu1  ;;  %v2873_v59 = vpop.f32.mrf.mxu0 }
 0x4ba   : > { %1729 = vst.msk [vmem:[%s3885_s19 + $0x18] sm:$0xf] %vm1360_vm3, %v2572_v53  ;;  %v2570_v8 = vpack.c.bf16 %v1485_v4, %v1485_v4  ;;  %v2602_v11 = vpack.c.bf16 %v1847_v6, %v1847_v6  ;;  %v1496_v62 = vadd.f32 %v2833_v56, %v3864_v57  ;;  %v1858_v61 = vadd.f32 %v2873_v59, %v3867_v60 }
 0x4bb   : > { %2091 = vst.msk [vmem:[%s3891_s22 + $0x18] sm:$0xf] %vm1360_vm3, %v2604_v58  ;;  %v1487_v12 = vpop.f32.mrf.mxu1  ;;  %v1849_v13 = vpop.f32.mrf.mxu0 }
 0x4bc   : > { %1727 = vst.msk [vmem:[%s3885_s19 + $0x10] sm:$0xf] %vm1360_vm3, %v2570_v8  ;;  %2089 = vst.msk [vmem:[%s3891_s22 + $0x10] sm:$0xf] %vm1360_vm3, %v2602_v11  ;;  %v2573_v2 = vpack.c.bf16 %v1496_v62, %v1496_v62  ;;  %v2605_v55 = vpack.c.bf16 %v1858_v61, %v1858_v61  ;;  %v1488_v17 = vadd.f32 %v3864_v57, %v1487_v12 }
 0x4bd   : > { %v1850_v1 = vadd.f32 %v3867_v60, %v1849_v13  ;;  %v2836_v16 = vpop.f32.mrf.mxu1  ;;  %v2876_v48 = vpop.f32.mrf.mxu0 }
 0x4be   : > { %1730 = vst.msk [vmem:[%s3885_s19 + $0x1c] sm:$0xf] %vm1360_vm3, %v2573_v2  ;;  %2092 = vst.msk [vmem:[%s3891_s22 + $0x1c] sm:$0xf] %vm1360_vm3, %v2605_v55  ;;  %v2571_v51 = vpack.c.bf16 %v1488_v17, %v1488_v17  ;;  %v1509_v21 = vadd.f32 %v2836_v16, %v3864_v57  ;;  %v1871_v15 = vadd.f32 %v2876_v48, %v3867_v60 }
 0x4bf   : > { %v2603_v10 = vpack.c.bf16 %v1850_v1, %v1850_v1  ;;  %v1500_v25 = vpop.f32.mrf.mxu1  ;;  %v1862_v54 = vpop.f32.mrf.mxu0 }
 0x4c0   : > { %1728 = vst.msk [vmem:[%s3885_s19 + $0x14] sm:$0xf] %vm1360_vm3, %v2571_v51  ;;  %v2576_v7 = vpack.c.bf16 %v1509_v21, %v1509_v21  ;;  %v2608_v9 = vpack.c.bf16 %v1871_v15, %v1871_v15  ;;  %v1501_v63 = vadd.f32 %v3864_v57, %v1500_v25  ;;  %v1863_v22 = vadd.f32 %v3867_v60, %v1862_v54 }
 0x4c1   : > { %2090 = vst.msk [vmem:[%s3891_s22 + $0x14] sm:$0xf] %vm1360_vm3, %v2603_v10  ;;  %v2837_v24 = vpop.f32.mrf.mxu1  ;;  %v2877_v28 = vpop.f32.mrf.mxu0 }
 0x4c2   : > { %1733 = vst.msk [vmem:[%s3885_s19 + $0x28] sm:$0xf] %vm1360_vm3, %v2576_v7  ;;  %2095 = vst.msk [vmem:[%s3891_s22 + $0x28] sm:$0xf] %vm1360_vm3, %v2608_v9  ;;  %v2574_v29 = vpack.c.bf16 %v1501_v63, %v1501_v63  ;;  %v2606_v18 = vpack.c.bf16 %v1863_v22, %v1863_v22  ;;  %v1512_v32 = vadd.f32 %v2837_v24, %v3864_v57 }
 0x4c3   : > { %v1874_v19 = vadd.f32 %v2877_v28, %v3867_v60  ;;  %v1503_v34 = vpop.f32.mrf.mxu1  ;;  %v1865_v14 = vpop.f32.mrf.mxu0 }
 0x4c4   : > { %1731 = vst.msk [vmem:[%s3885_s19 + $0x20] sm:$0xf] %vm1360_vm3, %v2574_v29  ;;  %2093 = vst.msk [vmem:[%s3891_s22 + $0x20] sm:$0xf] %vm1360_vm3, %v2606_v18  ;;  %v2577_v42 = vpack.c.bf16 %v1512_v32, %v1512_v32  ;;  %v1504_v37 = vadd.f32 %v3864_v57, %v1503_v34  ;;  %v1866_v23 = vadd.f32 %v3867_v60, %v1865_v14 }
 0x4c5   : > { %v2609_v20 = vpack.c.bf16 %v1874_v19, %v1874_v19  ;;  %v2840_v38 = vpop.f32.mrf.mxu1  ;;  %v2880_v41 = vpop.f32.mrf.mxu0 }
 0x4c6   : > { %1734 = vst.msk [vmem:[%s3885_s19 + $0x2c] sm:$0xf] %vm1360_vm3, %v2577_v42  ;;  %v2575_v43 = vpack.c.bf16 %v1504_v37, %v1504_v37  ;;  %v2607_v27 = vpack.c.bf16 %v1866_v23, %v1866_v23  ;;  %v1525_v26 = vadd.f32 %v2840_v38, %v3864_v57  ;;  %v1887_v31 = vadd.f32 %v2880_v41, %v3867_v60 }
 0x4c7   : > { %2096 = vst.msk [vmem:[%s3891_s22 + $0x2c] sm:$0xf] %vm1360_vm3, %v2609_v20  ;;  %v1516_v46 = vpop.f32.mrf.mxu1  ;;  %v1878_v47 = vpop.f32.mrf.mxu0 }
 0x4c8   : > { %1732 = vst.msk [vmem:[%s3885_s19 + $0x24] sm:$0xf] %vm1360_vm3, %v2575_v43  ;;  %2094 = vst.msk [vmem:[%s3891_s22 + $0x24] sm:$0xf] %vm1360_vm3, %v2607_v27  ;;  %v2580_v3 = vpack.c.bf16 %v1525_v26, %v1525_v26  ;;  %v2612_v30 = vpack.c.bf16 %v1887_v31, %v1887_v31  ;;  %v1517_v33 = vadd.f32 %v3864_v57, %v1516_v46 }
 0x4c9   : > { %v1879_v35 = vadd.f32 %v3867_v60, %v1878_v47  ;;  %v2841_v5 = vpop.f32.mrf.mxu1  ;;  %v2881_v40 = vpop.f32.mrf.mxu0 }
 0x4ca   : > { %1737 = vst.msk [vmem:[%s3885_s19 + $0x38] sm:$0xf] %vm1360_vm3, %v2580_v3  ;;  %2099 = vst.msk [vmem:[%s3891_s22 + $0x38] sm:$0xf] %vm1360_vm3, %v2612_v30  ;;  %v2578_v50 = vpack.c.bf16 %v1517_v33, %v1517_v33  ;;  %v1528_v39 = vadd.f32 %v2841_v5, %v3864_v57  ;;  %v1890_v44 = vadd.f32 %v2881_v40, %v3867_v60 }
 0x4cb   : > { %v2610_v36 = vpack.c.bf16 %v1879_v35, %v1879_v35  ;;  %v1519_v49 = vpop.f32.mrf.mxu1  ;;  %v1881_v52 = vpop.f32.mrf.mxu0 }
 0x4cc   : > { %1735 = vst.msk [vmem:[%s3885_s19 + $0x30] sm:$0xf] %vm1360_vm3, %v2578_v50  ;;  %v2581_v0 = vpack.c.bf16 %v1528_v39, %v1528_v39  ;;  %v2613_v45 = vpack.c.bf16 %v1890_v44, %v1890_v44  ;;  %v1520_v53 = vadd.f32 %v3864_v57, %v1519_v49  ;;  %v1882_v58 = vadd.f32 %v3867_v60, %v1881_v52 }
 0x4cd   : > { %2097 = vst.msk [vmem:[%s3891_s22 + $0x30] sm:$0xf] %vm1360_vm3, %v2610_v36  ;;  %v2844_v4 = vpop.f32.mrf.mxu1  ;;  %v2884_v6 = vpop.f32.mrf.mxu0 }
 0x4ce   : > { %1738 = vst.msk [vmem:[%s3885_s19 + $0x3c] sm:$0xf] %vm1360_vm3, %v2581_v0  ;;  %2100 = vst.msk [vmem:[%s3891_s22 + $0x3c] sm:$0xf] %vm1360_vm3, %v2613_v45  ;;  %v2579_v56 = vpack.c.bf16 %v1520_v53, %v1520_v53  ;;  %v2611_v59 = vpack.c.bf16 %v1882_v58, %v1882_v58  ;;  %v1541_v8 = vadd.f32 %v2844_v4, %v3864_v57 }
 0x4cf   : > { %v1903_v11 = vadd.f32 %v2884_v6, %v3867_v60  ;;  %v1532_v62 = vpop.f32.mrf.mxu1  ;;  %v1894_v61 = vpop.f32.mrf.mxu0 }
 0x4d0   : > { %1736 = vst.msk [vmem:[%s3885_s19 + $0x34] sm:$0xf] %vm1360_vm3, %v2579_v56  ;;  %2098 = vst.msk [vmem:[%s3891_s22 + $0x34] sm:$0xf] %vm1360_vm3, %v2611_v59  ;;  %v2584_v12 = vpack.c.bf16 %v1541_v8, %v1541_v8  ;;  %v1533_v2 = vadd.f32 %v3864_v57, %v1532_v62  ;;  %v1895_v55 = vadd.f32 %v3867_v60, %v1894_v61 }
 0x4d1   : > { %v2616_v13 = vpack.c.bf16 %v1903_v11, %v1903_v11  ;;  %v2845_v17 = vpop.f32.mrf.mxu1  ;;  %v2885_v1 = vpop.f32.mrf.mxu0 }
 0x4d2   : > { %1741 = vst.msk [vmem:[%s3885_s19 + $0x48] sm:$0xf] %vm1360_vm3, %v2584_v12  ;;  %v2582_v16 = vpack.c.bf16 %v1533_v2, %v1533_v2  ;;  %v2614_v48 = vpack.c.bf16 %v1895_v55, %v1895_v55  ;;  %v1544_v51 = vadd.f32 %v2845_v17, %v3864_v57  ;;  %v1906_v10 = vadd.f32 %v2885_v1, %v3867_v60 }
 0x4d3   : > { %2103 = vst.msk [vmem:[%s3891_s22 + $0x48] sm:$0xf] %vm1360_vm3, %v2616_v13  ;;  %v1535_v21 = vpop.f32.mrf.mxu1  ;;  %v1897_v15 = vpop.f32.mrf.mxu0 }
 0x4d4   : > { %1739 = vst.msk [vmem:[%s3885_s19 + $0x40] sm:$0xf] %vm1360_vm3, %v2582_v16  ;;  %2101 = vst.msk [vmem:[%s3891_s22 + $0x40] sm:$0xf] %vm1360_vm3, %v2614_v48  ;;  %v2585_v25 = vpack.c.bf16 %v1544_v51, %v1544_v51  ;;  %v2617_v54 = vpack.c.bf16 %v1906_v10, %v1906_v10  ;;  %v1536_v7 = vadd.f32 %v3864_v57, %v1535_v21 }
 0x4d5   : > { %v1898_v9 = vadd.f32 %v3867_v60, %v1897_v15  ;;  %v2848_v63 = vpop.f32.mrf.mxu1  ;;  %v2888_v22 = vpop.f32.mrf.mxu0 }
 0x4d6   : > { %1742 = vst.msk [vmem:[%s3885_s19 + $0x4c] sm:$0xf] %vm1360_vm3, %v2585_v25  ;;  %2104 = vst.msk [vmem:[%s3891_s22 + $0x4c] sm:$0xf] %vm1360_vm3, %v2617_v54  ;;  %v2583_v24 = vpack.c.bf16 %v1536_v7, %v1536_v7  ;;  %v1557_v29 = vadd.f32 %v2848_v63, %v3864_v57  ;;  %v1919_v18 = vadd.f32 %v2888_v22, %v3867_v60 }
 0x4d7   : > { %v2615_v28 = vpack.c.bf16 %v1898_v9, %v1898_v9  ;;  %v1548_v32 = vpop.f32.mrf.mxu1  ;;  %v1910_v19 = vpop.f32.mrf.mxu0 }
 0x4d8   : > { %1740 = vst.msk [vmem:[%s3885_s19 + $0x44] sm:$0xf] %vm1360_vm3, %v2583_v24  ;;  %v2588_v34 = vpack.c.bf16 %v1557_v29, %v1557_v29  ;;  %v2620_v14 = vpack.c.bf16 %v1919_v18, %v1919_v18  ;;  %v1549_v42 = vadd.f32 %v3864_v57, %v1548_v32  ;;  %v1911_v20 = vadd.f32 %v3867_v60, %v1910_v19 }
 0x4d9   : > { %2102 = vst.msk [vmem:[%s3891_s22 + $0x44] sm:$0xf] %vm1360_vm3, %v2615_v28  ;;  %v2849_v37 = vpop.f32.mrf.mxu1  ;;  %v2889_v23 = vpop.f32.mrf.mxu0 }
 0x4da   : > { %1745 = vst.msk [vmem:[%s3885_s19 + $0x58] sm:$0xf] %vm1360_vm3, %v2588_v34  ;;  %2107 = vst.msk [vmem:[%s3891_s22 + $0x58] sm:$0xf] %vm1360_vm3, %v2620_v14  ;;  %v2586_v38 = vpack.c.bf16 %v1549_v42, %v1549_v42  ;;  %v2618_v41 = vpack.c.bf16 %v1911_v20, %v1911_v20  ;;  %v1560_v43 = vadd.f32 %v2849_v37, %v3864_v57 }
 0x4db   : > { %v1922_v27 = vadd.f32 %v2889_v23, %v3867_v60  ;;  %v1551_v26 = vpop.f32.mrf.mxu1  ;;  %v1913_v31 = vpop.f32.mrf.mxu0 }
 0x4dc   : > { %1743 = vst.msk [vmem:[%s3885_s19 + $0x50] sm:$0xf] %vm1360_vm3, %v2586_v38  ;;  %2105 = vst.msk [vmem:[%s3891_s22 + $0x50] sm:$0xf] %vm1360_vm3, %v2618_v41  ;;  %v2589_v46 = vpack.c.bf16 %v1560_v43, %v1560_v43  ;;  %v1552_v3 = vadd.f32 %v3864_v57, %v1551_v26  ;;  %v1914_v30 = vadd.f32 %v3867_v60, %v1913_v31 }
 0x4dd   : > { %v2621_v47 = vpack.c.bf16 %v1922_v27, %v1922_v27  ;;  %v2852_v33 = vpop.f32.mrf.mxu1  ;;  %v2892_v35 = vpop.f32.mrf.mxu0 }
 0x4de   : > { %1746 = vst.msk [vmem:[%s3885_s19 + $0x5c] sm:$0xf] %vm1360_vm3, %v2589_v46  ;;  %v2587_v5 = vpack.c.bf16 %v1552_v3, %v1552_v3  ;;  %v2619_v40 = vpack.c.bf16 %v1914_v30, %v1914_v30  ;;  %v1573_v50 = vadd.f32 %v2852_v33, %v3864_v57  ;;  %v1935_v36 = vadd.f32 %v2892_v35, %v3867_v60 }
 0x4df   : > { %2108 = vst.msk [vmem:[%s3891_s22 + $0x5c] sm:$0xf] %vm1360_vm3, %v2621_v47  ;;  %v1564_v39 = vpop.f32.mrf.mxu1  ;;  %v1926_v44 = vpop.f32.mrf.mxu0 }
 0x4e0   : > { %1744 = vst.msk [vmem:[%s3885_s19 + $0x54] sm:$0xf] %vm1360_vm3, %v2587_v5  ;;  %2106 = vst.msk [vmem:[%s3891_s22 + $0x54] sm:$0xf] %vm1360_vm3, %v2619_v40  ;;  %v2592_v49 = vpack.c.bf16 %v1573_v50, %v1573_v50  ;;  %v2624_v52 = vpack.c.bf16 %v1935_v36, %v1935_v36  ;;  %v1565_v0 = vadd.f32 %v3864_v57, %v1564_v39 }
 0x4e1   : > { %v1927_v45 = vadd.f32 %v3867_v60, %v1926_v44  ;;  %v2853_v53 = vpop.f32.mrf.mxu1  ;;  %v2893_v58 = vpop.f32.mrf.mxu0 }
 0x4e2   : > { %1749 = vst.msk [vmem:[%s3885_s19 + $0x68] sm:$0xf] %vm1360_vm3, %v2592_v49  ;;  %2111 = vst.msk [vmem:[%s3891_s22 + $0x68] sm:$0xf] %vm1360_vm3, %v2624_v52  ;;  %v2590_v4 = vpack.c.bf16 %v1565_v0, %v1565_v0  ;;  %v1576_v56 = vadd.f32 %v2853_v53, %v3864_v57  ;;  %v1938_v59 = vadd.f32 %v2893_v58, %v3867_v60 }
 0x4e3   : > { %v2622_v6 = vpack.c.bf16 %v1927_v45, %v1927_v45  ;;  %v1567_v8 = vpop.f32.mrf.mxu1  ;;  %v1929_v11 = vpop.f32.mrf.mxu0 }
 0x4e4   : > { %1747 = vst.msk [vmem:[%s3885_s19 + $0x60] sm:$0xf] %vm1360_vm3, %v2590_v4  ;;  %v2593_v62 = vpack.c.bf16 %v1576_v56, %v1576_v56  ;;  %v2625_v61 = vpack.c.bf16 %v1938_v59, %v1938_v59  ;;  %v1568_v12 = vadd.f32 %v3864_v57, %v1567_v8  ;;  %v1930_v13 = vadd.f32 %v3867_v60, %v1929_v11 }
 0x4e5   : > { %2109 = vst.msk [vmem:[%s3891_s22 + $0x60] sm:$0xf] %vm1360_vm3, %v2622_v6  ;;  %v2856_v2 = vpop.f32.mrf.mxu1  ;;  %v2896_v55 = vpop.f32.mrf.mxu0 }
 0x4e6   : > { %1750 = vst.msk [vmem:[%s3885_s19 + $0x6c] sm:$0xf] %vm1360_vm3, %v2593_v62  ;;  %2112 = vst.msk [vmem:[%s3891_s22 + $0x6c] sm:$0xf] %vm1360_vm3, %v2625_v61  ;;  %v2591_v17 = vpack.c.bf16 %v1568_v12, %v1568_v12  ;;  %v2623_v1 = vpack.c.bf16 %v1930_v13, %v1930_v13  ;;  %v1589_v16 = vadd.f32 %v2856_v2, %v3864_v57 }
 0x4e7   : > { %v1951_v48 = vadd.f32 %v2896_v55, %v3867_v60  ;;  %v1580_v51 = vpop.f32.mrf.mxu1  ;;  %v1942_v10 = vpop.f32.mrf.mxu0 }
 0x4e8   : > { %1748 = vst.msk [vmem:[%s3885_s19 + $0x64] sm:$0xf] %vm1360_vm3, %v2591_v17  ;;  %2110 = vst.msk [vmem:[%s3891_s22 + $0x64] sm:$0xf] %vm1360_vm3, %v2623_v1  ;;  %v2596_v21 = vpack.c.bf16 %v1589_v16, %v1589_v16  ;;  %v1581_v25 = vadd.f32 %v3864_v57, %v1580_v51  ;;  %v1943_v54 = vadd.f32 %v3867_v60, %v1942_v10 }
 0x4e9   : > { %v2628_v15 = vpack.c.bf16 %v1951_v48, %v1951_v48  ;;  %v2857_v7 = vpop.f32.mrf.mxu1  ;;  %v2897_v9 = vpop.f32.mrf.mxu0 }
 0x4ea   : > { %1753 = vst.msk [vmem:[%s3885_s19 + $0x78] sm:$0xf] %vm1360_vm3, %v2596_v21  ;;  %v2594_v63 = vpack.c.bf16 %v1581_v25, %v1581_v25  ;;  %v2626_v22 = vpack.c.bf16 %v1943_v54, %v1943_v54  ;;  %v1592_v24 = vadd.f32 %v2857_v7, %v3864_v57  ;;  %v1954_v28 = vadd.f32 %v2897_v9, %v3867_v60 }
 0x4eb   : > { %2115 = vst.msk [vmem:[%s3891_s22 + $0x78] sm:$0xf] %vm1360_vm3, %v2628_v15  ;;  %v1583_v29 = vpop.f32.mrf.mxu1  ;;  %v1945_v18 = vpop.f32.mrf.mxu0 }
 0x4ec   : > { %1751 = vst.msk [vmem:[%s3885_s19 + $0x70] sm:$0xf] %vm1360_vm3, %v2594_v63  ;;  %2113 = vst.msk [vmem:[%s3891_s22 + $0x70] sm:$0xf] %vm1360_vm3, %v2626_v22  ;;  %v2597_v32 = vpack.c.bf16 %v1592_v24, %v1592_v24  ;;  %v2629_v19 = vpack.c.bf16 %v1954_v28, %v1954_v28  ;;  %v1584_v34 = vadd.f32 %v3864_v57, %v1583_v29 }
 0x4ed   : > { %v1946_v14 = vadd.f32 %v3867_v60, %v1945_v18 }
 0x4ee   : > { %1754 = vst.msk [vmem:[%s3885_s19 + $0x7c] sm:$0xf] %vm1360_vm3, %v2597_v32  ;;  %2116 = vst.msk [vmem:[%s3891_s22 + $0x7c] sm:$0xf] %vm1360_vm3, %v2629_v19  ;;  %v2595_v42 = vpack.c.bf16 %v1584_v34, %v1584_v34 }
 0x4ef   : > { %v2627_v20 = vpack.c.bf16 %v1946_v14, %v1946_v14 }
 0x4f0   : > { %1752 = vst.msk [vmem:[%s3885_s19 + $0x74] sm:$0xf] %vm1360_vm3, %v2595_v42 }
 0x4f1   : > { %2114 = vst.msk [vmem:[%s3891_s22 + $0x74] sm:$0xf] %vm1360_vm3, %v2627_v20 }
 0x4f2 PF: > { %s18_s28 = sadd.s32 1, %s3002_s28   ;;  %s4110_s24 = smov %s2994_s26 }
 0x4f3   : > { %p15_p7 = scmp.ge.s32.totalorder %s18_s28, 6   ;;  %s4111_s25 = smov %s2998_s27 }
 0x4f4   : > { %s4112_s26 = smov %s4115_s29  ;;  %s4113_s27 = smov %s4119_s30 }
 0x4f5   :  { %17 = sbr.rel (!%p15_p7) target bundleno = 3 (0x3), region = 104 }

</bundles_post_ra>
